<compile_context>
chip_gen: v6e
topology: v6e:2x2x1
jax: 0.10.0
libtpu: 0.0.40
codegen_flags: <defaults>
</compile_context>

<pallas_src>
import numpy as np
import jax
import jax.numpy as jnp
from jax.experimental import pallas as pl
from jax.experimental.pallas import tpu as pltpu

# ----------------------------------------------------------------------------
# config consistent with GenerateImpulse(latent_dim, channels, n_samples,
# n_filter_bands, encoding_channels)
# ----------------------------------------------------------------------------
BATCH = 2
LATENT_DIM = 16
CHANNELS = 32
N_SAMPLES = 4096
N_FRAMES = N_SAMPLES // 256          # 16
N_FILTER_BANDS = 8
FILTER_KERNEL_SIZE = 16
ENCODING_CHANNELS = 1
SAMPLERATE = 22050.0
NYQUIST = SAMPLERATE / 2.0

LEAKY = 0.2          # LeakyReLU slope used throughout that codebase
LN_EPS = 1e-5
BN_EPS = 1e-5

LANES = 128
ROWS = N_SAMPLES // LANES            # 32 rows of 128 samples per batch element
UPSAMPLE = N_SAMPLES // N_FRAMES     # 256


# ----------------------------------------------------------------------------
# deterministic parameter / buffer construction (synthetic, no checkpoint)
# ----------------------------------------------------------------------------
def morlet_filter_bank_np():
    # synthetic stand-in for zounds morlet_filter_bank(...).real
    n = FILTER_KERNEL_SIZE
    idx = np.arange(n, dtype=np.float64)
    freqs = np.geomspace(20.0, 0.9 * NYQUIST, N_FILTER_BANDS)
    scaling = 0.25
    rows = []
    for f in freqs:
        sigma = scaling * SAMPLERATE / (2.0 * np.pi * f)
        win = np.exp(-0.5 * (idx - n / 2.0) ** 2 / (sigma ** 2 + 1e-6))
        carrier = np.cos(2.0 * np.pi * f * idx / SAMPLERATE)
        filt = win * carrier
        filt = filt / (np.linalg.norm(filt) + 1e-8)
        rows.append(filt)
    return jnp.asarray(np.stack(rows).astype(np.float32))


def linear_interp_matrix(n_in, n_out):
    # used only by the pure-JAX reference check:
    # matches F.interpolate(mode='linear', align_corners=False)
    scale = n_in / n_out
    pos = (np.arange(n_out, dtype=np.float64) + 0.5) * scale - 0.5
    pos = np.maximum(pos, 0.0)
    i0 = np.minimum(np.floor(pos).astype(np.int64), n_in - 1)
    i1 = np.minimum(i0 + 1, n_in - 1)
    lam = (pos - i0).astype(np.float32)
    cols = np.arange(n_out)
    W = np.zeros((n_in, n_out), dtype=np.float32)
    W[i0, cols] += (1.0 - lam)
    W[i1, cols] += lam
    return jnp.asarray(W)


def make_params(key):
    ks = jax.random.split(key, 24)
    nrm = lambda i, shape: (0.1 * jax.random.normal(ks[i], shape)).astype(jnp.float32)
    p = {}
    # --- to_filter_mix: LinearOutputStack(channels, 3, out=N_FILTER_BANDS,
    #     in=LATENT_DIM, norm=LayerNorm(channels)); leaky_relu(0.2) activation
    p["fm_w1"] = nrm(0, (LATENT_DIM, CHANNELS)); p["fm_b1"] = nrm(1, (1, CHANNELS))
    p["fm_w2"] = nrm(2, (CHANNELS, CHANNELS));   p["fm_b2"] = nrm(3, (1, CHANNELS))
    p["fm_w3"] = nrm(4, (CHANNELS, CHANNELS));   p["fm_b3"] = nrm(5, (1, CHANNELS))
    p["fm_w4"] = nrm(6, (CHANNELS, N_FILTER_BANDS)); p["fm_b4"] = nrm(7, (1, N_FILTER_BANDS))
    for l in (1, 2, 3):   # LayerNorm affine params at torch init (gamma=1, beta=0)
        p[f"fm_g{l}"] = jnp.ones((1, CHANNELS), jnp.float32)
        p[f"fm_be{l}"] = jnp.zeros((1, CHANNELS), jnp.float32)
    # --- to_envelope: ConvUpsample(latent, channels, start=4, end=N_FRAMES,
    #     mode='nearest', out_channels=1, batch_norm=True)
    p["env_w0"] = nrm(8, (LATENT_DIM, CHANNELS * 4)); p["env_b0"] = nrm(9, (CHANNELS * 4,))
    n_layers = int(np.log2(N_FRAMES) - np.log2(4))
    for l in range(n_layers):
        p[f"env_cw{l}"] = nrm(10 + 2 * l, (CHANNELS, CHANNELS, 3))
        p[f"env_cb{l}"] = nrm(11 + 2 * l, (CHANNELS,))
        p[f"env_bn_g{l}"] = jnp.ones((CHANNELS,), jnp.float32)
        p[f"env_bn_b{l}"] = jnp.zeros((CHANNELS,), jnp.float32)
    p["env_fw"] = nrm(20, (1, CHANNELS, 3)); p["env_fb"] = nrm(21, (1,))
    return p


# ----------------------------------------------------------------------------
# plain-JAX glue: to_filter_mix MLP + filter-bank mix (all matmuls are M=2,
# K<=32 -- per review, not worth a pallas_call) and the ConvUpsample envelope.
# ----------------------------------------------------------------------------
def to_filter_taps(x, p, fbank):
    def ln(h, g, be):
        mu = h.mean(-1, keepdims=True)
        var = ((h - mu) ** 2).mean(-1, keepdims=True)
        return (h - mu) * jax.lax.rsqrt(var + LN_EPS) * g + be

    lrelu = lambda h: jnp.where(h >= 0, h, LEAKY * h)
    h = lrelu(ln(x @ p["fm_w1"] + p["fm_b1"], p["fm_g1"], p["fm_be1"]))
    h = lrelu(ln(h @ p["fm_w2"] + p["fm_b2"], p["fm_g2"], p["fm_be2"]))
    h = lrelu(ln(h @ p["fm_w3"] + p["fm_b3"], p["fm_g3"], p["fm_be3"]))
    mix = h @ p["fm_w4"] + p["fm_b4"]                 # (B, n_bands)
    return mix @ fbank                                # combined FIR taps (B, 16)


def conv1d(x, w, b):  # x (B,C,L) NCW, w (Cout,Cin,3), same padding
    y = jax.lax.conv_general_dilated(
        x, w, window_strides=(1,), padding=[(1, 1)],
        dimension_numbers=("NCH", "OIH", "NCH"))
    return y + b[None, :, None]


def to_envelope(x, p):
    # TODO(synk): ConvUpsample works on sequences of length <= N_FRAMES=16 and
    # is negligible next to the O(N_SAMPLES) hot path, so it stays in plain JAX.
    h = x @ p["env_w0"] + p["env_b0"]                       # (B, C*4)
    h = h.reshape(BATCH, CHANNELS, 4)
    n_layers = int(np.log2(N_FRAMES) - np.log2(4))
    for l in range(n_layers):
        h = jnp.repeat(h, 2, axis=-1)                       # nearest upsample x2
        h = conv1d(h, p[f"env_cw{l}"], p[f"env_cb{l}"])
        # BatchNorm1d at init / eval (running_mean=0, running_var=1)
        h = (p[f"env_bn_g{l}"][None, :, None] * h / np.sqrt(1.0 + BN_EPS)
             + p[f"env_bn_b{l}"][None, :, None])
        h = jnp.where(h >= 0, h, LEAKY * h)
    h = conv1d(h, p["env_fw"], p["env_fb"])                 # (B, 1, N_FRAMES)
    return h.reshape(BATCH, N_FRAMES)


# ----------------------------------------------------------------------------
# Pallas hot-path kernel: a single invocation handles (B, 32 rows, 128 lanes)
#   env = linear interpolation of |frames| (in-kernel hat weights, shared
#         across the batch, no interpolation matrix / no MXU)
#   fir = causal 16-tap FIR (== truncated fft_convolve with the padded taps),
#         taps built with pltpu.roll along lanes + a lane-mask row-carry select
#   out = fir * env
# ----------------------------------------------------------------------------
def impulse_kernel(filt_ref, frames_ref, noise_ref, out_ref):
    # filt_ref   : SMEM (BATCH*FILTER_KERNEL_SIZE,)  combined FIR taps
    # frames_ref : SMEM (BATCH*N_FRAMES,)            (already abs()'d)
    # noise_ref  : VMEM (BATCH, ROWS+1, LANES)       row 0 = zeros, rows 1..32
    # out_ref    : VMEM (BATCH, ROWS, LANES)
    r = jax.lax.broadcasted_iota(jnp.int32, (ROWS, LANES), 0)
    c = jax.lax.broadcasted_iota(jnp.int32, (ROWS, LANES), 1)
    n = (r * LANES + c).astype(jnp.float32)
    # F.interpolate(mode='linear', align_corners=False) source position
    pos = jnp.clip((n + 0.5) * (1.0 / UPSAMPLE) - 0.5, 0.0, float(N_FRAMES - 1))

    # ---- envelope: hat weights computed ONCE, shared by both batch rows ----
    env_acc = [[None, None] for _ in range(BATCH)]      # 2 accumulator chains
    for f in range(N_FRAMES):
        w = jnp.maximum(0.0, 1.0 - jnp.abs(pos - float(f)))
        for b in range(BATCH):
            term = frames_ref[b * N_FRAMES + f] * w
            ch = f % 2
            env_acc[b][ch] = term if env_acc[b][ch] is None else env_acc[b][ch] + term
    envs = [env_acc[b][0] + env_acc[b][1] for b in range(BATCH)]

    # ---- causal FIR: lane rolls (XLU) + row-carry select, 2 acc chains ----
    for b in range(BATCH):                               # static unroll (B=2)
        prev = noise_ref[b, pl.ds(0, ROWS), :]           # noise rows shifted by 1
        cur = noise_ref[b, pl.ds(1, ROWS), :]            # current noise rows
        acc = [None, None]
        for k in range(FILTER_KERNEL_SIZE):
            if k == 0:
                tap = cur
            else:
                tap = jnp.where(c >= k,
                                pltpu.roll(cur, shift=k, axis=1),
                                pltpu.roll(prev, shift=k, axis=1))
            term = filt_ref[b * FILTER_KERNEL_SIZE + k] * tap
            ch = k % 2
            acc[ch] = term if acc[ch] is None else acc[ch] + term
        out_ref[b] = (acc[0] + acc[1]) * envs[b]


def impulse_pallas(filt_flat, frames_flat, noise_padded):
    # Single invocation (no grid): the whole ~100 KiB working set sits in VMEM
    # and per-grid-step / launch overhead dominates at this size.  A cross-core
    # split on v7x (CORE_PARALLEL / core_map) is not worth it for ~0.3 us of
    # VPU work, so one step is used on all generations.
    return pl.pallas_call(
        impulse_kernel,
        out_shape=jax.ShapeDtypeStruct((BATCH, ROWS, LANES), jnp.float32),
        in_specs=[
            pl.BlockSpec(memory_space=pltpu.MemorySpace.SMEM),   # filt (B*16,)
            pl.BlockSpec(memory_space=pltpu.MemorySpace.SMEM),   # |frames| (B*16,)
            pl.BlockSpec(memory_space=pltpu.MemorySpace.VMEM),   # noise (B,33,128)
        ],
        out_specs=pl.BlockSpec(memory_space=pltpu.MemorySpace.VMEM),
    )(filt_flat, frames_flat, noise_padded)


# ----------------------------------------------------------------------------
# full forward
# ----------------------------------------------------------------------------
def forward(params, fbank, x, noise):
    frames = to_envelope(x, params)                        # (B, N_FRAMES)
    filt = to_filter_taps(x, params, fbank)                # (B, 16)

    noise3d = noise.reshape(BATCH, ROWS, LANES)            # free row-major view
    # one zero row in front: row-carry source for the causal FIR (single pad,
    # no zeros+concatenate wide window, half the noise DMA of the old layout)
    noise_padded = jnp.pad(noise3d, ((0, 0), (1, 0), (0, 0)))   # (B, 33, 128)

    filt_flat = filt.reshape(-1)                           # 1-D SMEM (128 B)
    frames_flat = jnp.abs(frames).reshape(-1)              # 1-D SMEM (128 B)

    out3d = impulse_pallas(filt_flat, frames_flat, noise_padded)  # (B, 32, 128)
    impulse = out3d.reshape(BATCH, ENCODING_CHANNELS, N_SAMPLES)
    return impulse, frames, filt


# ----------------------------------------------------------------------------
# pure-JAX reference for the Pallas piece (same math) -- correctness check
# ----------------------------------------------------------------------------
def impulse_ref(filt, frames, noise2d, w_interp):
    env = jnp.abs(frames) @ w_interp
    pad = FILTER_KERNEL_SIZE
    noise_pad = jnp.pad(noise2d, ((0, 0), (pad, 0)))
    fir = jnp.zeros((BATCH, N_SAMPLES), jnp.float32)
    for k in range(FILTER_KERNEL_SIZE):
        fir = fir + filt[:, k:k + 1] * noise_pad[:, pad - k: pad - k + N_SAMPLES]
    return fir * env


# ----------------------------------------------------------------------------
if __name__ == "__main__":
    key = jax.random.PRNGKey(0)
    kp, kx, kn = jax.random.split(key, 3)

    params = make_params(kp)
    fbank = morlet_filter_bank_np()                          # (n_bands, 16)

    x = (0.1 * jax.random.normal(kx, (BATCH, LATENT_DIM))).astype(jnp.float32)
    # torch: zeros(...).uniform_(-1, 1)  ->  deterministic JAX uniform noise
    noise = jax.random.uniform(kn, (BATCH, ENCODING_CHANNELS, N_SAMPLES),
                               minval=-1.0, maxval=1.0, dtype=jnp.float32)

    impulse, frames, filt = jax.jit(forward)(params, fbank, x, noise)
    impulse = jax.block_until_ready(impulse)

    # reference check (env via explicit interpolation matrix, sequential FIR)
    w_interp = linear_interp_matrix(N_FRAMES, N_SAMPLES)     # (n_frames, N)
    ref = impulse_ref(filt, frames, noise.reshape(BATCH, N_SAMPLES), w_interp)
    ref = ref.reshape(BATCH, ENCODING_CHANNELS, N_SAMPLES)

    assert impulse.shape == (BATCH, ENCODING_CHANNELS, N_SAMPLES)
    assert bool(jnp.all(jnp.isfinite(impulse)))
    assert bool(jnp.allclose(impulse, ref, atol=1e-4, rtol=1e-4))

    print("KERNEL_OK")
</pallas_src>

<mosaic_0001>
module attributes {stable_mosaic.version = 11 : i64} {
  func.func @impulse_kernel(%arg0: memref<32xf32, #tpu.memory_space<smem>>, %arg1: memref<32xf32, #tpu.memory_space<smem>>, %arg2: memref<2x33x128xf32, #tpu.memory_space<vmem>>, %arg3: memref<2x32x128xf32, #tpu.memory_space<vmem>>) attributes {dimension_semantics = [], scalar_prefetch = 0 : i64, scratch_operands = 0 : i64, tpu.core_type = #tpu.core_type<tc>} {
    %0 = tpu.iota {dimensions = array<i32: 0>} : vector<32x128xi32>
    %1 = tpu.iota {dimensions = array<i32: 1>} : vector<32x128xi32>
    %c128_i32 = arith.constant 128 : i32
    %2 = vector.broadcast %c128_i32 : i32 to vector<32x128xi32>
    %3 = arith.muli %0, %2 : vector<32x128xi32>
    %4 = arith.addi %3, %1 : vector<32x128xi32>
    %5 = arith.sitofp %4 : vector<32x128xi32> to vector<32x128xf32>
    %cst = arith.constant 5.000000e-01 : f32
    %6 = vector.broadcast %cst : f32 to vector<32x128xf32>
    %7 = arith.addf %5, %6 : vector<32x128xf32>
    %cst_0 = arith.constant 3.906250e-03 : f32
    %8 = vector.broadcast %cst_0 : f32 to vector<32x128xf32>
    %9 = arith.mulf %7, %8 : vector<32x128xf32>
    %cst_1 = arith.constant 5.000000e-01 : f32
    %10 = vector.broadcast %cst_1 : f32 to vector<32x128xf32>
    %11 = arith.subf %9, %10 : vector<32x128xf32>
    %cst_2 = arith.constant 0.000000e+00 : f32
    %cst_3 = arith.constant 1.500000e+01 : f32
    %12 = vector.broadcast %cst_2 : f32 to vector<32x128xf32>
    %13 = arith.maximumf %12, %11 : vector<32x128xf32>
    %14 = vector.broadcast %cst_3 : f32 to vector<32x128xf32>
    %15 = arith.minimumf %14, %13 : vector<32x128xf32>
    %cst_4 = arith.constant 0.000000e+00 : f32
    %16 = vector.broadcast %cst_4 : f32 to vector<32x128xf32>
    %17 = arith.subf %15, %16 : vector<32x128xf32>
    %18 = math.absf %17 : vector<32x128xf32>
    %cst_5 = arith.constant 1.000000e+00 : f32
    %19 = vector.broadcast %cst_5 : f32 to vector<32x128xf32>
    %20 = arith.subf %19, %18 : vector<32x128xf32>
    %cst_6 = arith.constant 0.000000e+00 : f32
    %21 = vector.broadcast %cst_6 : f32 to vector<32x128xf32>
    %22 = arith.maximumf %21, %20 : vector<32x128xf32>
    %c0 = arith.constant 0 : index
    %23 = memref.load %arg1[%c0] : memref<32xf32, #tpu.memory_space<smem>>
    %24 = vector.broadcast %23 : f32 to vector<32x128xf32>
    %25 = arith.mulf %24, %22 : vector<32x128xf32>
    %c16 = arith.constant 16 : index
    %26 = memref.load %arg1[%c16] : memref<32xf32, #tpu.memory_space<smem>>
    %27 = vector.broadcast %26 : f32 to vector<32x128xf32>
    %28 = arith.mulf %27, %22 : vector<32x128xf32>
    %cst_7 = arith.constant 1.000000e+00 : f32
    %29 = vector.broadcast %cst_7 : f32 to vector<32x128xf32>
    %30 = arith.subf %15, %29 : vector<32x128xf32>
    %31 = math.absf %30 : vector<32x128xf32>
    %cst_8 = arith.constant 1.000000e+00 : f32
    %32 = vector.broadcast %cst_8 : f32 to vector<32x128xf32>
    %33 = arith.subf %32, %31 : vector<32x128xf32>
    %cst_9 = arith.constant 0.000000e+00 : f32
    %34 = vector.broadcast %cst_9 : f32 to vector<32x128xf32>
    %35 = arith.maximumf %34, %33 : vector<32x128xf32>
    %c1 = arith.constant 1 : index
    %36 = memref.load %arg1[%c1] : memref<32xf32, #tpu.memory_space<smem>>
    %37 = vector.broadcast %36 : f32 to vector<32x128xf32>
    %38 = arith.mulf %37, %35 : vector<32x128xf32>
    %c17 = arith.constant 17 : index
    %39 = memref.load %arg1[%c17] : memref<32xf32, #tpu.memory_space<smem>>
    %40 = vector.broadcast %39 : f32 to vector<32x128xf32>
    %41 = arith.mulf %40, %35 : vector<32x128xf32>
    %cst_10 = arith.constant 2.000000e+00 : f32
    %42 = vector.broadcast %cst_10 : f32 to vector<32x128xf32>
    %43 = arith.subf %15, %42 : vector<32x128xf32>
    %44 = math.absf %43 : vector<32x128xf32>
    %cst_11 = arith.constant 1.000000e+00 : f32
    %45 = vector.broadcast %cst_11 : f32 to vector<32x128xf32>
    %46 = arith.subf %45, %44 : vector<32x128xf32>
    %cst_12 = arith.constant 0.000000e+00 : f32
    %47 = vector.broadcast %cst_12 : f32 to vector<32x128xf32>
    %48 = arith.maximumf %47, %46 : vector<32x128xf32>
    %c2 = arith.constant 2 : index
    %49 = memref.load %arg1[%c2] : memref<32xf32, #tpu.memory_space<smem>>
    %50 = vector.broadcast %49 : f32 to vector<32x128xf32>
    %51 = arith.mulf %50, %48 : vector<32x128xf32>
    %52 = arith.addf %25, %51 : vector<32x128xf32>
    %c18 = arith.constant 18 : index
    %53 = memref.load %arg1[%c18] : memref<32xf32, #tpu.memory_space<smem>>
    %54 = vector.broadcast %53 : f32 to vector<32x128xf32>
    %55 = arith.mulf %54, %48 : vector<32x128xf32>
    %56 = arith.addf %28, %55 : vector<32x128xf32>
    %cst_13 = arith.constant 3.000000e+00 : f32
    %57 = vector.broadcast %cst_13 : f32 to vector<32x128xf32>
    %58 = arith.subf %15, %57 : vector<32x128xf32>
    %59 = math.absf %58 : vector<32x128xf32>
    %cst_14 = arith.constant 1.000000e+00 : f32
    %60 = vector.broadcast %cst_14 : f32 to vector<32x128xf32>
    %61 = arith.subf %60, %59 : vector<32x128xf32>
    %cst_15 = arith.constant 0.000000e+00 : f32
    %62 = vector.broadcast %cst_15 : f32 to vector<32x128xf32>
    %63 = arith.maximumf %62, %61 : vector<32x128xf32>
    %c3 = arith.constant 3 : index
    %64 = memref.load %arg1[%c3] : memref<32xf32, #tpu.memory_space<smem>>
    %65 = vector.broadcast %64 : f32 to vector<32x128xf32>
    %66 = arith.mulf %65, %63 : vector<32x128xf32>
    %67 = arith.addf %38, %66 : vector<32x128xf32>
    %c19 = arith.constant 19 : index
    %68 = memref.load %arg1[%c19] : memref<32xf32, #tpu.memory_space<smem>>
    %69 = vector.broadcast %68 : f32 to vector<32x128xf32>
    %70 = arith.mulf %69, %63 : vector<32x128xf32>
    %71 = arith.addf %41, %70 : vector<32x128xf32>
    %cst_16 = arith.constant 4.000000e+00 : f32
    %72 = vector.broadcast %cst_16 : f32 to vector<32x128xf32>
    %73 = arith.subf %15, %72 : vector<32x128xf32>
    %74 = math.absf %73 : vector<32x128xf32>
    %cst_17 = arith.constant 1.000000e+00 : f32
    %75 = vector.broadcast %cst_17 : f32 to vector<32x128xf32>
    %76 = arith.subf %75, %74 : vector<32x128xf32>
    %cst_18 = arith.constant 0.000000e+00 : f32
    %77 = vector.broadcast %cst_18 : f32 to vector<32x128xf32>
    %78 = arith.maximumf %77, %76 : vector<32x128xf32>
    %c4 = arith.constant 4 : index
    %79 = memref.load %arg1[%c4] : memref<32xf32, #tpu.memory_space<smem>>
    %80 = vector.broadcast %79 : f32 to vector<32x128xf32>
    %81 = arith.mulf %80, %78 : vector<32x128xf32>
    %82 = arith.addf %52, %81 : vector<32x128xf32>
    %c20 = arith.constant 20 : index
    %83 = memref.load %arg1[%c20] : memref<32xf32, #tpu.memory_space<smem>>
    %84 = vector.broadcast %83 : f32 to vector<32x128xf32>
    %85 = arith.mulf %84, %78 : vector<32x128xf32>
    %86 = arith.addf %56, %85 : vector<32x128xf32>
    %cst_19 = arith.constant 5.000000e+00 : f32
    %87 = vector.broadcast %cst_19 : f32 to vector<32x128xf32>
    %88 = arith.subf %15, %87 : vector<32x128xf32>
    %89 = math.absf %88 : vector<32x128xf32>
    %cst_20 = arith.constant 1.000000e+00 : f32
    %90 = vector.broadcast %cst_20 : f32 to vector<32x128xf32>
    %91 = arith.subf %90, %89 : vector<32x128xf32>
    %cst_21 = arith.constant 0.000000e+00 : f32
    %92 = vector.broadcast %cst_21 : f32 to vector<32x128xf32>
    %93 = arith.maximumf %92, %91 : vector<32x128xf32>
    %c5 = arith.constant 5 : index
    %94 = memref.load %arg1[%c5] : memref<32xf32, #tpu.memory_space<smem>>
    %95 = vector.broadcast %94 : f32 to vector<32x128xf32>
    %96 = arith.mulf %95, %93 : vector<32x128xf32>
    %97 = arith.addf %67, %96 : vector<32x128xf32>
    %c21 = arith.constant 21 : index
    %98 = memref.load %arg1[%c21] : memref<32xf32, #tpu.memory_space<smem>>
    %99 = vector.broadcast %98 : f32 to vector<32x128xf32>
    %100 = arith.mulf %99, %93 : vector<32x128xf32>
    %101 = arith.addf %71, %100 : vector<32x128xf32>
    %cst_22 = arith.constant 6.000000e+00 : f32
    %102 = vector.broadcast %cst_22 : f32 to vector<32x128xf32>
    %103 = arith.subf %15, %102 : vector<32x128xf32>
    %104 = math.absf %103 : vector<32x128xf32>
    %cst_23 = arith.constant 1.000000e+00 : f32
    %105 = vector.broadcast %cst_23 : f32 to vector<32x128xf32>
    %106 = arith.subf %105, %104 : vector<32x128xf32>
    %cst_24 = arith.constant 0.000000e+00 : f32
    %107 = vector.broadcast %cst_24 : f32 to vector<32x128xf32>
    %108 = arith.maximumf %107, %106 : vector<32x128xf32>
    %c6 = arith.constant 6 : index
    %109 = memref.load %arg1[%c6] : memref<32xf32, #tpu.memory_space<smem>>
    %110 = vector.broadcast %109 : f32 to vector<32x128xf32>
    %111 = arith.mulf %110, %108 : vector<32x128xf32>
    %112 = arith.addf %82, %111 : vector<32x128xf32>
    %c22 = arith.constant 22 : index
    %113 = memref.load %arg1[%c22] : memref<32xf32, #tpu.memory_space<smem>>
    %114 = vector.broadcast %113 : f32 to vector<32x128xf32>
    %115 = arith.mulf %114, %108 : vector<32x128xf32>
    %116 = arith.addf %86, %115 : vector<32x128xf32>
    %cst_25 = arith.constant 7.000000e+00 : f32
    %117 = vector.broadcast %cst_25 : f32 to vector<32x128xf32>
    %118 = arith.subf %15, %117 : vector<32x128xf32>
    %119 = math.absf %118 : vector<32x128xf32>
    %cst_26 = arith.constant 1.000000e+00 : f32
    %120 = vector.broadcast %cst_26 : f32 to vector<32x128xf32>
    %121 = arith.subf %120, %119 : vector<32x128xf32>
    %cst_27 = arith.constant 0.000000e+00 : f32
    %122 = vector.broadcast %cst_27 : f32 to vector<32x128xf32>
    %123 = arith.maximumf %122, %121 : vector<32x128xf32>
    %c7 = arith.constant 7 : index
    %124 = memref.load %arg1[%c7] : memref<32xf32, #tpu.memory_space<smem>>
    %125 = vector.broadcast %124 : f32 to vector<32x128xf32>
    %126 = arith.mulf %125, %123 : vector<32x128xf32>
    %127 = arith.addf %97, %126 : vector<32x128xf32>
    %c23 = arith.constant 23 : index
    %128 = memref.load %arg1[%c23] : memref<32xf32, #tpu.memory_space<smem>>
    %129 = vector.broadcast %128 : f32 to vector<32x128xf32>
    %130 = arith.mulf %129, %123 : vector<32x128xf32>
    %131 = arith.addf %101, %130 : vector<32x128xf32>
    %cst_28 = arith.constant 8.000000e+00 : f32
    %132 = vector.broadcast %cst_28 : f32 to vector<32x128xf32>
    %133 = arith.subf %15, %132 : vector<32x128xf32>
    %134 = math.absf %133 : vector<32x128xf32>
    %cst_29 = arith.constant 1.000000e+00 : f32
    %135 = vector.broadcast %cst_29 : f32 to vector<32x128xf32>
    %136 = arith.subf %135, %134 : vector<32x128xf32>
    %cst_30 = arith.constant 0.000000e+00 : f32
    %137 = vector.broadcast %cst_30 : f32 to vector<32x128xf32>
    %138 = arith.maximumf %137, %136 : vector<32x128xf32>
    %c8 = arith.constant 8 : index
    %139 = memref.load %arg1[%c8] : memref<32xf32, #tpu.memory_space<smem>>
    %140 = vector.broadcast %139 : f32 to vector<32x128xf32>
    %141 = arith.mulf %140, %138 : vector<32x128xf32>
    %142 = arith.addf %112, %141 : vector<32x128xf32>
    %c24 = arith.constant 24 : index
    %143 = memref.load %arg1[%c24] : memref<32xf32, #tpu.memory_space<smem>>
    %144 = vector.broadcast %143 : f32 to vector<32x128xf32>
    %145 = arith.mulf %144, %138 : vector<32x128xf32>
    %146 = arith.addf %116, %145 : vector<32x128xf32>
    %cst_31 = arith.constant 9.000000e+00 : f32
    %147 = vector.broadcast %cst_31 : f32 to vector<32x128xf32>
    %148 = arith.subf %15, %147 : vector<32x128xf32>
    %149 = math.absf %148 : vector<32x128xf32>
    %cst_32 = arith.constant 1.000000e+00 : f32
    %150 = vector.broadcast %cst_32 : f32 to vector<32x128xf32>
    %151 = arith.subf %150, %149 : vector<32x128xf32>
    %cst_33 = arith.constant 0.000000e+00 : f32
    %152 = vector.broadcast %cst_33 : f32 to vector<32x128xf32>
    %153 = arith.maximumf %152, %151 : vector<32x128xf32>
    %c9 = arith.constant 9 : index
    %154 = memref.load %arg1[%c9] : memref<32xf32, #tpu.memory_space<smem>>
    %155 = vector.broadcast %154 : f32 to vector<32x128xf32>
    %156 = arith.mulf %155, %153 : vector<32x128xf32>
    %157 = arith.addf %127, %156 : vector<32x128xf32>
    %c25 = arith.constant 25 : index
    %158 = memref.load %arg1[%c25] : memref<32xf32, #tpu.memory_space<smem>>
    %159 = vector.broadcast %158 : f32 to vector<32x128xf32>
    %160 = arith.mulf %159, %153 : vector<32x128xf32>
    %161 = arith.addf %131, %160 : vector<32x128xf32>
    %cst_34 = arith.constant 1.000000e+01 : f32
    %162 = vector.broadcast %cst_34 : f32 to vector<32x128xf32>
    %163 = arith.subf %15, %162 : vector<32x128xf32>
    %164 = math.absf %163 : vector<32x128xf32>
    %cst_35 = arith.constant 1.000000e+00 : f32
    %165 = vector.broadcast %cst_35 : f32 to vector<32x128xf32>
    %166 = arith.subf %165, %164 : vector<32x128xf32>
    %cst_36 = arith.constant 0.000000e+00 : f32
    %167 = vector.broadcast %cst_36 : f32 to vector<32x128xf32>
    %168 = arith.maximumf %167, %166 : vector<32x128xf32>
    %c10 = arith.constant 10 : index
    %169 = memref.load %arg1[%c10] : memref<32xf32, #tpu.memory_space<smem>>
    %170 = vector.broadcast %169 : f32 to vector<32x128xf32>
    %171 = arith.mulf %170, %168 : vector<32x128xf32>
    %172 = arith.addf %142, %171 : vector<32x128xf32>
    %c26 = arith.constant 26 : index
    %173 = memref.load %arg1[%c26] : memref<32xf32, #tpu.memory_space<smem>>
    %174 = vector.broadcast %173 : f32 to vector<32x128xf32>
    %175 = arith.mulf %174, %168 : vector<32x128xf32>
    %176 = arith.addf %146, %175 : vector<32x128xf32>
    %cst_37 = arith.constant 1.100000e+01 : f32
    %177 = vector.broadcast %cst_37 : f32 to vector<32x128xf32>
    %178 = arith.subf %15, %177 : vector<32x128xf32>
    %179 = math.absf %178 : vector<32x128xf32>
    %cst_38 = arith.constant 1.000000e+00 : f32
    %180 = vector.broadcast %cst_38 : f32 to vector<32x128xf32>
    %181 = arith.subf %180, %179 : vector<32x128xf32>
    %cst_39 = arith.constant 0.000000e+00 : f32
    %182 = vector.broadcast %cst_39 : f32 to vector<32x128xf32>
    %183 = arith.maximumf %182, %181 : vector<32x128xf32>
    %c11 = arith.constant 11 : index
    %184 = memref.load %arg1[%c11] : memref<32xf32, #tpu.memory_space<smem>>
    %185 = vector.broadcast %184 : f32 to vector<32x128xf32>
    %186 = arith.mulf %185, %183 : vector<32x128xf32>
    %187 = arith.addf %157, %186 : vector<32x128xf32>
    %c27 = arith.constant 27 : index
    %188 = memref.load %arg1[%c27] : memref<32xf32, #tpu.memory_space<smem>>
    %189 = vector.broadcast %188 : f32 to vector<32x128xf32>
    %190 = arith.mulf %189, %183 : vector<32x128xf32>
    %191 = arith.addf %161, %190 : vector<32x128xf32>
    %cst_40 = arith.constant 1.200000e+01 : f32
    %192 = vector.broadcast %cst_40 : f32 to vector<32x128xf32>
    %193 = arith.subf %15, %192 : vector<32x128xf32>
    %194 = math.absf %193 : vector<32x128xf32>
    %cst_41 = arith.constant 1.000000e+00 : f32
    %195 = vector.broadcast %cst_41 : f32 to vector<32x128xf32>
    %196 = arith.subf %195, %194 : vector<32x128xf32>
    %cst_42 = arith.constant 0.000000e+00 : f32
    %197 = vector.broadcast %cst_42 : f32 to vector<32x128xf32>
    %198 = arith.maximumf %197, %196 : vector<32x128xf32>
    %c12 = arith.constant 12 : index
    %199 = memref.load %arg1[%c12] : memref<32xf32, #tpu.memory_space<smem>>
    %200 = vector.broadcast %199 : f32 to vector<32x128xf32>
    %201 = arith.mulf %200, %198 : vector<32x128xf32>
    %202 = arith.addf %172, %201 : vector<32x128xf32>
    %c28 = arith.constant 28 : index
    %203 = memref.load %arg1[%c28] : memref<32xf32, #tpu.memory_space<smem>>
    %204 = vector.broadcast %203 : f32 to vector<32x128xf32>
    %205 = arith.mulf %204, %198 : vector<32x128xf32>
    %206 = arith.addf %176, %205 : vector<32x128xf32>
    %cst_43 = arith.constant 1.300000e+01 : f32
    %207 = vector.broadcast %cst_43 : f32 to vector<32x128xf32>
    %208 = arith.subf %15, %207 : vector<32x128xf32>
    %209 = math.absf %208 : vector<32x128xf32>
    %cst_44 = arith.constant 1.000000e+00 : f32
    %210 = vector.broadcast %cst_44 : f32 to vector<32x128xf32>
    %211 = arith.subf %210, %209 : vector<32x128xf32>
    %cst_45 = arith.constant 0.000000e+00 : f32
    %212 = vector.broadcast %cst_45 : f32 to vector<32x128xf32>
    %213 = arith.maximumf %212, %211 : vector<32x128xf32>
    %c13 = arith.constant 13 : index
    %214 = memref.load %arg1[%c13] : memref<32xf32, #tpu.memory_space<smem>>
    %215 = vector.broadcast %214 : f32 to vector<32x128xf32>
    %216 = arith.mulf %215, %213 : vector<32x128xf32>
    %217 = arith.addf %187, %216 : vector<32x128xf32>
    %c29 = arith.constant 29 : index
    %218 = memref.load %arg1[%c29] : memref<32xf32, #tpu.memory_space<smem>>
    %219 = vector.broadcast %218 : f32 to vector<32x128xf32>
    %220 = arith.mulf %219, %213 : vector<32x128xf32>
    %221 = arith.addf %191, %220 : vector<32x128xf32>
    %cst_46 = arith.constant 1.400000e+01 : f32
    %222 = vector.broadcast %cst_46 : f32 to vector<32x128xf32>
    %223 = arith.subf %15, %222 : vector<32x128xf32>
    %224 = math.absf %223 : vector<32x128xf32>
    %cst_47 = arith.constant 1.000000e+00 : f32
    %225 = vector.broadcast %cst_47 : f32 to vector<32x128xf32>
    %226 = arith.subf %225, %224 : vector<32x128xf32>
    %cst_48 = arith.constant 0.000000e+00 : f32
    %227 = vector.broadcast %cst_48 : f32 to vector<32x128xf32>
    %228 = arith.maximumf %227, %226 : vector<32x128xf32>
    %c14 = arith.constant 14 : index
    %229 = memref.load %arg1[%c14] : memref<32xf32, #tpu.memory_space<smem>>
    %230 = vector.broadcast %229 : f32 to vector<32x128xf32>
    %231 = arith.mulf %230, %228 : vector<32x128xf32>
    %232 = arith.addf %202, %231 : vector<32x128xf32>
    %c30 = arith.constant 30 : index
    %233 = memref.load %arg1[%c30] : memref<32xf32, #tpu.memory_space<smem>>
    %234 = vector.broadcast %233 : f32 to vector<32x128xf32>
    %235 = arith.mulf %234, %228 : vector<32x128xf32>
    %236 = arith.addf %206, %235 : vector<32x128xf32>
    %cst_49 = arith.constant 1.500000e+01 : f32
    %237 = vector.broadcast %cst_49 : f32 to vector<32x128xf32>
    %238 = arith.subf %15, %237 : vector<32x128xf32>
    %239 = math.absf %238 : vector<32x128xf32>
    %cst_50 = arith.constant 1.000000e+00 : f32
    %240 = vector.broadcast %cst_50 : f32 to vector<32x128xf32>
    %241 = arith.subf %240, %239 : vector<32x128xf32>
    %cst_51 = arith.constant 0.000000e+00 : f32
    %242 = vector.broadcast %cst_51 : f32 to vector<32x128xf32>
    %243 = arith.maximumf %242, %241 : vector<32x128xf32>
    %c15 = arith.constant 15 : index
    %244 = memref.load %arg1[%c15] : memref<32xf32, #tpu.memory_space<smem>>
    %245 = vector.broadcast %244 : f32 to vector<32x128xf32>
    %246 = arith.mulf %245, %243 : vector<32x128xf32>
    %247 = arith.addf %217, %246 : vector<32x128xf32>
    %c31 = arith.constant 31 : index
    %248 = memref.load %arg1[%c31] : memref<32xf32, #tpu.memory_space<smem>>
    %249 = vector.broadcast %248 : f32 to vector<32x128xf32>
    %250 = arith.mulf %249, %243 : vector<32x128xf32>
    %251 = arith.addf %221, %250 : vector<32x128xf32>
    %252 = arith.addf %232, %247 : vector<32x128xf32>
    %253 = arith.addf %236, %251 : vector<32x128xf32>
    %c0_52 = arith.constant 0 : index
    %c0_53 = arith.constant 0 : index
    %c0_54 = arith.constant 0 : index
    %254 = vector.load %arg2[%c0_52, %c0_53, %c0_54] : memref<2x33x128xf32, #tpu.memory_space<vmem>>, vector<1x32x128xf32>
    %255 = vector.shape_cast %254 : vector<1x32x128xf32> to vector<32x128xf32>
    %c0_55 = arith.constant 0 : index
    %c1_56 = arith.constant 1 : index
    %c0_57 = arith.constant 0 : index
    %256 = vector.load %arg2[%c0_55, %c1_56, %c0_57] : memref<2x33x128xf32, #tpu.memory_space<vmem>>, vector<1x32x128xf32>
    %257 = vector.shape_cast %256 : vector<1x32x128xf32> to vector<32x128xf32>
    %c0_58 = arith.constant 0 : index
    %258 = memref.load %arg0[%c0_58] : memref<32xf32, #tpu.memory_space<smem>>
    %259 = vector.broadcast %258 : f32 to vector<32x128xf32>
    %260 = arith.mulf %259, %257 : vector<32x128xf32>
    %c1_i32 = arith.constant 1 : i32
    %261 = vector.broadcast %c1_i32 : i32 to vector<32x128xi32>
    %262 = arith.cmpi sge, %1, %261 : vector<32x128xi32>
    %c1_i32_59 = arith.constant 1 : i32
    %263 = tpu.dynamic_rotate %257 by %c1_i32_59 dim 1 : vector<32x128xf32>, i32 -> vector<32x128xf32>
    %c1_i32_60 = arith.constant 1 : i32
    %264 = tpu.dynamic_rotate %255 by %c1_i32_60 dim 1 : vector<32x128xf32>, i32 -> vector<32x128xf32>
    %265 = arith.select %262, %263, %264 : vector<32x128xi1>, vector<32x128xf32>
    %c1_61 = arith.constant 1 : index
    %266 = memref.load %arg0[%c1_61] : memref<32xf32, #tpu.memory_space<smem>>
    %267 = vector.broadcast %266 : f32 to vector<32x128xf32>
    %268 = arith.mulf %267, %265 : vector<32x128xf32>
    %c2_i32 = arith.constant 2 : i32
    %269 = vector.broadcast %c2_i32 : i32 to vector<32x128xi32>
    %270 = arith.cmpi sge, %1, %269 : vector<32x128xi32>
    %c2_i32_62 = arith.constant 2 : i32
    %271 = tpu.dynamic_rotate %257 by %c2_i32_62 dim 1 : vector<32x128xf32>, i32 -> vector<32x128xf32>
    %c2_i32_63 = arith.constant 2 : i32
    %272 = tpu.dynamic_rotate %255 by %c2_i32_63 dim 1 : vector<32x128xf32>, i32 -> vector<32x128xf32>
    %273 = arith.select %270, %271, %272 : vector<32x128xi1>, vector<32x128xf32>
    %c2_64 = arith.constant 2 : index
    %274 = memref.load %arg0[%c2_64] : memref<32xf32, #tpu.memory_space<smem>>
    %275 = vector.broadcast %274 : f32 to vector<32x128xf32>
    %276 = arith.mulf %275, %273 : vector<32x128xf32>
    %277 = arith.addf %260, %276 : vector<32x128xf32>
    %c3_i32 = arith.constant 3 : i32
    %278 = vector.broadcast %c3_i32 : i32 to vector<32x128xi32>
    %279 = arith.cmpi sge, %1, %278 : vector<32x128xi32>
    %c3_i32_65 = arith.constant 3 : i32
    %280 = tpu.dynamic_rotate %257 by %c3_i32_65 dim 1 : vector<32x128xf32>, i32 -> vector<32x128xf32>
    %c3_i32_66 = arith.constant 3 : i32
    %281 = tpu.dynamic_rotate %255 by %c3_i32_66 dim 1 : vector<32x128xf32>, i32 -> vector<32x128xf32>
    %282 = arith.select %279, %280, %281 : vector<32x128xi1>, vector<32x128xf32>
    %c3_67 = arith.constant 3 : index
    %283 = memref.load %arg0[%c3_67] : memref<32xf32, #tpu.memory_space<smem>>
    %284 = vector.broadcast %283 : f32 to vector<32x128xf32>
    %285 = arith.mulf %284, %282 : vector<32x128xf32>
    %286 = arith.addf %268, %285 : vector<32x128xf32>
    %c4_i32 = arith.constant 4 : i32
    %287 = vector.broadcast %c4_i32 : i32 to vector<32x128xi32>
    %288 = arith.cmpi sge, %1, %287 : vector<32x128xi32>
    %c4_i32_68 = arith.constant 4 : i32
    %289 = tpu.dynamic_rotate %257 by %c4_i32_68 dim 1 : vector<32x128xf32>, i32 -> vector<32x128xf32>
    %c4_i32_69 = arith.constant 4 : i32
    %290 = tpu.dynamic_rotate %255 by %c4_i32_69 dim 1 : vector<32x128xf32>, i32 -> vector<32x128xf32>
    %291 = arith.select %288, %289, %290 : vector<32x128xi1>, vector<32x128xf32>
    %c4_70 = arith.constant 4 : index
    %292 = memref.load %arg0[%c4_70] : memref<32xf32, #tpu.memory_space<smem>>
    %293 = vector.broadcast %292 : f32 to vector<32x128xf32>
    %294 = arith.mulf %293, %291 : vector<32x128xf32>
    %295 = arith.addf %277, %294 : vector<32x128xf32>
    %c5_i32 = arith.constant 5 : i32
    %296 = vector.broadcast %c5_i32 : i32 to vector<32x128xi32>
    %297 = arith.cmpi sge, %1, %296 : vector<32x128xi32>
    %c5_i32_71 = arith.constant 5 : i32
    %298 = tpu.dynamic_rotate %257 by %c5_i32_71 dim 1 : vector<32x128xf32>, i32 -> vector<32x128xf32>
    %c5_i32_72 = arith.constant 5 : i32
    %299 = tpu.dynamic_rotate %255 by %c5_i32_72 dim 1 : vector<32x128xf32>, i32 -> vector<32x128xf32>
    %300 = arith.select %297, %298, %299 : vector<32x128xi1>, vector<32x128xf32>
    %c5_73 = arith.constant 5 : index
    %301 = memref.load %arg0[%c5_73] : memref<32xf32, #tpu.memory_space<smem>>
    %302 = vector.broadcast %301 : f32 to vector<32x128xf32>
    %303 = arith.mulf %302, %300 : vector<32x128xf32>
    %304 = arith.addf %286, %303 : vector<32x128xf32>
    %c6_i32 = arith.constant 6 : i32
    %305 = vector.broadcast %c6_i32 : i32 to vector<32x128xi32>
    %306 = arith.cmpi sge, %1, %305 : vector<32x128xi32>
    %c6_i32_74 = arith.constant 6 : i32
    %307 = tpu.dynamic_rotate %257 by %c6_i32_74 dim 1 : vector<32x128xf32>, i32 -> vector<32x128xf32>
    %c6_i32_75 = arith.constant 6 : i32
    %308 = tpu.dynamic_rotate %255 by %c6_i32_75 dim 1 : vector<32x128xf32>, i32 -> vector<32x128xf32>
    %309 = arith.select %306, %307, %308 : vector<32x128xi1>, vector<32x128xf32>
    %c6_76 = arith.constant 6 : index
    %310 = memref.load %arg0[%c6_76] : memref<32xf32, #tpu.memory_space<smem>>
    %311 = vector.broadcast %310 : f32 to vector<32x128xf32>
    %312 = arith.mulf %311, %309 : vector<32x128xf32>
    %313 = arith.addf %295, %312 : vector<32x128xf32>
    %c7_i32 = arith.constant 7 : i32
    %314 = vector.broadcast %c7_i32 : i32 to vector<32x128xi32>
    %315 = arith.cmpi sge, %1, %314 : vector<32x128xi32>
    %c7_i32_77 = arith.constant 7 : i32
    %316 = tpu.dynamic_rotate %257 by %c7_i32_77 dim 1 : vector<32x128xf32>, i32 -> vector<32x128xf32>
    %c7_i32_78 = arith.constant 7 : i32
    %317 = tpu.dynamic_rotate %255 by %c7_i32_78 dim 1 : vector<32x128xf32>, i32 -> vector<32x128xf32>
    %318 = arith.select %315, %316, %317 : vector<32x128xi1>, vector<32x128xf32>
    %c7_79 = arith.constant 7 : index
    %319 = memref.load %arg0[%c7_79] : memref<32xf32, #tpu.memory_space<smem>>
    %320 = vector.broadcast %319 : f32 to vector<32x128xf32>
    %321 = arith.mulf %320, %318 : vector<32x128xf32>
    %322 = arith.addf %304, %321 : vector<32x128xf32>
    %c8_i32 = arith.constant 8 : i32
    %323 = vector.broadcast %c8_i32 : i32 to vector<32x128xi32>
    %324 = arith.cmpi sge, %1, %323 : vector<32x128xi32>
    %c8_i32_80 = arith.constant 8 : i32
    %325 = tpu.dynamic_rotate %257 by %c8_i32_80 dim 1 : vector<32x128xf32>, i32 -> vector<32x128xf32>
    %c8_i32_81 = arith.constant 8 : i32
    %326 = tpu.dynamic_rotate %255 by %c8_i32_81 dim 1 : vector<32x128xf32>, i32 -> vector<32x128xf32>
    %327 = arith.select %324, %325, %326 : vector<32x128xi1>, vector<32x128xf32>
    %c8_82 = arith.constant 8 : index
    %328 = memref.load %arg0[%c8_82] : memref<32xf32, #tpu.memory_space<smem>>
    %329 = vector.broadcast %328 : f32 to vector<32x128xf32>
    %330 = arith.mulf %329, %327 : vector<32x128xf32>
    %331 = arith.addf %313, %330 : vector<32x128xf32>
    %c9_i32 = arith.constant 9 : i32
    %332 = vector.broadcast %c9_i32 : i32 to vector<32x128xi32>
    %333 = arith.cmpi sge, %1, %332 : vector<32x128xi32>
    %c9_i32_83 = arith.constant 9 : i32
    %334 = tpu.dynamic_rotate %257 by %c9_i32_83 dim 1 : vector<32x128xf32>, i32 -> vector<32x128xf32>
    %c9_i32_84 = arith.constant 9 : i32
    %335 = tpu.dynamic_rotate %255 by %c9_i32_84 dim 1 : vector<32x128xf32>, i32 -> vector<32x128xf32>
    %336 = arith.select %333, %334, %335 : vector<32x128xi1>, vector<32x128xf32>
    %c9_85 = arith.constant 9 : index
    %337 = memref.load %arg0[%c9_85] : memref<32xf32, #tpu.memory_space<smem>>
    %338 = vector.broadcast %337 : f32 to vector<32x128xf32>
    %339 = arith.mulf %338, %336 : vector<32x128xf32>
    %340 = arith.addf %322, %339 : vector<32x128xf32>
    %c10_i32 = arith.constant 10 : i32
    %341 = vector.broadcast %c10_i32 : i32 to vector<32x128xi32>
    %342 = arith.cmpi sge, %1, %341 : vector<32x128xi32>
    %c10_i32_86 = arith.constant 10 : i32
    %343 = tpu.dynamic_rotate %257 by %c10_i32_86 dim 1 : vector<32x128xf32>, i32 -> vector<32x128xf32>
    %c10_i32_87 = arith.constant 10 : i32
    %344 = tpu.dynamic_rotate %255 by %c10_i32_87 dim 1 : vector<32x128xf32>, i32 -> vector<32x128xf32>
    %345 = arith.select %342, %343, %344 : vector<32x128xi1>, vector<32x128xf32>
    %c10_88 = arith.constant 10 : index
    %346 = memref.load %arg0[%c10_88] : memref<32xf32, #tpu.memory_space<smem>>
    %347 = vector.broadcast %346 : f32 to vector<32x128xf32>
    %348 = arith.mulf %347, %345 : vector<32x128xf32>
    %349 = arith.addf %331, %348 : vector<32x128xf32>
    %c11_i32 = arith.constant 11 : i32
    %350 = vector.broadcast %c11_i32 : i32 to vector<32x128xi32>
    %351 = arith.cmpi sge, %1, %350 : vector<32x128xi32>
    %c11_i32_89 = arith.constant 11 : i32
    %352 = tpu.dynamic_rotate %257 by %c11_i32_89 dim 1 : vector<32x128xf32>, i32 -> vector<32x128xf32>
    %c11_i32_90 = arith.constant 11 : i32
    %353 = tpu.dynamic_rotate %255 by %c11_i32_90 dim 1 : vector<32x128xf32>, i32 -> vector<32x128xf32>
    %354 = arith.select %351, %352, %353 : vector<32x128xi1>, vector<32x128xf32>
    %c11_91 = arith.constant 11 : index
    %355 = memref.load %arg0[%c11_91] : memref<32xf32, #tpu.memory_space<smem>>
    %356 = vector.broadcast %355 : f32 to vector<32x128xf32>
    %357 = arith.mulf %356, %354 : vector<32x128xf32>
    %358 = arith.addf %340, %357 : vector<32x128xf32>
    %c12_i32 = arith.constant 12 : i32
    %359 = vector.broadcast %c12_i32 : i32 to vector<32x128xi32>
    %360 = arith.cmpi sge, %1, %359 : vector<32x128xi32>
    %c12_i32_92 = arith.constant 12 : i32
    %361 = tpu.dynamic_rotate %257 by %c12_i32_92 dim 1 : vector<32x128xf32>, i32 -> vector<32x128xf32>
    %c12_i32_93 = arith.constant 12 : i32
    %362 = tpu.dynamic_rotate %255 by %c12_i32_93 dim 1 : vector<32x128xf32>, i32 -> vector<32x128xf32>
    %363 = arith.select %360, %361, %362 : vector<32x128xi1>, vector<32x128xf32>
    %c12_94 = arith.constant 12 : index
    %364 = memref.load %arg0[%c12_94] : memref<32xf32, #tpu.memory_space<smem>>
    %365 = vector.broadcast %364 : f32 to vector<32x128xf32>
    %366 = arith.mulf %365, %363 : vector<32x128xf32>
    %367 = arith.addf %349, %366 : vector<32x128xf32>
    %c13_i32 = arith.constant 13 : i32
    %368 = vector.broadcast %c13_i32 : i32 to vector<32x128xi32>
    %369 = arith.cmpi sge, %1, %368 : vector<32x128xi32>
    %c13_i32_95 = arith.constant 13 : i32
    %370 = tpu.dynamic_rotate %257 by %c13_i32_95 dim 1 : vector<32x128xf32>, i32 -> vector<32x128xf32>
    %c13_i32_96 = arith.constant 13 : i32
    %371 = tpu.dynamic_rotate %255 by %c13_i32_96 dim 1 : vector<32x128xf32>, i32 -> vector<32x128xf32>
    %372 = arith.select %369, %370, %371 : vector<32x128xi1>, vector<32x128xf32>
    %c13_97 = arith.constant 13 : index
    %373 = memref.load %arg0[%c13_97] : memref<32xf32, #tpu.memory_space<smem>>
    %374 = vector.broadcast %373 : f32 to vector<32x128xf32>
    %375 = arith.mulf %374, %372 : vector<32x128xf32>
    %376 = arith.addf %358, %375 : vector<32x128xf32>
    %c14_i32 = arith.constant 14 : i32
    %377 = vector.broadcast %c14_i32 : i32 to vector<32x128xi32>
    %378 = arith.cmpi sge, %1, %377 : vector<32x128xi32>
    %c14_i32_98 = arith.constant 14 : i32
    %379 = tpu.dynamic_rotate %257 by %c14_i32_98 dim 1 : vector<32x128xf32>, i32 -> vector<32x128xf32>
    %c14_i32_99 = arith.constant 14 : i32
    %380 = tpu.dynamic_rotate %255 by %c14_i32_99 dim 1 : vector<32x128xf32>, i32 -> vector<32x128xf32>
    %381 = arith.select %378, %379, %380 : vector<32x128xi1>, vector<32x128xf32>
    %c14_100 = arith.constant 14 : index
    %382 = memref.load %arg0[%c14_100] : memref<32xf32, #tpu.memory_space<smem>>
    %383 = vector.broadcast %382 : f32 to vector<32x128xf32>
    %384 = arith.mulf %383, %381 : vector<32x128xf32>
    %385 = arith.addf %367, %384 : vector<32x128xf32>
    %c15_i32 = arith.constant 15 : i32
    %386 = vector.broadcast %c15_i32 : i32 to vector<32x128xi32>
    %387 = arith.cmpi sge, %1, %386 : vector<32x128xi32>
    %c15_i32_101 = arith.constant 15 : i32
    %388 = tpu.dynamic_rotate %257 by %c15_i32_101 dim 1 : vector<32x128xf32>, i32 -> vector<32x128xf32>
    %c15_i32_102 = arith.constant 15 : i32
    %389 = tpu.dynamic_rotate %255 by %c15_i32_102 dim 1 : vector<32x128xf32>, i32 -> vector<32x128xf32>
    %390 = arith.select %387, %388, %389 : vector<32x128xi1>, vector<32x128xf32>
    %c15_103 = arith.constant 15 : index
    %391 = memref.load %arg0[%c15_103] : memref<32xf32, #tpu.memory_space<smem>>
    %392 = vector.broadcast %391 : f32 to vector<32x128xf32>
    %393 = arith.mulf %392, %390 : vector<32x128xf32>
    %394 = arith.addf %376, %393 : vector<32x128xf32>
    %395 = arith.addf %385, %394 : vector<32x128xf32>
    %396 = arith.mulf %395, %252 : vector<32x128xf32>
    %c0_104 = arith.constant 0 : index
    %c0_105 = arith.constant 0 : index
    %c0_106 = arith.constant 0 : index
    %397 = vector.load %arg3[%c0_104, %c0_105, %c0_106] : memref<2x32x128xf32, #tpu.memory_space<vmem>>, vector<1x32x128xf32>
    %398 = vector.shape_cast %397 : vector<1x32x128xf32> to vector<32x128xf32>
    %399 = vector.shape_cast %396 : vector<32x128xf32> to vector<1x32x128xf32>
    tpu.vector_store %arg3[%c0_104, %c0_105, %c0_106], %399 {strides = array<i32>} : memref<2x32x128xf32, #tpu.memory_space<vmem>>, vector<1x32x128xf32>,
    %c1_107 = arith.constant 1 : index
    %c0_108 = arith.constant 0 : index
    %c0_109 = arith.constant 0 : index
    %400 = vector.load %arg2[%c1_107, %c0_108, %c0_109] : memref<2x33x128xf32, #tpu.memory_space<vmem>>, vector<1x32x128xf32>
    %401 = vector.shape_cast %400 : vector<1x32x128xf32> to vector<32x128xf32>
    %c1_110 = arith.constant 1 : index
    %c1_111 = arith.constant 1 : index
    %c0_112 = arith.constant 0 : index
    %402 = vector.load %arg2[%c1_110, %c1_111, %c0_112] : memref<2x33x128xf32, #tpu.memory_space<vmem>>, vector<1x32x128xf32>
    %403 = vector.shape_cast %402 : vector<1x32x128xf32> to vector<32x128xf32>
    %c16_113 = arith.constant 16 : index
    %404 = memref.load %arg0[%c16_113] : memref<32xf32, #tpu.memory_space<smem>>
    %405 = vector.broadcast %404 : f32 to vector<32x128xf32>
    %406 = arith.mulf %405, %403 : vector<32x128xf32>
    %c1_i32_114 = arith.constant 1 : i32
    %407 = vector.broadcast %c1_i32_114 : i32 to vector<32x128xi32>
    %408 = arith.cmpi sge, %1, %407 : vector<32x128xi32>
    %c1_i32_115 = arith.constant 1 : i32
    %409 = tpu.dynamic_rotate %403 by %c1_i32_115 dim 1 : vector<32x128xf32>, i32 -> vector<32x128xf32>
    %c1_i32_116 = arith.constant 1 : i32
    %410 = tpu.dynamic_rotate %401 by %c1_i32_116 dim 1 : vector<32x128xf32>, i32 -> vector<32x128xf32>
    %411 = arith.select %408, %409, %410 : vector<32x128xi1>, vector<32x128xf32>
    %c17_117 = arith.constant 17 : index
    %412 = memref.load %arg0[%c17_117] : memref<32xf32, #tpu.memory_space<smem>>
    %413 = vector.broadcast %412 : f32 to vector<32x128xf32>
    %414 = arith.mulf %413, %411 : vector<32x128xf32>
    %c2_i32_118 = arith.constant 2 : i32
    %415 = vector.broadcast %c2_i32_118 : i32 to vector<32x128xi32>
    %416 = arith.cmpi sge, %1, %415 : vector<32x128xi32>
    %c2_i32_119 = arith.constant 2 : i32
    %417 = tpu.dynamic_rotate %403 by %c2_i32_119 dim 1 : vector<32x128xf32>, i32 -> vector<32x128xf32>
    %c2_i32_120 = arith.constant 2 : i32
    %418 = tpu.dynamic_rotate %401 by %c2_i32_120 dim 1 : vector<32x128xf32>, i32 -> vector<32x128xf32>
    %419 = arith.select %416, %417, %418 : vector<32x128xi1>, vector<32x128xf32>
    %c18_121 = arith.constant 18 : index
    %420 = memref.load %arg0[%c18_121] : memref<32xf32, #tpu.memory_space<smem>>
    %421 = vector.broadcast %420 : f32 to vector<32x128xf32>
    %422 = arith.mulf %421, %419 : vector<32x128xf32>
    %423 = arith.addf %406, %422 : vector<32x128xf32>
    %c3_i32_122 = arith.constant 3 : i32
    %424 = vector.broadcast %c3_i32_122 : i32 to vector<32x128xi32>
    %425 = arith.cmpi sge, %1, %424 : vector<32x128xi32>
    %c3_i32_123 = arith.constant 3 : i32
    %426 = tpu.dynamic_rotate %403 by %c3_i32_123 dim 1 : vector<32x128xf32>, i32 -> vector<32x128xf32>
    %c3_i32_124 = arith.constant 3 : i32
    %427 = tpu.dynamic_rotate %401 by %c3_i32_124 dim 1 : vector<32x128xf32>, i32 -> vector<32x128xf32>
    %428 = arith.select %425, %426, %427 : vector<32x128xi1>, vector<32x128xf32>
    %c19_125 = arith.constant 19 : index
    %429 = memref.load %arg0[%c19_125] : memref<32xf32, #tpu.memory_space<smem>>
    %430 = vector.broadcast %429 : f32 to vector<32x128xf32>
    %431 = arith.mulf %430, %428 : vector<32x128xf32>
    %432 = arith.addf %414, %431 : vector<32x128xf32>
    %c4_i32_126 = arith.constant 4 : i32
    %433 = vector.broadcast %c4_i32_126 : i32 to vector<32x128xi32>
    %434 = arith.cmpi sge, %1, %433 : vector<32x128xi32>
    %c4_i32_127 = arith.constant 4 : i32
    %435 = tpu.dynamic_rotate %403 by %c4_i32_127 dim 1 : vector<32x128xf32>, i32 -> vector<32x128xf32>
    %c4_i32_128 = arith.constant 4 : i32
    %436 = tpu.dynamic_rotate %401 by %c4_i32_128 dim 1 : vector<32x128xf32>, i32 -> vector<32x128xf32>
    %437 = arith.select %434, %435, %436 : vector<32x128xi1>, vector<32x128xf32>
    %c20_129 = arith.constant 20 : index
    %438 = memref.load %arg0[%c20_129] : memref<32xf32, #tpu.memory_space<smem>>
    %439 = vector.broadcast %438 : f32 to vector<32x128xf32>
    %440 = arith.mulf %439, %437 : vector<32x128xf32>
    %441 = arith.addf %423, %440 : vector<32x128xf32>
    %c5_i32_130 = arith.constant 5 : i32
    %442 = vector.broadcast %c5_i32_130 : i32 to vector<32x128xi32>
    %443 = arith.cmpi sge, %1, %442 : vector<32x128xi32>
    %c5_i32_131 = arith.constant 5 : i32
    %444 = tpu.dynamic_rotate %403 by %c5_i32_131 dim 1 : vector<32x128xf32>, i32 -> vector<32x128xf32>
    %c5_i32_132 = arith.constant 5 : i32
    %445 = tpu.dynamic_rotate %401 by %c5_i32_132 dim 1 : vector<32x128xf32>, i32 -> vector<32x128xf32>
    %446 = arith.select %443, %444, %445 : vector<32x128xi1>, vector<32x128xf32>
    %c21_133 = arith.constant 21 : index
    %447 = memref.load %arg0[%c21_133] : memref<32xf32, #tpu.memory_space<smem>>
    %448 = vector.broadcast %447 : f32 to vector<32x128xf32>
    %449 = arith.mulf %448, %446 : vector<32x128xf32>
    %450 = arith.addf %432, %449 : vector<32x128xf32>
    %c6_i32_134 = arith.constant 6 : i32
    %451 = vector.broadcast %c6_i32_134 : i32 to vector<32x128xi32>
    %452 = arith.cmpi sge, %1, %451 : vector<32x128xi32>
    %c6_i32_135 = arith.constant 6 : i32
    %453 = tpu.dynamic_rotate %403 by %c6_i32_135 dim 1 : vector<32x128xf32>, i32 -> vector<32x128xf32>
    %c6_i32_136 = arith.constant 6 : i32
    %454 = tpu.dynamic_rotate %401 by %c6_i32_136 dim 1 : vector<32x128xf32>, i32 -> vector<32x128xf32>
    %455 = arith.select %452, %453, %454 : vector<32x128xi1>, vector<32x128xf32>
    %c22_137 = arith.constant 22 : index
    %456 = memref.load %arg0[%c22_137] : memref<32xf32, #tpu.memory_space<smem>>
    %457 = vector.broadcast %456 : f32 to vector<32x128xf32>
    %458 = arith.mulf %457, %455 : vector<32x128xf32>
    %459 = arith.addf %441, %458 : vector<32x128xf32>
    %c7_i32_138 = arith.constant 7 : i32
    %460 = vector.broadcast %c7_i32_138 : i32 to vector<32x128xi32>
    %461 = arith.cmpi sge, %1, %460 : vector<32x128xi32>
    %c7_i32_139 = arith.constant 7 : i32
    %462 = tpu.dynamic_rotate %403 by %c7_i32_139 dim 1 : vector<32x128xf32>, i32 -> vector<32x128xf32>
    %c7_i32_140 = arith.constant 7 : i32
    %463 = tpu.dynamic_rotate %401 by %c7_i32_140 dim 1 : vector<32x128xf32>, i32 -> vector<32x128xf32>
    %464 = arith.select %461, %462, %463 : vector<32x128xi1>, vector<32x128xf32>
    %c23_141 = arith.constant 23 : index
    %465 = memref.load %arg0[%c23_141] : memref<32xf32, #tpu.memory_space<smem>>
    %466 = vector.broadcast %465 : f32 to vector<32x128xf32>
    %467 = arith.mulf %466, %464 : vector<32x128xf32>
    %468 = arith.addf %450, %467 : vector<32x128xf32>
    %c8_i32_142 = arith.constant 8 : i32
    %469 = vector.broadcast %c8_i32_142 : i32 to vector<32x128xi32>
    %470 = arith.cmpi sge, %1, %469 : vector<32x128xi32>
    %c8_i32_143 = arith.constant 8 : i32
    %471 = tpu.dynamic_rotate %403 by %c8_i32_143 dim 1 : vector<32x128xf32>, i32 -> vector<32x128xf32>
    %c8_i32_144 = arith.constant 8 : i32
    %472 = tpu.dynamic_rotate %401 by %c8_i32_144 dim 1 : vector<32x128xf32>, i32 -> vector<32x128xf32>
    %473 = arith.select %470, %471, %472 : vector<32x128xi1>, vector<32x128xf32>
    %c24_145 = arith.constant 24 : index
    %474 = memref.load %arg0[%c24_145] : memref<32xf32, #tpu.memory_space<smem>>
    %475 = vector.broadcast %474 : f32 to vector<32x128xf32>
    %476 = arith.mulf %475, %473 : vector<32x128xf32>
    %477 = arith.addf %459, %476 : vector<32x128xf32>
    %c9_i32_146 = arith.constant 9 : i32
    %478 = vector.broadcast %c9_i32_146 : i32 to vector<32x128xi32>
    %479 = arith.cmpi sge, %1, %478 : vector<32x128xi32>
    %c9_i32_147 = arith.constant 9 : i32
    %480 = tpu.dynamic_rotate %403 by %c9_i32_147 dim 1 : vector<32x128xf32>, i32 -> vector<32x128xf32>
    %c9_i32_148 = arith.constant 9 : i32
    %481 = tpu.dynamic_rotate %401 by %c9_i32_148 dim 1 : vector<32x128xf32>, i32 -> vector<32x128xf32>
    %482 = arith.select %479, %480, %481 : vector<32x128xi1>, vector<32x128xf32>
    %c25_149 = arith.constant 25 : index
    %483 = memref.load %arg0[%c25_149] : memref<32xf32, #tpu.memory_space<smem>>
    %484 = vector.broadcast %483 : f32 to vector<32x128xf32>
    %485 = arith.mulf %484, %482 : vector<32x128xf32>
    %486 = arith.addf %468, %485 : vector<32x128xf32>
    %c10_i32_150 = arith.constant 10 : i32
    %487 = vector.broadcast %c10_i32_150 : i32 to vector<32x128xi32>
    %488 = arith.cmpi sge, %1, %487 : vector<32x128xi32>
    %c10_i32_151 = arith.constant 10 : i32
    %489 = tpu.dynamic_rotate %403 by %c10_i32_151 dim 1 : vector<32x128xf32>, i32 -> vector<32x128xf32>
    %c10_i32_152 = arith.constant 10 : i32
    %490 = tpu.dynamic_rotate %401 by %c10_i32_152 dim 1 : vector<32x128xf32>, i32 -> vector<32x128xf32>
    %491 = arith.select %488, %489, %490 : vector<32x128xi1>, vector<32x128xf32>
    %c26_153 = arith.constant 26 : index
    %492 = memref.load %arg0[%c26_153] : memref<32xf32, #tpu.memory_space<smem>>
    %493 = vector.broadcast %492 : f32 to vector<32x128xf32>
    %494 = arith.mulf %493, %491 : vector<32x128xf32>
    %495 = arith.addf %477, %494 : vector<32x128xf32>
    %c11_i32_154 = arith.constant 11 : i32
    %496 = vector.broadcast %c11_i32_154 : i32 to vector<32x128xi32>
    %497 = arith.cmpi sge, %1, %496 : vector<32x128xi32>
    %c11_i32_155 = arith.constant 11 : i32
    %498 = tpu.dynamic_rotate %403 by %c11_i32_155 dim 1 : vector<32x128xf32>, i32 -> vector<32x128xf32>
    %c11_i32_156 = arith.constant 11 : i32
    %499 = tpu.dynamic_rotate %401 by %c11_i32_156 dim 1 : vector<32x128xf32>, i32 -> vector<32x128xf32>
    %500 = arith.select %497, %498, %499 : vector<32x128xi1>, vector<32x128xf32>
    %c27_157 = arith.constant 27 : index
    %501 = memref.load %arg0[%c27_157] : memref<32xf32, #tpu.memory_space<smem>>
    %502 = vector.broadcast %501 : f32 to vector<32x128xf32>
    %503 = arith.mulf %502, %500 : vector<32x128xf32>
    %504 = arith.addf %486, %503 : vector<32x128xf32>
    %c12_i32_158 = arith.constant 12 : i32
    %505 = vector.broadcast %c12_i32_158 : i32 to vector<32x128xi32>
    %506 = arith.cmpi sge, %1, %505 : vector<32x128xi32>
    %c12_i32_159 = arith.constant 12 : i32
    %507 = tpu.dynamic_rotate %403 by %c12_i32_159 dim 1 : vector<32x128xf32>, i32 -> vector<32x128xf32>
    %c12_i32_160 = arith.constant 12 : i32
    %508 = tpu.dynamic_rotate %401 by %c12_i32_160 dim 1 : vector<32x128xf32>, i32 -> vector<32x128xf32>
    %509 = arith.select %506, %507, %508 : vector<32x128xi1>, vector<32x128xf32>
    %c28_161 = arith.constant 28 : index
    %510 = memref.load %arg0[%c28_161] : memref<32xf32, #tpu.memory_space<smem>>
    %511 = vector.broadcast %510 : f32 to vector<32x128xf32>
    %512 = arith.mulf %511, %509 : vector<32x128xf32>
    %513 = arith.addf %495, %512 : vector<32x128xf32>
    %c13_i32_162 = arith.constant 13 : i32
    %514 = vector.broadcast %c13_i32_162 : i32 to vector<32x128xi32>
    %515 = arith.cmpi sge, %1, %514 : vector<32x128xi32>
    %c13_i32_163 = arith.constant 13 : i32
    %516 = tpu.dynamic_rotate %403 by %c13_i32_163 dim 1 : vector<32x128xf32>, i32 -> vector<32x128xf32>
    %c13_i32_164 = arith.constant 13 : i32
    %517 = tpu.dynamic_rotate %401 by %c13_i32_164 dim 1 : vector<32x128xf32>, i32 -> vector<32x128xf32>
    %518 = arith.select %515, %516, %517 : vector<32x128xi1>, vector<32x128xf32>
    %c29_165 = arith.constant 29 : index
    %519 = memref.load %arg0[%c29_165] : memref<32xf32, #tpu.memory_space<smem>>
    %520 = vector.broadcast %519 : f32 to vector<32x128xf32>
    %521 = arith.mulf %520, %518 : vector<32x128xf32>
    %522 = arith.addf %504, %521 : vector<32x128xf32>
    %c14_i32_166 = arith.constant 14 : i32
    %523 = vector.broadcast %c14_i32_166 : i32 to vector<32x128xi32>
    %524 = arith.cmpi sge, %1, %523 : vector<32x128xi32>
    %c14_i32_167 = arith.constant 14 : i32
    %525 = tpu.dynamic_rotate %403 by %c14_i32_167 dim 1 : vector<32x128xf32>, i32 -> vector<32x128xf32>
    %c14_i32_168 = arith.constant 14 : i32
    %526 = tpu.dynamic_rotate %401 by %c14_i32_168 dim 1 : vector<32x128xf32>, i32 -> vector<32x128xf32>
    %527 = arith.select %524, %525, %526 : vector<32x128xi1>, vector<32x128xf32>
    %c30_169 = arith.constant 30 : index
    %528 = memref.load %arg0[%c30_169] : memref<32xf32, #tpu.memory_space<smem>>
    %529 = vector.broadcast %528 : f32 to vector<32x128xf32>
    %530 = arith.mulf %529, %527 : vector<32x128xf32>
    %531 = arith.addf %513, %530 : vector<32x128xf32>
    %c15_i32_170 = arith.constant 15 : i32
    %532 = vector.broadcast %c15_i32_170 : i32 to vector<32x128xi32>
    %533 = arith.cmpi sge, %1, %532 : vector<32x128xi32>
    %c15_i32_171 = arith.constant 15 : i32
    %534 = tpu.dynamic_rotate %403 by %c15_i32_171 dim 1 : vector<32x128xf32>, i32 -> vector<32x128xf32>
    %c15_i32_172 = arith.constant 15 : i32
    %535 = tpu.dynamic_rotate %401 by %c15_i32_172 dim 1 : vector<32x128xf32>, i32 -> vector<32x128xf32>
    %536 = arith.select %533, %534, %535 : vector<32x128xi1>, vector<32x128xf32>
    %c31_173 = arith.constant 31 : index
    %537 = memref.load %arg0[%c31_173] : memref<32xf32, #tpu.memory_space<smem>>
    %538 = vector.broadcast %537 : f32 to vector<32x128xf32>
    %539 = arith.mulf %538, %536 : vector<32x128xf32>
    %540 = arith.addf %522, %539 : vector<32x128xf32>
    %541 = arith.addf %531, %540 : vector<32x128xf32>
    %542 = arith.mulf %541, %253 : vector<32x128xf32>
    %c1_174 = arith.constant 1 : index
    %c0_175 = arith.constant 0 : index
    %c0_176 = arith.constant 0 : index
    %543 = vector.load %arg3[%c1_174, %c0_175, %c0_176] : memref<2x32x128xf32, #tpu.memory_space<vmem>>, vector<1x32x128xf32>
    %544 = vector.shape_cast %543 : vector<1x32x128xf32> to vector<32x128xf32>
    %545 = vector.shape_cast %542 : vector<32x128xf32> to vector<1x32x128xf32>
    tpu.vector_store %arg3[%c1_174, %c0_175, %c0_176], %545 {strides = array<i32>} : memref<2x32x128xf32, #tpu.memory_space<vmem>>, vector<1x32x128xf32>,
    return
  }
}

</mosaic_0001>

<bundles_post_ra>
// kernel: forward.1
= control target key start
LH: loop header
LB: loop body
LE: loop exit
PB: predicated region body
PF: predicated region fallthrough
CT: control target
= control target key end

     0   :  { %8 = vsyncpa [#allocation4], 0  ;;  %s4301_s0 = inlined_call_operand.vmem [shape: f32[32], index: 0, kind: input, shape index: {}]   ;;  %s4302_s1 = inlined_call_operand.vmem [shape: f32[32], index: 1, kind: input, shape index: {}]   ;;  %s4303_s2 = inlined_call_operand.vmem [shape: f32[2,33,128], index: 2, kind: input, shape index: {}]   ;;  %s4304_s3 = inlined_call_operand.hbm [shape: f32[2,32,128], index: 3, kind: output, shape index: {}]  }
   0x1   :  { %9 = vsyncpa [#allocation6], 0 }
   0x2   :  { %10 = vsyncpa [#allocation3], 0  ;;  %s17_s14 = sshll.u32 %s4301_s0, 4  ;;  %s27_s17 = sshll.u32 %s4302_s1, 4  ;;  %s18_s14 = int_to_ptr.vmem [resolvable:$true] %s17_s14  ;;  %s28_s17 = int_to_ptr.vmem [resolvable:$true] %s27_s17 }
   0x3   :  { %s1783_s18 = scalar_lea.vmem %s18_s14, 16  ;;  %p1788_p1 = scmp.lt.s32.totalorder %s18_s14, %s18_s14 }
   0x4   :  { %p1784_p0 = scmp.ne.s32.totalorder %s18_s14, %s1783_s18  ;;  %p1789_p2 = scmp.lt.s32.totalorder %s1783_s18, %s1783_s18 }
   0x6   :  { %p1790_p3 = por %p1789_p2, %p1788_p1 }
   0x8   :  { %p1791_p4 = pnand %p1790_p3, %p1784_p0 }
   0xa   :  { %1794 = shalt.err (!%p1791_p4)
}
   0xb   :  { %s1833_s19 = smov [#allocation2]   ;;  %s1795_s20 = scalar_lea.vmem %s28_s17, 16 }
   0xc   :  { %20 = dma.vmem_to_smem %s18_s14, 16, %s1833_s19, [#allocation4]  }
   0xd   :  { %p1796_p5 = scmp.ne.s32.totalorder %s28_s17, %s1795_s20  ;;  %p1800_p6 = scmp.lt.s32.totalorder %s28_s17, %s28_s17 }
   0xe   :  { %p1801_p7 = scmp.lt.s32.totalorder %s1795_s20, %s1795_s20 }
  0x10   :  { %p1802_p8 = por %p1801_p7, %p1800_p6 }
  0x12   :  { %p1803_p9 = pnand %p1802_p8, %p1796_p5 }
  0x14   :  { %1806 = shalt.err (!%p1803_p9)
}
  0x15   :  { %s1834_s0 = smov [#allocation5]  }
  0x16   :  { %30 = dma.vmem_to_smem %s28_s17, 16, %s1834_s0, [#allocation6]  }
  0x17   :  { %1827 = dma.done.wait [#allocation4], 16  }
  0x18   :  { %1828 = vsyncadd [#allocation4], 4294967280 }
  0x19   :  { %1829 = dma.done.wait [#allocation6], 16  }
  0x1a   :  { %1830 = vsyncadd [#allocation6], 4294967280 }
  0x1b   :  { %39 = sfence }
  0x1c   :  { %v1881_v0 = vld [vmem:[%s4303_s2 + $0x11] sm:$0xff]  ;;  %v1886_v1 = vld [vmem:[%s4303_s2 + $0x1] sm:$0xff]  ;;  %s1835_s24 = smov 1   ;;  %v1895_v2 = vld [vmem:[%s4303_s2 + $0x19] sm:$0xff]  ;;  %s1836_s10 = smov 2   ;;  %v40_v40 = vlaneseq }
  0x1d   :  { %662 = vrot.lane.b32.xlu1 %v1881_v0, %s1835_s24  ;;  %658 = vrot.lane.b32.xlu0 %v1886_v1, %s1835_s24  ;;  %v1900_v3 = vld [vmem:[%s4303_s2 + $0x9] sm:$0xff]  ;;  %v1914_v5 = vld [vmem:[%s4303_s2] sm:$0xff]  ;;  %s1837_s11 = smov 3   ;;  %s1838_s12 = smov 4  }
  0x1e   :  { %v1909_v4 = vld [vmem:[%s4303_s2 + $0x8] sm:$0xff]  ;;  %v1923_v6 = vld [vmem:[%s4303_s2 + $0x18] sm:$0xff]  ;;  %v1928_v7 = vld [vmem:[%s4303_s2 + $0x10] sm:$0xff]  ;;  %s1839_s13 = smov 5   ;;  %s1840_s14 = smov 6   ;;  %v2170_v43 = vshrl.u32 %v40_v40, 7 }
  0x1f   :  { %s1841_s15 = smov 7   ;;  %s1842_s16 = smov 8   ;;  %v2181_v48 = vand.u32 127, %v40_v40 }
  0x20   :  { %s1843_s17 = smov 9   ;;  %s1844_s18 = smov 10   ;;  %v42_v46 = vadd.s32 8, %v2170_v43  ;;  %v47_v57 = vmul.u32 128, %v2170_v43 }
  0x21   :  { %664 = vrot.lane.b32.xlu1 %v1895_v2, %s1835_s24  ;;  %660 = vrot.lane.b32.xlu0 %v1900_v3, %s1835_s24  ;;  %s1845_s19 = smov 11   ;;  %s1846_s20 = smov 12   ;;  %vm657_vm0 = vcmp.ge.s32.totalorder %v2181_v48, 1  ;;  %vm684_vm1 = vcmp.ge.s32.totalorder %v2181_v48, 2  ;;  %vm715_vm2 = vcmp.ge.s32.totalorder %v2181_v48, 3  ;;  %vm746_vm3 = vcmp.ge.s32.totalorder %v2181_v48, 4 }
  0x22   :  { %v48_v47 = vmul.u32 128, %v42_v46  ;;  %s1717_s0 = sld [smem:[#allocation2 + $0x1]]  ;;  %s1847_s26 = smov 13   ;;  %v51_v40 = vadd.s32 %v47_v57, %v2181_v48  ;;  %vm777_vm4 = vcmp.ge.s32.totalorder %v2181_v48, 5  ;;  %vm808_vm5 = vcmp.ge.s32.totalorder %v2181_v48, 6 }
  0x23   :  { %s651_s1 = sld [smem:[#allocation2]]  ;;  %s1848_s6 = smov 14   ;;  %vm839_vm6 = vcmp.ge.s32.totalorder %v2181_v48, 7  ;;  %vm870_vm7 = vcmp.ge.s32.totalorder %v2181_v48, 8  ;;  %vm901_vm8 = vcmp.ge.s32.totalorder %v2181_v48, 9  ;;  %vm932_vm9 = vcmp.ge.s32.totalorder %v2181_v48, 10 }
  0x24   :  { %v52_v51 = vadd.s32 %v48_v47, %v2181_v48  ;;  %s1718_s21 = sld [smem:[#allocation2 + $0x2]]  ;;  %vm963_vm10 = vcmp.ge.s32.totalorder %v2181_v48, 11  ;;  %vm994_vm11 = vcmp.ge.s32.totalorder %v2181_v48, 12  ;;  %vm1025_vm12 = vcmp.ge.s32.totalorder %v2181_v48, 13 }
  0x25   :  { %668 = vrot.lane.b32.xlu1 %v1909_v4, %s1835_s24  ;;  %666 = vrot.lane.b32.xlu0 %v1914_v5, %s1835_s24  ;;  %s2192_s22 = sld [smem:[#allocation2 + $0x3]]  ;;  %vm1056_vm13 = vcmp.ge.s32.totalorder %v2181_v48, 14  ;;  %vm1087_vm14 = vcmp.ge.s32.totalorder %v2181_v48, 15 }
  0x26   :  { %s2198_s23 = sld [smem:[#allocation2 + $0x4]]  ;;  %v56_v54 = vcvt.s32.f32 %v52_v51 }
  0x27   :  { %s2200_s25 = sld [smem:[#allocation2 + $0x5]] }
  0x28   :  { %s2206_s27 = sld [smem:[#allocation2 + $0x6]]  ;;  %v60_v59 = vadd.f32 0.5, %v56_v54  ;;  %v679_v62 = vstv %s1717_s0 }
  0x29   :  { %672 = vrot.lane.b32.xlu1 %v1923_v6, %s1835_s24  ;;  %670 = vrot.lane.b32.xlu0 %v1928_v7, %s1835_s24  ;;  %s2212_s28 = sld [smem:[#allocation2 + $0x7]]  ;;  %v652_v58 = vstv %s651_s1 }
  0x2a   :  { %s2214_s29 = sld [smem:[#allocation2 + $0x8]]  ;;  %v2229_v63 = vmul.f32 %v652_v58, %v1900_v3  ;;  %v706_v46 = vstv %s1718_s21  ;;  %v2234_v47 = vmul.f32 %v652_v58, %v1886_v1  ;;  %v2237_v51 = vmul.f32 %v652_v58, %v1895_v2 }
  0x2b   :  { %s2221_s30 = sld [smem:[#allocation2 + $0x9]]  ;;  %v64_v54 = vmul.f32 0.00390625, %v60_v59 }
  0x2c   :  { %v2249_v57 = vstv %s2198_s23  ;;  %s2269_s4 = sld [smem:[#allocation2 + $0xa]] }
  0x2d   :  { %687 = vrot.lane.b32.xlu1 %v1900_v3, %s1836_s10  ;;  %685 = vrot.lane.b32.xlu0 %v1886_v1, %s1836_s10  ;;  %s2303_s5 = sld [smem:[#allocation2 + $0xb]] }
  0x2e   :  { %v2260_v59 = vstv %s2206_s27  ;;  %s2338_s7 = sld [smem:[#allocation2 + $0xc]] }
  0x2f   :  { %4413 = vst [vmem:[#allocation19_spill] sm:$0xff] %v2260_v59  ;;  %s2393_s8 = sld [smem:[#allocation2 + $0xd]] }
  0x30   :  { %s2432_s9 = sld [smem:[#allocation5]] }
  0x31   :  { %691 = vrot.lane.b32.xlu1 %v1895_v2, %s1836_s10  ;;  %689 = vrot.lane.b32.xlu0 %v1881_v0, %s1836_s10  ;;  %s2437_s0 = sld [smem:[#allocation5 + $0x1]] }
  0x32   :  { %s2446_s1 = sld [smem:[#allocation5 + $0x2]] }
  0x33   :  { %s2454_s21 = sld [smem:[#allocation5 + $0x3]] }
  0x34   :  { %s2485_s23 = sld [smem:[#allocation5 + $0x4]] }
  0x35   :  { %695 = vrot.lane.b32.xlu1 %v1909_v4, %s1836_s10  ;;  %693 = vrot.lane.b32.xlu0 %v1914_v5, %s1836_s10  ;;  %s2530_s27 = sld [smem:[#allocation5 + $0x6]] }
  0x39   :  { %699 = vrot.lane.b32.xlu1 %v1923_v6, %s1836_s10  ;;  %697 = vrot.lane.b32.xlu0 %v1928_v7, %s1836_s10 }
  0x3d   :  { %718 = vrot.lane.b32.xlu1 %v1900_v3, %s1837_s11  ;;  %716 = vrot.lane.b32.xlu0 %v1886_v1, %s1837_s11 }
  0x41   :  { %722 = vrot.lane.b32.xlu1 %v1895_v2, %s1837_s11  ;;  %720 = vrot.lane.b32.xlu0 %v1881_v0, %s1837_s11 }
  0x45   :  { %726 = vrot.lane.b32.xlu1 %v1909_v4, %s1837_s11  ;;  %724 = vrot.lane.b32.xlu0 %v1914_v5, %s1837_s11 }
  0x49   :  { %730 = vrot.lane.b32.xlu1 %v1923_v6, %s1837_s11  ;;  %728 = vrot.lane.b32.xlu0 %v1928_v7, %s1837_s11 }
  0x4d   :  { %749 = vrot.lane.b32.xlu1 %v1900_v3, %s1838_s12  ;;  %747 = vrot.lane.b32.xlu0 %v1886_v1, %s1838_s12 }
  0x51   :  { %753 = vrot.lane.b32.xlu1 %v1895_v2, %s1838_s12  ;;  %751 = vrot.lane.b32.xlu0 %v1881_v0, %s1838_s12 }
  0x55   :  { %757 = vrot.lane.b32.xlu1 %v1909_v4, %s1838_s12  ;;  %755 = vrot.lane.b32.xlu0 %v1914_v5, %s1838_s12 }
  0x59   :  { %761 = vrot.lane.b32.xlu1 %v1923_v6, %s1838_s12  ;;  %759 = vrot.lane.b32.xlu0 %v1928_v7, %s1838_s12 }
  0x5d   :  { %780 = vrot.lane.b32.xlu1 %v1900_v3, %s1839_s13  ;;  %778 = vrot.lane.b32.xlu0 %v1886_v1, %s1839_s13 }
  0x61   :  { %784 = vrot.lane.b32.xlu1 %v1895_v2, %s1839_s13  ;;  %782 = vrot.lane.b32.xlu0 %v1881_v0, %s1839_s13 }
  0x65   :  { %788 = vrot.lane.b32.xlu1 %v1909_v4, %s1839_s13  ;;  %786 = vrot.lane.b32.xlu0 %v1914_v5, %s1839_s13 }
  0x69   :  { %792 = vrot.lane.b32.xlu1 %v1923_v6, %s1839_s13  ;;  %790 = vrot.lane.b32.xlu0 %v1928_v7, %s1839_s13 }
  0x6d   :  { %811 = vrot.lane.b32.xlu1 %v1900_v3, %s1840_s14  ;;  %809 = vrot.lane.b32.xlu0 %v1886_v1, %s1840_s14 }
  0x71   :  { %815 = vrot.lane.b32.xlu1 %v1895_v2, %s1840_s14  ;;  %813 = vrot.lane.b32.xlu0 %v1881_v0, %s1840_s14 }
  0x75   :  { %819 = vrot.lane.b32.xlu1 %v1909_v4, %s1840_s14  ;;  %817 = vrot.lane.b32.xlu0 %v1914_v5, %s1840_s14 }
  0x79   :  { %823 = vrot.lane.b32.xlu1 %v1923_v6, %s1840_s14  ;;  %821 = vrot.lane.b32.xlu0 %v1928_v7, %s1840_s14 }
  0x7d   :  { %842 = vrot.lane.b32.xlu1 %v1900_v3, %s1841_s15  ;;  %840 = vrot.lane.b32.xlu0 %v1886_v1, %s1841_s15 }
  0x81   :  { %846 = vrot.lane.b32.xlu1 %v1895_v2, %s1841_s15  ;;  %844 = vrot.lane.b32.xlu0 %v1881_v0, %s1841_s15 }
  0x85   :  { %850 = vrot.lane.b32.xlu1 %v1909_v4, %s1841_s15  ;;  %848 = vrot.lane.b32.xlu0 %v1914_v5, %s1841_s15 }
  0x89   :  { %854 = vrot.lane.b32.xlu1 %v1923_v6, %s1841_s15  ;;  %852 = vrot.lane.b32.xlu0 %v1928_v7, %s1841_s15 }
  0x8d   :  { %873 = vrot.lane.b32.xlu1 %v1900_v3, %s1842_s16  ;;  %871 = vrot.lane.b32.xlu0 %v1886_v1, %s1842_s16 }
  0x8f   :  { %v2034_v8 = vpop.permute.xlu1 %662  ;;  %v2036_v9 = vpop.permute.xlu0 %658 }
  0x91   :  { %877 = vrot.lane.b32.xlu1 %v1895_v2, %s1842_s16  ;;  %875 = vrot.lane.b32.xlu0 %v1881_v0, %s1842_s16 }
  0x93   :  { %v2042_v10 = vpop.permute.xlu1 %664  ;;  %v2044_v11 = vpop.permute.xlu0 %660 }
  0x95   :  { %881 = vrot.lane.b32.xlu1 %v1909_v4, %s1842_s16  ;;  %879 = vrot.lane.b32.xlu0 %v1914_v5, %s1842_s16 }
  0x97   :  { %v2050_v12 = vpop.permute.xlu1 %668  ;;  %v2052_v13 = vpop.permute.xlu0 %666 }
  0x98   :  { %v674_v59 = vsel %vm657_vm0, %v2036_v9, %v2052_v13 }
  0x99   :  { %885 = vrot.lane.b32.xlu1 %v1923_v6, %s1842_s16  ;;  %883 = vrot.lane.b32.xlu0 %v1928_v7, %s1842_s16 }
  0x9b   :  { %v2058_v14 = vpop.permute.xlu1 %672  ;;  %v2060_v15 = vpop.permute.xlu0 %670 }
  0x9c   :  { %v676_v9 = vsel %vm657_vm0, %v2034_v8, %v2060_v15 }
  0x9d   :  { %904 = vrot.lane.b32.xlu1 %v1900_v3, %s1843_s17  ;;  %902 = vrot.lane.b32.xlu0 %v1886_v1, %s1843_s17 }
  0x9f   :  { %v2066_v16 = vpop.permute.xlu1 %687  ;;  %v2068_v17 = vpop.permute.xlu0 %685 }
  0xa1   :  { %908 = vrot.lane.b32.xlu1 %v1895_v2, %s1843_s17  ;;  %906 = vrot.lane.b32.xlu0 %v1881_v0, %s1843_s17 }
  0xa3   :  { %v2074_v18 = vpop.permute.xlu1 %691  ;;  %v2076_v19 = vpop.permute.xlu0 %689 }
  0xa5   :  { %912 = vrot.lane.b32.xlu1 %v1909_v4, %s1843_s17  ;;  %910 = vrot.lane.b32.xlu0 %v1914_v5, %s1843_s17 }
  0xa7   :  { %v2082_v20 = vpop.permute.xlu1 %695  ;;  %v2084_v21 = vpop.permute.xlu0 %693 }
  0xa8   :  { %v701_v13 = vsel %vm684_vm1, %v2068_v17, %v2084_v21 }
  0xa9   :  { %916 = vrot.lane.b32.xlu1 %v1923_v6, %s1843_s17  ;;  %914 = vrot.lane.b32.xlu0 %v1928_v7, %s1843_s17 }
  0xab   :  { %v2090_v22 = vpop.permute.xlu1 %699  ;;  %v2092_v23 = vpop.permute.xlu0 %697 }
  0xad   :  { %935 = vrot.lane.b32.xlu1 %v1900_v3, %s1844_s18  ;;  %933 = vrot.lane.b32.xlu0 %v1886_v1, %s1844_s18 }
  0xaf   :  { %v2098_v24 = vpop.permute.xlu1 %718  ;;  %v2100_v25 = vpop.permute.xlu0 %716 }
  0xb1   :  { %939 = vrot.lane.b32.xlu1 %v1895_v2, %s1844_s18  ;;  %937 = vrot.lane.b32.xlu0 %v1881_v0, %s1844_s18 }
  0xb3   :  { %v2106_v26 = vpop.permute.xlu1 %722  ;;  %v2108_v27 = vpop.permute.xlu0 %720 }
  0xb5   :  { %943 = vrot.lane.b32.xlu1 %v1909_v4, %s1844_s18  ;;  %941 = vrot.lane.b32.xlu0 %v1914_v5, %s1844_s18 }
  0xb7   :  { %v2114_v28 = vpop.permute.xlu1 %726  ;;  %v2116_v29 = vpop.permute.xlu0 %724 }
  0xb8   :  { %v733_v8 = vsel %vm715_vm2, %v2098_v24, %v2114_v28  ;;  %v732_v17 = vsel %vm715_vm2, %v2100_v25, %v2116_v29 }
  0xb9   :  { %947 = vrot.lane.b32.xlu1 %v1923_v6, %s1844_s18  ;;  %945 = vrot.lane.b32.xlu0 %v1928_v7, %s1844_s18 }
  0xbb   :  { %v2122_v30 = vpop.permute.xlu1 %730  ;;  %v2124_v31 = vpop.permute.xlu0 %728 }
  0xbc   :  { %v735_v25 = vsel %vm715_vm2, %v2106_v26, %v2122_v30  ;;  %v734_v29 = vsel %vm715_vm2, %v2108_v27, %v2124_v31 }
  0xbd   :  { %966 = vrot.lane.b32.xlu1 %v1900_v3, %s1845_s19  ;;  %964 = vrot.lane.b32.xlu0 %v1886_v1, %s1845_s19 }
  0xbf   :  { %v2130_v32 = vpop.permute.xlu1 %749  ;;  %v2132_v33 = vpop.permute.xlu0 %747 }
  0xc1   :  { %970 = vrot.lane.b32.xlu1 %v1895_v2, %s1845_s19  ;;  %968 = vrot.lane.b32.xlu0 %v1881_v0, %s1845_s19 }
  0xc3   :  { %v2138_v34 = vpop.permute.xlu1 %753  ;;  %v2140_v35 = vpop.permute.xlu0 %751 }
  0xc5   :  { %974 = vrot.lane.b32.xlu1 %v1909_v4, %s1845_s19  ;;  %972 = vrot.lane.b32.xlu0 %v1914_v5, %s1845_s19 }
  0xc7   :  { %v2146_v36 = vpop.permute.xlu1 %757  ;;  %v2148_v37 = vpop.permute.xlu0 %755 }
  0xc9   :  { %978 = vrot.lane.b32.xlu1 %v1923_v6, %s1845_s19  ;;  %976 = vrot.lane.b32.xlu0 %v1928_v7, %s1845_s19 }
  0xcb   :  { %v2154_v38 = vpop.permute.xlu1 %761  ;;  %v2156_v39 = vpop.permute.xlu0 %759 }
  0xcd   :  { %997 = vrot.lane.b32.xlu1 %v1900_v3, %s1846_s20  ;;  %995 = vrot.lane.b32.xlu0 %v1886_v1, %s1846_s20 }
  0xcf   :  { %v2162_v41 = vpop.permute.xlu1 %780  ;;  %v2164_v42 = vpop.permute.xlu0 %778 }
  0xd1   :  { %1001 = vrot.lane.b32.xlu1 %v1895_v2, %s1846_s20  ;;  %999 = vrot.lane.b32.xlu0 %v1881_v0, %s1846_s20 }
  0xd3   :  { %v2172_v44 = vpop.permute.xlu1 %784  ;;  %v2174_v45 = vpop.permute.xlu0 %782 }
  0xd4   :  { %4405 = vst [vmem:[#allocation11_spill] sm:$0xff] %v2172_v44  ;;  %4406 = vst [vmem:[#allocation12_spill] sm:$0xff] %v2174_v45  ;;  %v44_v44 = vadd.s32 24, %v2170_v43 }
  0xd5   :  { %1005 = vrot.lane.b32.xlu1 %v1909_v4, %s1846_s20  ;;  %1003 = vrot.lane.b32.xlu0 %v1914_v5, %s1846_s20 }
  0xd6   :  { %v50_v21 = vmul.u32 128, %v44_v44  ;;  %v682_v44 = vmul.f32 %v679_v62, %v676_v9 }
  0xd7   :  { %v2183_v49 = vpop.permute.xlu1 %788  ;;  %v2185_v50 = vpop.permute.xlu0 %786 }
  0xd8   :  { %v54_v30 = vadd.s32 %v50_v21, %v2181_v48 }
  0xd9   :  { %1009 = vrot.lane.b32.xlu1 %v1923_v6, %s1846_s20  ;;  %1007 = vrot.lane.b32.xlu0 %v1928_v7, %s1846_s20 }
  0xdb   :  { %v2194_v52 = vpop.permute.xlu1 %792  ;;  %v2196_v53 = vpop.permute.xlu0 %790 }
  0xdc   :  { %4407 = vst [vmem:[#allocation13_spill] sm:$0xff] %v2196_v53  ;;  %v2267_v53 = vstv %s2212_s28  ;;  %s2545_s28 = sld [smem:[#allocation5 + $0x7]] }
  0xdd   :  { %1028 = vrot.lane.b32.xlu1 %v1900_v3, %s1847_s26  ;;  %1026 = vrot.lane.b32.xlu0 %v1886_v1, %s1847_s26  ;;  %4415 = vst [vmem:[#allocation21_spill] sm:$0xff] %v2267_v53  ;;  %v2286_v53 = vstv %s2214_s29  ;;  %s2583_s29 = sld [smem:[#allocation5 + $0x8]] }
  0xdf   :  { %v2208_v55 = vpop.permute.xlu1 %811  ;;  %v2210_v56 = vpop.permute.xlu0 %809 }
  0xe0   :  { %4408 = vst [vmem:[#allocation14_spill] sm:$0xff] %v2208_v55  ;;  %4409 = vst [vmem:[#allocation15_spill] sm:$0xff] %v2210_v56  ;;  %v675_v56 = vsel %vm657_vm0, %v2044_v11, %v2050_v12  ;;  %v2257_v55 = vstv %s2200_s25  ;;  %v702_v11 = vsel %vm684_vm1, %v2066_v16, %v2082_v20  ;;  %v55_v12 = vcvt.s32.f32 %v51_v40  ;;  %s2490_s25 = sld [smem:[#allocation5 + $0x5]] }
  0xe1   :  { %1032 = vrot.lane.b32.xlu1 %v1895_v2, %s1847_s26  ;;  %1030 = vrot.lane.b32.xlu0 %v1881_v0, %s1847_s26  ;;  %4412 = vst [vmem:[#allocation18_spill] sm:$0xff] %v2257_v55  ;;  %v43_v55 = vadd.s32 16, %v2170_v43  ;;  %v1623_v16 = vadd.f32 -0.5, %v64_v54  ;;  %v681_v20 = vmul.f32 %v679_v62, %v675_v56  ;;  %v677_v43 = vsel %vm657_vm0, %v2042_v10, %v2058_v14 }
  0xe2   :  { %v708_v40 = vmul.f32 %v706_v46, %v702_v11  ;;  %v704_v56 = vsel %vm684_vm1, %v2074_v18, %v2090_v22  ;;  %v703_v10 = vsel %vm684_vm1, %v2076_v19, %v2092_v23  ;;  %v59_v18 = vadd.f32 0.5, %v55_v12 }
  0xe3   :  { %v2224_v60 = vpop.permute.xlu1 %815  ;;  %v2226_v61 = vpop.permute.xlu0 %813  ;;  %v49_v22 = vmul.u32 128, %v43_v55  ;;  %v680_v19 = vmul.f32 %v679_v62, %v674_v59  ;;  %v683_v23 = vmul.f32 %v679_v62, %v677_v43  ;;  %v707_v54 = vmul.f32 %v706_v46, %v701_v13 }
  0xe4   :  { %4410 = vst [vmem:[#allocation16_spill] sm:$0xff] %v2224_v60  ;;  %4411 = vst [vmem:[#allocation17_spill] sm:$0xff] %v2226_v61  ;;  %v2244_v61 = vmul.f32 %v652_v58, %v1881_v0  ;;  %v737_v60 = vstv %s2192_s22  ;;  %v72_v24 = vmax.f32 %v1623_v16, 0.0  ;;  %v710_v28 = vmul.f32 %v706_v46, %v704_v56  ;;  %s1849_s22 = smov 15  }
  0xe5   :  { %1036 = vrot.lane.b32.xlu1 %v1909_v4, %s1847_s26  ;;  %1034 = vrot.lane.b32.xlu0 %v1914_v5, %s1847_s26  ;;  %v709_v11 = vmul.f32 %v706_v46, %v703_v10  ;;  %v739_v55 = vmul.f32 %v737_v60, %v733_v8  ;;  %v738_v59 = vmul.f32 %v737_v60, %v732_v17  ;;  %v2345_v46 = vstv %s2269_s4  ;;  %s1686_s4 = sld [smem:[#allocation5 + $0x1a]] }
  0xe6   :  { %4417 = vst [vmem:[#allocation23_spill] sm:$0xff] %v2345_v46  ;;  %v712_v43 = vadd.f32 %v708_v40, %v2229_v63  ;;  %v63_v26 = vmul.f32 0.00390625, %v59_v18  ;;  %v53_v13 = vadd.s32 %v49_v22, %v2181_v48  ;;  %v711_v27 = vadd.f32 %v707_v54, %v2234_v47 }
  0xe7   :  { %v2262_v58 = vpop.permute.xlu1 %819  ;;  %v2264_v45 = vpop.permute.xlu0 %817  ;;  %v741_v31 = vmul.f32 %v737_v60, %v735_v25  ;;  %v740_v62 = vmul.f32 %v737_v60, %v734_v29  ;;  %v2355_v9 = vmin.f32 %v72_v24, 15.0  ;;  %v714_v56 = vadd.f32 %v710_v28, %v2237_v51  ;;  %v4420_v25 = vld [vmem:[#allocation11_spill] sm:$0xff] }
  0xe8   :  { %4414 = vst [vmem:[#allocation20_spill] sm:$0xff] %v2264_v45  ;;  %v2289_v45 = vstv %s2221_s30  ;;  %v713_v63 = vadd.f32 %v709_v11, %v2244_v61  ;;  %v764_v40 = vsel %vm746_vm3, %v2130_v32, %v2146_v36  ;;  %v2364_v47 = vstv %s2303_s5  ;;  %s2590_s30 = sld [smem:[#allocation5 + $0x9]] }
  0xe9   :  { %1040 = vrot.lane.b32.xlu1 %v1923_v6, %s1847_s26  ;;  %1038 = vrot.lane.b32.xlu0 %v1928_v7, %s1847_s26  ;;  %4416 = vst [vmem:[#allocation22_spill] sm:$0xff] %v2289_v45  ;;  %4418 = vst [vmem:[#allocation24_spill] sm:$0xff] %v2364_v47  ;;  %v2366_v60 = vadd.f32 %v739_v55, %v681_v20  ;;  %v2368_v10 = vadd.f32 %v738_v59, %v680_v19  ;;  %v1622_v20 = vadd.f32 -0.5, %v63_v26  ;;  %v4422_v59 = vld [vmem:[#allocation12_spill] sm:$0xff]  ;;  %s2719_s5 = sld [smem:[#allocation5 + $0xc]] }
  0xea   :  { %v763_v8 = vsel %vm746_vm3, %v2132_v33, %v2148_v37  ;;  %v766_v61 = vsel %vm746_vm3, %v2138_v34, %v2154_v38  ;;  %v765_v36 = vsel %vm746_vm3, %v2140_v35, %v2156_v39  ;;  %v58_v17 = vcvt.s32.f32 %v54_v30 }
  0xeb   :  { %v2317_v14 = vpop.permute.xlu1 %823  ;;  %v2319_v15 = vpop.permute.xlu0 %821  ;;  %v57_v18 = vcvt.s32.f32 %v53_v13  ;;  %v745_v21 = vadd.f32 %v741_v31, %v683_v23  ;;  %v2386_v33 = vadd.f32 %v740_v62, %v682_v44  ;;  %v770_v37 = vmul.f32 %v2249_v57, %v764_v40 }
  0xec   :  { %v1628_v34 = vadd.f32 -1.0, %v2355_v9  ;;  %v769_v35 = vmul.f32 %v2249_v57, %v763_v8  ;;  %v772_v38 = vmul.f32 %v2249_v57, %v766_v61  ;;  %v2400_v39 = vstv %s2338_s7  ;;  %s2729_s7 = sld [smem:[#allocation5 + $0xd]] }
  0xed   :  { %1059 = vrot.lane.b32.xlu1 %v1900_v3, %s1848_s6  ;;  %1057 = vrot.lane.b32.xlu0 %v1886_v1, %s1848_s6  ;;  %4419 = vst [vmem:[#allocation25_spill] sm:$0xff] %v2400_v39  ;;  %v1634_v22 = vadd.f32 -2.0, %v2355_v9  ;;  %v771_v19 = vmul.f32 %v2249_v57, %v765_v36  ;;  %v795_v23 = vsel %vm777_vm4, %v2162_v41, %v2183_v49  ;;  %v1640_v11 = vadd.f32 -3.0, %v2355_v9  ;;  %v4421_v49 = vld [vmem:[#allocation13_spill] sm:$0xff] }
  0xee   :  { %v794_v54 = vsel %vm777_vm4, %v2164_v42, %v2185_v50  ;;  %v797_v57 = vsel %vm777_vm4, %v4420_v25, %v2194_v52  ;;  %v71_v29 = vmax.f32 %v1622_v20, 0.0  ;;  %v62_v44 = vadd.f32 0.5, %v58_v17 }
  0xef   :  { %v2340_v12 = vpop.permute.xlu1 %842  ;;  %v2342_v16 = vpop.permute.xlu0 %840  ;;  %v61_v55 = vadd.f32 0.5, %v57_v18  ;;  %v2421_v41 = vadd.f32 %v770_v37, %v712_v43  ;;  %v796_v42 = vsel %vm777_vm4, %v4422_v59, %v4421_v49  ;;  %v80_v50 = vand.u32 2147483647, %v2355_v9  ;;  %v4423_v43 = vld [vmem:[#allocation18_spill] sm:$0xff] }
  0xf0   :  { %v108_v52 = vand.u32 2147483647, %v1628_v34  ;;  %v2434_v26 = vadd.f32 %v769_v35, %v711_v27  ;;  %v801_v30 = vmul.f32 %v4423_v43, %v795_v23  ;;  %v136_v13 = vand.u32 2147483647, %v1634_v22 }
  0xf1   :  { %1063 = vrot.lane.b32.xlu1 %v1895_v2, %s1848_s6  ;;  %1061 = vrot.lane.b32.xlu0 %v1881_v0, %s1848_s6  ;;  %v1646_v31 = vadd.f32 -4.0, %v2355_v9  ;;  %v800_v62 = vmul.f32 %v4423_v43, %v794_v54  ;;  %v803_v40 = vmul.f32 %v4423_v43, %v797_v57  ;;  %v172_v27 = vand.u32 2147483647, %v1640_v11 }
  0xf2   :  { %v1652_v36 = vadd.f32 -5.0, %v2355_v9  ;;  %v2449_v20 = vadd.f32 %v772_v38, %v714_v56  ;;  %v2451_v17 = vadd.f32 %v771_v19, %v713_v63  ;;  %v802_v18 = vmul.f32 %v4423_v43, %v796_v42 }
  0xf3   :  { %v2378_v51 = vpop.permute.xlu1 %846  ;;  %v2380_v32 = vpop.permute.xlu0 %844  ;;  %v66_v37 = vmul.f32 0.00390625, %v62_v44  ;;  %v2461_v34 = vstv %s2393_s8  ;;  %v2463_v35 = vsub.f32 1.0, %v80_v50  ;;  %v2465_v56 = vmin.f32 %v71_v29, 15.0  ;;  %v4430_v44 = vld [vmem:[#allocation14_spill] sm:$0xff]  ;;  %s2735_s8 = sld [smem:[#allocation5 + $0xe]] }
  0xf4   :  { %4424 = vst [vmem:[#allocation11_spill] sm:$0xff] %v2461_v34  ;;  %v65_v63 = vmul.f32 0.00390625, %v61_v55  ;;  %v2468_v38 = vadd.f32 %v801_v30, %v2366_v60  ;;  %v2470_v22 = vsub.f32 1.0, %v108_v52  ;;  %v2472_v19 = vsub.f32 1.0, %v136_v13 }
  0xf5   :  { %1067 = vrot.lane.b32.xlu1 %v1909_v4, %s1848_s6  ;;  %1065 = vrot.lane.b32.xlu0 %v1914_v5, %s1848_s6  ;;  %4425 = vst [vmem:[#allocation13_spill] sm:$0xff] %v2463_v35  ;;  %v208_v23 = vand.u32 2147483647, %v1646_v31  ;;  %v2477_v54 = vadd.f32 %v803_v40, %v745_v21  ;;  %v2483_v25 = vsub.f32 1.0, %v172_v27  ;;  %v244_v60 = vand.u32 2147483647, %v1652_v36 }
  0xf6   :  { %4426 = vst [vmem:[#allocation12_spill] sm:$0xff] %v2470_v22  ;;  %4427 = vst [vmem:[#allocation18_spill] sm:$0xff] %v2472_v19  ;;  %v2488_v57 = vadd.f32 %v802_v18, %v2386_v33  ;;  %v1664_v21 = vadd.f32 -7.0, %v2355_v9  ;;  %v2494_v29 = vadd.f32 -0.5, %v66_v37  ;;  %v826_v55 = vsel %vm808_vm5, %v4430_v44, %v2262_v58  ;;  %v4434_v18 = vld [vmem:[#allocation20_spill] sm:$0xff]  ;;  %v4435_v37 = vld [vmem:[#allocation15_spill] sm:$0xff] }
  0xf7   :  { %v2412_v24 = vpop.permute.xlu1 %850  ;;  %v2414_v28 = vpop.permute.xlu0 %848  ;;  %4428 = vst [vmem:[#allocation26_spill] sm:$0xff] %v2483_v25  ;;  %v4311_v33 = vmax.f32 %v2463_v35, 0.0  ;;  %v2506_v49 = vadd.f32 -1.0, %v2465_v56  ;;  %v2508_v59 = vadd.f32 -0.5, %v65_v63  ;;  %v2511_v42 = vstv %s2432_s9  ;;  %s2636_s9 = sld [smem:[#allocation2 + $0xe]] }
  0xf8   :  { %4429 = vst [vmem:[#allocation27_spill] sm:$0xff] %v2494_v29  ;;  %v4316_v50 = vmax.f32 %v2470_v22, 0.0  ;;  %v4313_v58 = vmax.f32 %v2472_v19, 0.0  ;;  %v2515_v52 = vsub.f32 1.0, %v208_v23  ;;  %v2525_v30 = vstv %s2446_s1  ;;  %s3761_s1 = sld [smem:[#allocation2 + $0x12]] }
  0xf9   :  { %1071 = vrot.lane.b32.xlu1 %v1923_v6, %s1848_s6  ;;  %1069 = vrot.lane.b32.xlu0 %v1928_v7, %s1848_s6  ;;  %4431 = vst [vmem:[#allocation14_spill] sm:$0xff] %v2508_v59  ;;  %v2528_v31 = vsub.f32 1.0, %v244_v60  ;;  %v316_v27 = vand.u32 2147483647, %v1664_v21  ;;  %v1670_v36 = vadd.f32 -8.0, %v2355_v9  ;;  %v825_v63 = vsel %vm808_vm5, %v4435_v37, %v4434_v18  ;;  %v4436_v21 = vld [vmem:[#allocation19_spill] sm:$0xff] }
  0xfa   :  { %4432 = vst [vmem:[#allocation28_spill] sm:$0xff] %v2515_v52  ;;  %v1676_v23 = vadd.f32 -9.0, %v2355_v9  ;;  %v2549_v60 = vadd.f32 -2.0, %v2465_v56  ;;  %v832_v44 = vmul.f32 %v4436_v21, %v826_v55  ;;  %v4437_v55 = vmax.f32 %v2483_v25, 0.0 }
  0xfb   :  { %v2442_v8 = vpop.permute.xlu1 %854  ;;  %v2444_v61 = vpop.permute.xlu0 %852  ;;  %4433 = vst [vmem:[#allocation29_spill] sm:$0xff] %v2528_v31  ;;  %v2573_v39 = vstv %s2485_s23  ;;  %v2577_v19 = vstv %s2490_s25  ;;  %v2581_v18 = vsub.f32 1.0, %v316_v27  ;;  %v352_v47 = vand.u32 2147483647, %v1670_v36  ;;  %v4440_v27 = vld [vmem:[#allocation16_spill] sm:$0xff]  ;;  %s2660_s25 = sld [smem:[#allocation5 + $0xa]] }
  0xfc   :  { %v831_v22 = vmul.f32 %v4436_v21, %v825_v63  ;;  %v828_v36 = vsel %vm808_vm5, %v4440_v27, %v2317_v14  ;;  %v2601_v63 = vld [vmem:[%s4303_s2 + $0x31] sm:$0xff]  ;;  %v1694_v46 = vadd.f32 -12.0, %v2355_v9  ;;  %s1751_s23 = sld [smem:[#allocation2 + $0x1b]] }
  0xfd   :  { %1090 = vrot.lane.b32.xlu1 %v1900_v3, %s1849_s22  ;;  %1088 = vrot.lane.b32.xlu0 %v1886_v1, %s1849_s22  ;;  %v2475_v3 = vadd.f32 %v800_v62, %v2368_v10  ;;  %v1658_v10 = vadd.f32 -6.0, %v2355_v9  ;;  %v2534_v62 = vstv %s2454_s21  ;;  %4439 = vst [vmem:[#allocation15_spill] sm:$0xff] %v2581_v18  ;;  %v4442_v14 = vld [vmem:[#allocation17_spill] sm:$0xff]  ;;  %v2629_v29 = vsub.f32 1.0, %v352_v47  ;;  %s1744_s21 = sld [smem:[#allocation2 + $0x14]] }
  0xfe   :  { %v186_v35 = vmul.f32 %v2534_v62, %v4437_v55  ;;  %v388_v55 = vand.u32 2147483647, %v1676_v23  ;;  %v4441_v23 = vmax.f32 %v2515_v52, 0.0  ;;  %v827_v27 = vsel %vm808_vm5, %v4442_v14, %v2319_v15  ;;  %v2658_v14 = vld [vmem:[%s4303_s2 + $0x39] sm:$0xff] }
  0xff   :  { %v2479_v1 = vpop.permute.xlu1 %873  ;;  %v2481_v11 = vpop.permute.xlu0 %871  ;;  %v280_v40 = vand.u32 2147483647, %v1658_v10  ;;  %v2552_v10 = vadd.f32 -3.0, %v2465_v56  ;;  %v2625_v52 = vadd.f32 %v832_v44, %v2421_v41  ;;  %4444 = vst [vmem:[#allocation19_spill] sm:$0xff] %v2629_v29  ;;  %v834_v15 = vmul.f32 %v4436_v21, %v828_v36  ;;  %v2653_v36 = vld [vmem:[%s4303_s2 + $0x41] sm:$0xff] }
 0x100   :  { %v2642_v41 = vstv %s2545_s28  ;;  %v2647_v44 = vadd.f32 %v831_v22, %v2434_v26  ;;  %v833_v47 = vmul.f32 %v4436_v21, %v827_v27  ;;  %v857_v26 = vsel %vm839_vm6, %v2340_v12, %v2412_v24  ;;  %s1674_s28 = sld [smem:[#allocation5 + $0x18]] }
 0x101   :  { %1094 = vrot.lane.b32.xlu1 %v1895_v2, %s1849_s22  ;;  %1092 = vrot.lane.b32.xlu0 %v1881_v0, %s1849_s22  ;;  %v2522_v0 = vstv %s2437_s0  ;;  %4445 = vst [vmem:[#allocation16_spill] sm:$0xff] %v2642_v41  ;;  %v4449_v12 = vmax.f32 %v2581_v18, 0.0  ;;  %v1700_v18 = vadd.f32 -13.0, %v2355_v9  ;;  %s2750_s0 = sld [smem:[#allocation5 + $0xf]] }
 0x102   :  { %v122_v34 = vmul.f32 %v2522_v0, %v4316_v50  ;;  %v1682_v50 = vadd.f32 -10.0, %v2355_v9 }
 0x103   :  { %v2517_v2 = vpop.permute.xlu1 %877  ;;  %v2519_v43 = vpop.permute.xlu0 %875  ;;  %v330_v24 = vmul.f32 %v2642_v41, %v4449_v12  ;;  %v2710_v12 = vld [vmem:[%s4303_s2 + $0x30] sm:$0xff] }
 0x104   :  { %v190_v59 = vadd.f32 %v186_v35, %v122_v34  ;;  %v2639_v34 = vstv %s2530_s27  ;;  %v2644_v35 = vsub.f32 1.0, %v388_v55  ;;  %v424_v45 = vand.u32 2147483647, %v1682_v50  ;;  %s2682_s27 = sld [smem:[#allocation5 + $0xb]] }
 0x105   :  { %1098 = vrot.lane.b32.xlu1 %v1909_v4, %s1849_s22  ;;  %1096 = vrot.lane.b32.xlu0 %v1914_v5, %s1849_s22  ;;  %v94_v4 = vmul.f32 %v2511_v42, %v4311_v33  ;;  %v150_v5 = vmul.f32 %v2525_v30, %v4313_v58  ;;  %v2579_v58 = vsub.f32 1.0, %v280_v40  ;;  %v222_v40 = vmul.f32 %v2573_v39, %v4441_v23 }
 0x106   :  { %v1688_v23 = vadd.f32 -11.0, %v2355_v9  ;;  %4446 = vst [vmem:[#allocation17_spill] sm:$0xff] %v2644_v35  ;;  %v856_v50 = vsel %vm839_vm6, %v2342_v16, %v2414_v28  ;;  %v2692_v16 = vstv %s2583_s29  ;;  %v2715_v28 = vld [vmem:[%s4303_s2 + $0x28] sm:$0xff]  ;;  %s1692_s29 = sld [smem:[#allocation5 + $0x1b]] }
 0x107   :  { %v2562_v37 = vpop.permute.xlu1 %881  ;;  %v2564_v13 = vpop.permute.xlu0 %879  ;;  %4438 = vst [vmem:[#allocation20_spill] sm:$0xff] %v2579_v58  ;;  %4450 = vst [vmem:[#allocation31_spill] sm:$0xff] %v2692_v16 }
 0x108   :  { %v460_v27 = vand.u32 2147483647, %v1688_v23  ;;  %v4452_v23 = vld [vmem:[#allocation21_spill] sm:$0xff] }
 0x109   :  { %1102 = vrot.lane.b32.xlu1 %v1923_v6, %s1849_s22  ;;  %1100 = vrot.lane.b32.xlu0 %v1928_v7, %s1849_s22  ;;  %v2606_v6 = vld [vmem:[%s4303_s2 + $0x29] sm:$0xff]  ;;  %v154_v7 = vadd.f32 %v150_v5, %v94_v4  ;;  %v4443_v4 = vmax.f32 %v2528_v31, 0.0  ;;  %v496_v31 = vand.u32 2147483647, %v1694_v46  ;;  %v2745_v46 = vstv %s2636_s9  ;;  %s1748_s9 = sld [smem:[#allocation2 + $0x18]] }
 0x10a   :  { %4458 = vst [vmem:[#allocation36_spill] sm:$0xff] %v2745_v46 }
 0x10b   :  { %v2616_v33 = vpop.permute.xlu1 %885  ;;  %v2618_v25 = vpop.permute.xlu0 %883  ;;  %v258_v5 = vmul.f32 %v2577_v19, %v4443_v4  ;;  %v226_v4 = vadd.f32 %v222_v40, %v154_v7  ;;  %v4448_v40 = vmax.f32 %v2579_v58, 0.0 }
 0x10d   :  { %1147 = vrot.lane.b32.xlu1 %v2601_v63, %s1835_s24  ;;  %1145 = vrot.lane.b32.xlu0 %v2606_v6, %s1835_s24  ;;  %v262_v55 = vadd.f32 %v258_v5, %v190_v59  ;;  %v294_v7 = vmul.f32 %v2639_v34, %v4448_v40  ;;  %v2685_v59 = vadd.f32 %v834_v15, %v2449_v20  ;;  %v2696_v5 = vstv %s2590_s30  ;;  %s4058_s30 = sld [smem:[#allocation5 + $0x1c]] }
 0x10e   :  { %4451 = vst [vmem:[#allocation32_spill] sm:$0xff] %v2696_v5  ;;  %v863_v40 = vmul.f32 %v4452_v23, %v857_v26  ;;  %v859_v20 = vsel %vm839_vm6, %v2378_v51, %v2442_v8  ;;  %v858_v15 = vsel %vm839_vm6, %v2380_v32, %v2444_v61  ;;  %v2717_v26 = vsub.f32 1.0, %v424_v45 }
 0x10f   :  { %v2666_v22 = vpop.permute.xlu1 %904  ;;  %v2668_v21 = vpop.permute.xlu0 %902  ;;  %v862_v51 = vmul.f32 %v4452_v23, %v856_v50  ;;  %v2726_v61 = vsub.f32 1.0, %v460_v27  ;;  %v298_v58 = vadd.f32 %v294_v7, %v226_v4  ;;  %v334_v41 = vadd.f32 %v330_v24, %v262_v55 }
 0x110   :  { %4447 = vst [vmem:[#allocation30_spill] sm:$0xff] %v2668_v21  ;;  %4453 = vst [vmem:[#allocation21_spill] sm:$0xff] %v2717_v26  ;;  %v4457_v45 = vmax.f32 %v2629_v29, 0.0  ;;  %v1706_v50 = vadd.f32 -14.0, %v2355_v9  ;;  %v864_v27 = vmul.f32 %v4452_v23, %v858_v15  ;;  %v4459_v4 = vmax.f32 %v2644_v35, 0.0 }
 0x111   :  { %1151 = vrot.lane.b32.xlu1 %v2653_v36, %s1835_s24  ;;  %1149 = vrot.lane.b32.xlu0 %v2658_v14, %s1835_s24  ;;  %4456 = vst [vmem:[#allocation35_spill] sm:$0xff] %v2726_v61  ;;  %v2753_v7 = vadd.f32 %v833_v47, %v2451_v17  ;;  %v2756_v24 = vadd.f32 %v863_v40, %v2468_v38  ;;  %v4334_v38 = vmax.f32 %v2726_v61, 0.0  ;;  %v2777_v47 = vsub.f32 1.0, %v496_v31 }
 0x112   :  { %v366_v21 = vmul.f32 %v2692_v16, %v4457_v45  ;;  %v402_v55 = vmul.f32 %v2696_v5, %v4459_v4  ;;  %v2770_v45 = vstv %s2660_s25  ;;  %v532_v40 = vand.u32 2147483647, %v1700_v18  ;;  %s1662_s25 = sld [smem:[#allocation5 + $0x16]] }
 0x113   :  { %v2722_v8 = vpop.permute.xlu1 %908  ;;  %v2724_v32 = vpop.permute.xlu0 %906  ;;  %4460 = vst [vmem:[#allocation37_spill] sm:$0xff] %v2756_v24  ;;  %4461 = vst [vmem:[#allocation38_spill] sm:$0xff] %v2770_v45  ;;  %v1712_v35 = vadd.f32 -15.0, %v2355_v9  ;;  %v2781_v29 = vadd.f32 %v862_v51, %v2475_v3  ;;  %v2784_v24 = vstv %s2682_s27  ;;  %v568_v15 = vand.u32 2147483647, %v1706_v50  ;;  %s1668_s27 = sld [smem:[#allocation5 + $0x17]] }
 0x114   :  { %4454 = vst [vmem:[#allocation33_spill] sm:$0xff] %v2722_v8  ;;  %4455 = vst [vmem:[#allocation34_spill] sm:$0xff] %v2724_v32  ;;  %v865_v32 = vmul.f32 %v4452_v23, %v859_v20  ;;  %v2761_v23 = vld [vmem:[%s4303_s2 + $0x40] sm:$0xff]  ;;  %v2766_v20 = vld [vmem:[%s4303_s2 + $0x38] sm:$0xff]  ;;  %v370_v46 = vadd.f32 %v366_v21, %v298_v58  ;;  %v2790_v5 = vadd.f32 %v864_v27, %v2488_v57  ;;  %v79_v3 = vand.u32 2147483647, %v2465_v56 }
 0x115   :  { %1155 = vrot.lane.b32.xlu1 %v2710_v12, %s1835_s24  ;;  %1153 = vrot.lane.b32.xlu0 %v2715_v28, %s1835_s24  ;;  %4462 = vst [vmem:[#allocation39_spill] sm:$0xff] %v2777_v47  ;;  %4463 = vst [vmem:[#allocation40_spill] sm:$0xff] %v2781_v29  ;;  %v406_v9 = vadd.f32 %v402_v55, %v334_v41  ;;  %v4467_v58 = vmax.f32 %v2717_v26, 0.0  ;;  %v135_v57 = vand.u32 2147483647, %v2549_v60  ;;  %v1645_v18 = vadd.f32 -4.0, %v2465_v56 }
 0x116   :  { %4464 = vst [vmem:[#allocation41_spill] sm:$0xff] %v2784_v24  ;;  %v2787_v8 = vadd.f32 %v865_v32, %v2477_v54  ;;  %4466 = vst [vmem:[#allocation43_spill] sm:$0xff] %v2790_v5  ;;  %v2801_v54 = vstv %s2719_s5  ;;  %v474_v41 = vmul.f32 %v2784_v24, %v4334_v38  ;;  %v2813_v50 = vsub.f32 1.0, %v532_v40  ;;  %s4084_s5 = sld [smem:[#allocation5 + $0x1d]] }
 0x117   :  { %v2772_v4 = vpop.permute.xlu1 %912  ;;  %v2774_v17 = vpop.permute.xlu0 %910  ;;  %v438_v31 = vmul.f32 %v2770_v45, %v4467_v58  ;;  %4468 = vst [vmem:[#allocation44_spill] sm:$0xff] %v2801_v54  ;;  %v604_v27 = vand.u32 2147483647, %v1712_v35  ;;  %v2816_v55 = vstv %s2729_s7  ;;  %v2818_v58 = vsub.f32 1.0, %v568_v15  ;;  %s4093_s7 = sld [smem:[#allocation5 + $0x1e]] }
 0x118   :  { %4465 = vst [vmem:[#allocation42_spill] sm:$0xff] %v2787_v8  ;;  %4471 = vst [vmem:[#allocation47_spill] sm:$0xff] %v2813_v50  ;;  %v107_v60 = vand.u32 2147483647, %v2506_v49  ;;  %v171_v26 = vand.u32 2147483647, %v2552_v10  ;;  %v2827_v38 = vstv %s2735_s8  ;;  %v2830_v32 = vstv %s2750_s0 }
 0x119   :  { %1159 = vrot.lane.b32.xlu1 %v2761_v23, %s1835_s24  ;;  %1157 = vrot.lane.b32.xlu0 %v2766_v20, %s1835_s24  ;;  %4472 = vst [vmem:[#allocation48_spill] sm:$0xff] %v2818_v58  ;;  %4473 = vst [vmem:[#allocation49_spill] sm:$0xff] %v2830_v32  ;;  %v2832_v40 = vsub.f32 1.0, %v79_v3  ;;  %v1651_v35 = vadd.f32 -5.0, %v2465_v56  ;;  %v442_v15 = vadd.f32 %v438_v31, %v370_v46  ;;  %v2835_v61 = vsub.f32 1.0, %v135_v57  ;;  %s3441_s24 = sld [smem:[#allocation2 + $0xf]] }
 0x11a   :  { %v207_v49 = vand.u32 2147483647, %v1645_v18  ;;  %v1657_v10 = vadd.f32 -6.0, %v2465_v56  ;;  %v478_v29 = vadd.f32 %v474_v41, %v406_v9  ;;  %v4477_v24 = vmax.f32 %v2777_v47, 0.0  ;;  %s4121_s8 = sld [smem:[#allocation5 + $0x1f]] }
 0x11b   :  { %v2805_v21 = vpop.permute.xlu1 %916  ;;  %v2807_v51 = vpop.permute.xlu0 %914  ;;  %4474 = vst [vmem:[#allocation50_spill] sm:$0xff] %v2832_v40  ;;  %4475 = vst [vmem:[#allocation51_spill] sm:$0xff] %v2835_v61  ;;  %v888_v46 = vsel %vm870_vm7, %v2479_v1, %v2562_v37  ;;  %v2853_v57 = vsub.f32 1.0, %v107_v60  ;;  %v2855_v18 = vsub.f32 1.0, %v171_v26  ;;  %v243_v1 = vand.u32 2147483647, %v1651_v35 }
 0x11c   :  { %4469 = vst [vmem:[#allocation45_spill] sm:$0xff] %v2805_v21  ;;  %4470 = vst [vmem:[#allocation46_spill] sm:$0xff] %v2807_v51  ;;  %v510_v51 = vmul.f32 %v2801_v54, %v4477_v24  ;;  %v2846_v21 = vsub.f32 1.0, %v604_v27  ;;  %v887_v24 = vsel %vm870_vm7, %v2481_v11, %v2564_v13  ;;  %v1663_v37 = vadd.f32 -7.0, %v2465_v56  ;;  %s4147_s0 = sld [smem:[#allocation2 + $0x1c]] }
 0x11d   :  { %1173 = vrot.lane.b32.xlu1 %v2601_v63, %s1836_s10  ;;  %1171 = vrot.lane.b32.xlu0 %v2606_v6, %s1836_s10  ;;  %4479 = vst [vmem:[#allocation54_spill] sm:$0xff] %v2853_v57  ;;  %4480 = vst [vmem:[#allocation55_spill] sm:$0xff] %v2855_v18  ;;  %v2868_v26 = vsub.f32 1.0, %v207_v49  ;;  %v279_v27 = vand.u32 2147483647, %v1657_v10  ;;  %v1669_v60 = vadd.f32 -8.0, %v2465_v56  ;;  %v894_v11 = vmul.f32 %v2286_v53, %v888_v46 }
 0x11e   :  { %4478 = vst [vmem:[#allocation53_spill] sm:$0xff] %v2846_v21  ;;  %v514_v3 = vadd.f32 %v510_v51, %v442_v15  ;;  %v4484_v47 = vmax.f32 %v2813_v50, 0.0  ;;  %v890_v49 = vsel %vm870_vm7, %v2517_v2, %v2616_v33  ;;  %v1675_v41 = vadd.f32 -9.0, %v2465_v56 }
 0x11f   :  { %v2838_v5 = vpop.permute.xlu1 %935  ;;  %v2840_v8 = vpop.permute.xlu0 %933  ;;  %4481 = vst [vmem:[#allocation56_spill] sm:$0xff] %v2868_v26  ;;  %v2895_v15 = vsub.f32 1.0, %v243_v1  ;;  %v315_v33 = vand.u32 2147483647, %v1663_v37  ;;  %v1681_v2 = vadd.f32 -10.0, %v2465_v56  ;;  %v4487_v46 = vmax.f32 %v2835_v61, 0.0 }
 0x120   :  { %4476 = vst [vmem:[#allocation52_spill] sm:$0xff] %v2840_v8  ;;  %v546_v35 = vmul.f32 %v2816_v55, %v4484_v47  ;;  %v4485_v47 = vmax.f32 %v2832_v40, 0.0  ;;  %v2902_v50 = vsub.f32 1.0, %v279_v27  ;;  %v4489_v37 = vmax.f32 %v2818_v58, 0.0 }
 0x121   :  { %1177 = vrot.lane.b32.xlu1 %v2653_v36, %s1836_s10  ;;  %1175 = vrot.lane.b32.xlu0 %v2658_v14, %s1836_s10  ;;  %4486 = vst [vmem:[#allocation59_spill] sm:$0xff] %v2895_v15  ;;  %v149_v10 = vmul.f32 %v2525_v30, %v4487_v46  ;;  %v4490_v61 = vmax.f32 %v2846_v21, 0.0  ;;  %v889_v27 = vsel %vm870_vm7, %v2519_v43, %v2618_v25  ;;  %v4492_v9 = vmax.f32 %v2855_v18, 0.0 }
 0x122   :  { %v93_v51 = vmul.f32 %v2511_v42, %v4485_v47  ;;  %4488 = vst [vmem:[#allocation60_spill] sm:$0xff] %v2902_v50  ;;  %v550_v1 = vadd.f32 %v546_v35, %v478_v29  ;;  %v582_v47 = vmul.f32 %v2827_v38, %v4489_v37  ;;  %v387_v35 = vand.u32 2147483647, %v1675_v41 }
 0x123   :  { %v2872_v13 = vpop.permute.xlu1 %939  ;;  %v2874_v31 = vpop.permute.xlu0 %937  ;;  %v618_v46 = vmul.f32 %v2830_v32, %v4490_v61  ;;  %v185_v29 = vmul.f32 %v2534_v62, %v4492_v9  ;;  %v896_v37 = vmul.f32 %v2286_v53, %v890_v49  ;;  %v2931_v25 = vsub.f32 1.0, %v315_v33 }
 0x124   :  { %4482 = vst [vmem:[#allocation57_spill] sm:$0xff] %v2872_v13  ;;  %4483 = vst [vmem:[#allocation58_spill] sm:$0xff] %v2874_v31  ;;  %v351_v31 = vand.u32 2147483647, %v1669_v60  ;;  %v893_v13 = vmul.f32 %v2286_v53, %v887_v24  ;;  %v4491_v24 = vmax.f32 %v2853_v57, 0.0  ;;  %v153_v21 = vadd.f32 %v149_v10, %v93_v51 }
 0x125   :  { %1181 = vrot.lane.b32.xlu1 %v2710_v12, %s1836_s10  ;;  %1179 = vrot.lane.b32.xlu0 %v2715_v28, %s1836_s10  ;;  %4493 = vst [vmem:[#allocation61_spill] sm:$0xff] %v2931_v25  ;;  %v423_v43 = vand.u32 2147483647, %v1681_v2  ;;  %v2940_v49 = vadd.f32 %v894_v11, %v2625_v52  ;;  %v895_v61 = vmul.f32 %v2286_v53, %v889_v27  ;;  %v1687_v10 = vadd.f32 -11.0, %v2465_v56 }
 0x126   :  { %v121_v60 = vmul.f32 %v2522_v0, %v4491_v24  ;;  %v4494_v24 = vmax.f32 %v2868_v26, 0.0  ;;  %v2937_v41 = vsub.f32 1.0, %v351_v31  ;;  %v2943_v18 = vadd.f32 %v893_v13, %v2647_v44 }
 0x127   :  { %v2905_v8 = vpop.permute.xlu1 %943  ;;  %v2907_v40 = vpop.permute.xlu0 %941  ;;  %v586_v51 = vadd.f32 %v582_v47, %v514_v3  ;;  %v2951_v9 = vsub.f32 1.0, %v387_v35  ;;  %v4497_v52 = vmax.f32 %v2895_v15, 0.0  ;;  %v4349_v44 = vmax.f32 %v2931_v25, 0.0  ;;  %v4508_v15 = vld [vmem:[#allocation22_spill] sm:$0xff] }
 0x128   :  { %v221_v58 = vmul.f32 %v2573_v39, %v4494_v24  ;;  %4495 = vst [vmem:[#allocation62_spill] sm:$0xff] %v2937_v41  ;;  %v622_v24 = vadd.f32 %v618_v46, %v550_v1  ;;  %v189_v26 = vadd.f32 %v185_v29, %v121_v60  ;;  %v2961_v31 = vsub.f32 1.0, %v423_v43 }
 0x129   :  { %1185 = vrot.lane.b32.xlu1 %v2761_v23, %s1836_s10  ;;  %1183 = vrot.lane.b32.xlu0 %v2766_v20, %s1836_s10  ;;  %4496 = vst [vmem:[#allocation63_spill] sm:$0xff] %v2951_v9  ;;  %v257_v53 = vmul.f32 %v2577_v19, %v4497_v52  ;;  %v1693_v3 = vadd.f32 -12.0, %v2465_v56  ;;  %v2965_v11 = vadd.f32 %v896_v37, %v2685_v59  ;;  %v4499_v1 = vmax.f32 %v2902_v50, 0.0  ;;  %v4502_v52 = vld [vmem:[#allocation27_spill] sm:$0xff]  ;;  %s1632_s10 = sld [smem:[#allocation5 + $0x11]] }
 0x12a   :  { %4498 = vst [vmem:[#allocation64_spill] sm:$0xff] %v2961_v31  ;;  %v225_v13 = vadd.f32 %v221_v58, %v153_v21  ;;  %v2972_v27 = vadd.f32 %v895_v61, %v2753_v7  ;;  %v459_v35 = vand.u32 2147483647, %v1687_v10  ;;  %v1699_v43 = vadd.f32 -13.0, %v2465_v56  ;;  %v4504_v58 = vld [vmem:[#allocation30_spill] sm:$0xff] }
 0x12b   :  { %v2946_v33 = vpop.permute.xlu1 %947  ;;  %v2948_v2 = vpop.permute.xlu0 %945  ;;  %v293_v47 = vmul.f32 %v2639_v34, %v4499_v1  ;;  %v4503_v59 = vmax.f32 %v4502_v52, 0.0  ;;  %v919_v21 = vsel %vm901_vm8, %v2666_v22, %v2772_v4  ;;  %v918_v7 = vsel %vm901_vm8, %v4504_v58, %v2774_v17  ;;  %v4505_v52 = vld [vmem:[#allocation16_spill] sm:$0xff] }
 0x12c   :  { %4500 = vst [vmem:[#allocation65_spill] sm:$0xff] %v2972_v27  ;;  %v1705_v10 = vadd.f32 -14.0, %v2465_v56  ;;  %v261_v1 = vadd.f32 %v257_v53, %v189_v26  ;;  %v329_v22 = vmul.f32 %v4505_v52, %v4349_v44  ;;  %v4354_v4 = vmax.f32 %v2961_v31, 0.0 }
 0x12d   :  { %1203 = vrot.lane.b32.xlu1 %v2601_v63, %s1837_s11  ;;  %1201 = vrot.lane.b32.xlu0 %v2606_v6, %s1837_s11  ;;  %v2981_v37 = vmin.f32 %v4503_v59, 15.0  ;;  %v495_v59 = vand.u32 2147483647, %v1693_v3  ;;  %v3001_v46 = vadd.f32 %v622_v24, %v586_v51  ;;  %v297_v17 = vadd.f32 %v293_v47, %v225_v13 }
 0x12e   :  { %v4507_v58 = vmax.f32 %v2937_v41, 0.0  ;;  %v1711_v50 = vadd.f32 -15.0, %v2465_v56  ;;  %v925_v57 = vmul.f32 %v4508_v15, %v919_v21  ;;  %v3012_v53 = vsub.f32 1.0, %v459_v35  ;;  %v4513_v21 = vld [vmem:[#allocation32_spill] sm:$0xff]  ;;  %v4516_v41 = vld [vmem:[#allocation33_spill] sm:$0xff] }
 0x12f   :  { %v2974_v60 = vpop.permute.xlu1 %966  ;;  %v2976_v29 = vpop.permute.xlu0 %964  ;;  %4506 = vst [vmem:[#allocation27_spill] sm:$0xff] %v3001_v46  ;;  %v531_v44 = vand.u32 2147483647, %v1699_v43  ;;  %v1630_v3 = vadd.f32 -1.0, %v2981_v37  ;;  %v924_v51 = vmul.f32 %v4508_v15, %v918_v7  ;;  %v567_v24 = vand.u32 2147483647, %v1705_v10 }
 0x130   :  { %4501 = vst [vmem:[#allocation66_spill] sm:$0xff] %v2976_v29  ;;  %v365_v61 = vmul.f32 %v2692_v16, %v4507_v58  ;;  %4511 = vst [vmem:[#allocation22_spill] sm:$0xff] %v3012_v53  ;;  %v1636_v13 = vadd.f32 -2.0, %v2981_v37  ;;  %v1642_v47 = vadd.f32 -3.0, %v2981_v37  ;;  %v333_v56 = vadd.f32 %v329_v22, %v261_v1  ;;  %v4515_v58 = vld [vmem:[#allocation45_spill] sm:$0xff]  ;;  %v4517_v46 = vld [vmem:[#allocation46_spill] sm:$0xff] }
 0x131   :  { %1207 = vrot.lane.b32.xlu1 %v2653_v36, %s1837_s11  ;;  %1205 = vrot.lane.b32.xlu0 %v2658_v14, %s1837_s11  ;;  %v4512_v35 = vmax.f32 %v2951_v9, 0.0  ;;  %v437_v7 = vmul.f32 %v2770_v45, %v4354_v4  ;;  %v3028_v10 = vsub.f32 1.0, %v495_v59  ;;  %v921_v25 = vsel %vm901_vm8, %v4516_v41, %v4515_v58 }
 0x132   :  { %v369_v22 = vadd.f32 %v365_v61, %v297_v17  ;;  %v603_v9 = vand.u32 2147483647, %v1711_v50  ;;  %v4359_v59 = vmax.f32 %v3012_v53, 0.0  ;;  %v3044_v4 = vsub.f32 1.0, %v531_v44  ;;  %v4521_v50 = vld [vmem:[#allocation37_spill] sm:$0xff] }
 0x133   :  { %v3008_v27 = vpop.permute.xlu1 %970  ;;  %v3010_v26 = vpop.permute.xlu0 %968  ;;  %v401_v43 = vmul.f32 %v4513_v21, %v4512_v35  ;;  %4514 = vst [vmem:[#allocation67_spill] sm:$0xff] %v3028_v10  ;;  %v110_v41 = vand.u32 2147483647, %v1630_v3  ;;  %v3047_v58 = vsub.f32 1.0, %v567_v24  ;;  %v138_v45 = vand.u32 2147483647, %v1636_v13 }
 0x134   :  { %4509 = vst [vmem:[#allocation30_spill] sm:$0xff] %v3008_v27  ;;  %4510 = vst [vmem:[#allocation16_spill] sm:$0xff] %v3010_v26  ;;  %v4518_v26 = vld [vmem:[#allocation34_spill] sm:$0xff]  ;;  %v82_v27 = vand.u32 2147483647, %v2981_v37  ;;  %v3051_v61 = vadd.f32 %v925_v57, %v4521_v50  ;;  %v927_v17 = vmul.f32 %v4508_v15, %v921_v25  ;;  %v441_v13 = vadd.f32 %v437_v7, %v369_v22  ;;  %v4524_v25 = vld [vmem:[#allocation41_spill] sm:$0xff] }
 0x135   :  { %1211 = vrot.lane.b32.xlu1 %v2710_v12, %s1837_s11  ;;  %1209 = vrot.lane.b32.xlu0 %v2715_v28, %s1837_s11  ;;  %v920_v1 = vsel %vm901_vm8, %v4518_v26, %v4517_v46  ;;  %4519 = vst [vmem:[#allocation45_spill] sm:$0xff] %v3044_v4  ;;  %4520 = vst [vmem:[#allocation33_spill] sm:$0xff] %v3047_v58  ;;  %v174_v21 = vand.u32 2147483647, %v1642_v47  ;;  %v1648_v46 = vadd.f32 -4.0, %v2981_v37  ;;  %v1654_v26 = vadd.f32 -5.0, %v2981_v37 }
 0x136   :  { %4522 = vst [vmem:[#allocation46_spill] sm:$0xff] %v3051_v61  ;;  %v926_v3 = vmul.f32 %v4508_v15, %v920_v1  ;;  %v405_v24 = vadd.f32 %v401_v43, %v333_v56  ;;  %v3061_v47 = vsub.f32 1.0, %v603_v9  ;;  %v473_v61 = vmul.f32 %v4524_v25, %v4359_v59  ;;  %v4532_v15 = vld [vmem:[#allocation43_spill] sm:$0xff] }
 0x137   :  { %v3039_v35 = vpop.permute.xlu1 %974  ;;  %v3041_v31 = vpop.permute.xlu0 %972  ;;  %v3071_v29 = vsub.f32 1.0, %v82_v27  ;;  %v3073_v44 = vsub.f32 1.0, %v110_v41  ;;  %v3076_v56 = vsub.f32 1.0, %v138_v45  ;;  %v3078_v9 = vsub.f32 1.0, %v174_v21  ;;  %v4530_v45 = vld [vmem:[#allocation40_spill] sm:$0xff]  ;;  %v4531_v21 = vld [vmem:[#allocation42_spill] sm:$0xff] }
 0x138   :  { %4523 = vst [vmem:[#allocation34_spill] sm:$0xff] %v3061_v47  ;;  %v210_v43 = vand.u32 2147483647, %v1648_v46  ;;  %v4529_v7 = vmax.f32 %v3028_v10, 0.0  ;;  %v246_v1 = vand.u32 2147483647, %v1654_v26  ;;  %v3090_v59 = vadd.f32 %v924_v51, %v4530_v45 }
 0x139   :  { %1215 = vrot.lane.b32.xlu1 %v2761_v23, %s1837_s11  ;;  %1213 = vrot.lane.b32.xlu0 %v2766_v20, %s1837_s11  ;;  %4525 = vst [vmem:[#allocation37_spill] sm:$0xff] %v3071_v29  ;;  %4526 = vst [vmem:[#allocation68_spill] sm:$0xff] %v3073_v44  ;;  %v1660_v22 = vadd.f32 -6.0, %v2981_v37  ;;  %v1666_v41 = vadd.f32 -7.0, %v2981_v37  ;;  %v3093_v46 = vadd.f32 %v927_v17, %v4531_v21  ;;  %v4536_v17 = vmax.f32 %v3047_v58, 0.0  ;;  %v4539_v21 = vld [vmem:[#allocation52_spill] sm:$0xff] }
 0x13a   :  { %4527 = vst [vmem:[#allocation69_spill] sm:$0xff] %v3076_v56  ;;  %4528 = vst [vmem:[#allocation70_spill] sm:$0xff] %v3078_v9  ;;  %v509_v27 = vmul.f32 %v2801_v54, %v4529_v7  ;;  %v3096_v16 = vadd.f32 %v926_v3, %v4532_v15  ;;  %v477_v26 = vadd.f32 %v473_v61, %v405_v24  ;;  %v4535_v7 = vmax.f32 %v3044_v4, 0.0  ;;  %s1638_s11 = sld [smem:[#allocation5 + $0x12]] }
 0x13b   :  { %v3063_v57 = vpop.permute.xlu1 %978  ;;  %v3065_v50 = vpop.permute.xlu0 %976  ;;  %v581_v3 = vmul.f32 %v2827_v38, %v4536_v17  ;;  %v3113_v53 = vsub.f32 1.0, %v210_v43  ;;  %v3119_v24 = vsub.f32 1.0, %v246_v1  ;;  %v318_v45 = vand.u32 2147483647, %v1666_v41 }
 0x13c   :  { %4533 = vst [vmem:[#allocation40_spill] sm:$0xff] %v3096_v16  ;;  %v545_v54 = vmul.f32 %v2816_v55, %v4535_v7  ;;  %v513_v61 = vadd.f32 %v509_v27, %v441_v13  ;;  %v282_v7 = vand.u32 2147483647, %v1660_v22  ;;  %v950_v17 = vsel %vm932_vm9, %v2838_v5, %v2905_v8  ;;  %v4541_v27 = vld [vmem:[#allocation57_spill] sm:$0xff] }
 0x13d   :  { %1233 = vrot.lane.b32.xlu1 %v2601_v63, %s1838_s12  ;;  %1231 = vrot.lane.b32.xlu0 %v2606_v6, %s1838_s12  ;;  %4537 = vst [vmem:[#allocation43_spill] sm:$0xff] %v3113_v53  ;;  %4538 = vst [vmem:[#allocation71_spill] sm:$0xff] %v3119_v24  ;;  %v949_v43 = vsel %vm932_vm9, %v4539_v21, %v2907_v40  ;;  %v4540_v15 = vmax.f32 %v3061_v47, 0.0  ;;  %v1672_v13 = vadd.f32 -8.0, %v2981_v37  ;;  %v4544_v40 = vmax.f32 %v3071_v29, 0.0 }
 0x13e   :  { %v952_v1 = vsel %vm932_vm9, %v4541_v27, %v2946_v33  ;;  %v549_v8 = vadd.f32 %v545_v54, %v477_v26  ;;  %v4546_v47 = vmax.f32 %v3076_v56, 0.0  ;;  %v4547_v33 = vmax.f32 %v3078_v9, 0.0  ;;  %v4550_v9 = vld [vmem:[#allocation23_spill] sm:$0xff] }
 0x13f   :  { %v3099_v25 = vpop.permute.xlu1 %997  ;;  %v3101_v10 = vpop.permute.xlu0 %995  ;;  %v617_v51 = vmul.f32 %v2830_v32, %v4540_v15  ;;  %v96_v41 = vmul.f32 %v2511_v42, %v4544_v40  ;;  %v4545_v15 = vmax.f32 %v3073_v44, 0.0  ;;  %v1678_v54 = vadd.f32 -9.0, %v2981_v37  ;;  %v4551_v44 = vld [vmem:[#allocation14_spill] sm:$0xff] }
 0x140   :  { %4534 = vst [vmem:[#allocation42_spill] sm:$0xff] %v3101_v10  ;;  %v152_v58 = vmul.f32 %v2525_v30, %v4546_v47  ;;  %v188_v27 = vmul.f32 %v2534_v62, %v4547_v33  ;;  %v3161_v40 = vsub.f32 1.0, %v282_v7  ;;  %v1684_v47 = vadd.f32 -10.0, %v2981_v37 }
 0x141   :  { %1237 = vrot.lane.b32.xlu1 %v2653_v36, %s1838_s12  ;;  %1235 = vrot.lane.b32.xlu0 %v2658_v14, %s1838_s12  ;;  %v124_v21 = vmul.f32 %v2522_v0, %v4545_v15  ;;  %v3163_v15 = vsub.f32 1.0, %v318_v45  ;;  %v956_v33 = vmul.f32 %v4550_v9, %v950_v17  ;;  %v955_v4 = vmul.f32 %v4550_v9, %v949_v43 }
 0x142   :  { %4548 = vst [vmem:[#allocation72_spill] sm:$0xff] %v3161_v40  ;;  %v354_v56 = vand.u32 2147483647, %v1672_v13  ;;  %v4552_v29 = vmax.f32 %v4551_v44, 0.0  ;;  %v958_v32 = vmul.f32 %v4550_v9, %v952_v1  ;;  %v621_v17 = vadd.f32 %v617_v51, %v549_v8 }
 0x143   :  { %v3138_v22 = vpop.permute.xlu1 %1001  ;;  %v3140_v5 = vpop.permute.xlu0 %999  ;;  %4549 = vst [vmem:[#allocation73_spill] sm:$0xff] %v3163_v15  ;;  %v156_v10 = vadd.f32 %v152_v58, %v96_v41  ;;  %v192_v43 = vadd.f32 %v188_v27, %v124_v21  ;;  %v4554_v13 = vmax.f32 %v3113_v53, 0.0  ;;  %v390_v44 = vand.u32 2147483647, %v1678_v54 }
 0x144   :  { %4542 = vst [vmem:[#allocation52_spill] sm:$0xff] %v3138_v22  ;;  %4543 = vst [vmem:[#allocation57_spill] sm:$0xff] %v3140_v5  ;;  %v3170_v16 = vmin.f32 %v4552_v29, 15.0  ;;  %v4553_v5 = vld [vmem:[#allocation58_spill] sm:$0xff]  ;;  %v585_v22 = vadd.f32 %v581_v3, %v513_v61  ;;  %v4374_v3 = vmax.f32 %v3161_v40, 0.0  ;;  %v4373_v58 = vmax.f32 %v3163_v15, 0.0 }
 0x145   :  { %1241 = vrot.lane.b32.xlu1 %v2710_v12, %s1838_s12  ;;  %1239 = vrot.lane.b32.xlu0 %v2715_v28, %s1838_s12  ;;  %v951_v7 = vsel %vm932_vm9, %v4553_v5, %v2948_v2  ;;  %v224_v29 = vmul.f32 %v2573_v39, %v4554_v13  ;;  %v4555_v2 = vmax.f32 %v3119_v24, 0.0  ;;  %v426_v51 = vand.u32 2147483647, %v1684_v47  ;;  %v4565_v15 = vld [vmem:[#allocation65_spill] sm:$0xff] }
 0x146   :  { %v3194_v61 = vadd.f32 %v956_v33, %v2940_v49  ;;  %v3197_v5 = vadd.f32 %v955_v4, %v2943_v18  ;;  %v3199_v8 = vsub.f32 1.0, %v354_v56  ;;  %v1690_v41 = vadd.f32 -11.0, %v2981_v37 }
 0x147   :  { %v3177_v45 = vpop.permute.xlu1 %1005  ;;  %v3179_v26 = vpop.permute.xlu0 %1003  ;;  %v260_v1 = vmul.f32 %v2577_v19, %v4555_v2  ;;  %v3206_v54 = vadd.f32 %v621_v17, %v585_v22  ;;  %v1629_v13 = vadd.f32 -1.0, %v3170_v16  ;;  %v1635_v47 = vadd.f32 -2.0, %v3170_v16 }
 0x148   :  { %4556 = vst [vmem:[#allocation23_spill] sm:$0xff] %v3194_v61  ;;  %4557 = vst [vmem:[#allocation14_spill] sm:$0xff] %v3197_v5  ;;  %v1641_v49 = vadd.f32 -3.0, %v3170_v16  ;;  %v3212_v33 = vadd.f32 %v958_v32, %v2965_v11  ;;  %v957_v18 = vmul.f32 %v4550_v9, %v951_v7  ;;  %v228_v4 = vadd.f32 %v224_v29, %v156_v10  ;;  %v4563_v29 = vld [vmem:[#allocation66_spill] sm:$0xff] }
 0x149   :  { %1245 = vrot.lane.b32.xlu1 %v2761_v23, %s1838_s12  ;;  %1243 = vrot.lane.b32.xlu0 %v2766_v20, %s1838_s12  ;;  %4558 = vst [vmem:[#allocation58_spill] sm:$0xff] %v3199_v8  ;;  %4559 = vst [vmem:[#allocation74_spill] sm:$0xff] %v3206_v54  ;;  %v3215_v56 = vsub.f32 1.0, %v390_v44  ;;  %v264_v22 = vadd.f32 %v260_v1, %v192_v43  ;;  %v296_v17 = vmul.f32 %v2639_v34, %v4374_v3  ;;  %s1644_s12 = sld [smem:[#allocation5 + $0x13]] }
 0x14a   :  { %4560 = vst [vmem:[#allocation75_spill] sm:$0xff] %v3212_v33  ;;  %v332_v32 = vmul.f32 %v4505_v52, %v4373_v58  ;;  %v3227_v11 = vsub.f32 1.0, %v426_v51  ;;  %v981_v10 = vsel %vm963_vm10, %v2974_v60, %v3039_v35  ;;  %v4380_v9 = vmax.f32 %v3199_v8, 0.0  ;;  %v4568_v60 = vld [vmem:[#allocation31_spill] sm:$0xff]  ;;  %v4581_v33 = vld [vmem:[#allocation16_spill] sm:$0xff] }
 0x14b   :  { %v3202_v21 = vpop.permute.xlu1 %1009  ;;  %v3204_v27 = vpop.permute.xlu0 %1007  ;;  %4561 = vst [vmem:[#allocation76_spill] sm:$0xff] %v3215_v56  ;;  %v462_v7 = vand.u32 2147483647, %v1690_v41  ;;  %v81_v43 = vand.u32 2147483647, %v3170_v16  ;;  %v980_v44 = vsel %vm963_vm10, %v4563_v29, %v3041_v31  ;;  %v3244_v40 = vadd.f32 %v957_v18, %v4565_v15  ;;  %v4567_v15 = vld [vmem:[#allocation24_spill] sm:$0xff] }
 0x14c   :  { %4562 = vst [vmem:[#allocation77_spill] sm:$0xff] %v3227_v11  ;;  %v109_v51 = vand.u32 2147483647, %v1629_v13  ;;  %v137_v58 = vand.u32 2147483647, %v1635_v47  ;;  %v1647_v35 = vadd.f32 -4.0, %v3170_v16  ;;  %v300_v31 = vadd.f32 %v296_v17, %v228_v4 }
 0x14d   :  { %1263 = vrot.lane.b32.xlu1 %v2601_v63, %s1839_s13  ;;  %1261 = vrot.lane.b32.xlu0 %v2606_v6, %s1839_s13  ;;  %v173_v3 = vand.u32 2147483647, %v1641_v49  ;;  %4566 = vst [vmem:[#allocation65_spill] sm:$0xff] %v3244_v40  ;;  %v1653_v41 = vadd.f32 -5.0, %v3170_v16  ;;  %v336_v29 = vadd.f32 %v332_v32, %v264_v22  ;;  %v1696_v47 = vadd.f32 -12.0, %v2981_v37 }
 0x14e   :  { %v987_v49 = vmul.f32 %v4567_v15, %v981_v10  ;;  %v986_v18 = vmul.f32 %v4567_v15, %v980_v44  ;;  %v368_v24 = vmul.f32 %v4568_v60, %v4380_v9  ;;  %v3260_v53 = vsub.f32 1.0, %v462_v7  ;;  %v4574_v44 = vld [vmem:[#allocation32_spill] sm:$0xff] }
 0x14f   :  { %v3239_v2 = vpop.permute.xlu1 %1028  ;;  %v3241_v1 = vpop.permute.xlu0 %1026  ;;  %v3266_v4 = vsub.f32 1.0, %v81_v43  ;;  %v3268_v22 = vsub.f32 1.0, %v109_v51  ;;  %v3270_v17 = vsub.f32 1.0, %v137_v58  ;;  %v3272_v32 = vsub.f32 1.0, %v173_v3  ;;  %v4576_v58 = vld [vmem:[#allocation38_spill] sm:$0xff] }
 0x150   :  { %4564 = vst [vmem:[#allocation66_spill] sm:$0xff] %v3241_v1  ;;  %4569 = vst [vmem:[#allocation24_spill] sm:$0xff] %v3260_v53  ;;  %v4573_v10 = vmax.f32 %v3215_v56, 0.0  ;;  %v209_v8 = vand.u32 2147483647, %v1647_v35  ;;  %v1659_v7 = vadd.f32 -6.0, %v3170_v16 }
 0x151   :  { %1267 = vrot.lane.b32.xlu1 %v2653_v36, %s1839_s13  ;;  %1265 = vrot.lane.b32.xlu0 %v2658_v14, %s1839_s13  ;;  %4572 = vst [vmem:[#allocation79_spill] sm:$0xff] %v3266_v4  ;;  %v245_v9 = vand.u32 2147483647, %v1653_v41  ;;  %v4575_v43 = vmax.f32 %v3227_v11, 0.0  ;;  %v498_v3 = vand.u32 2147483647, %v1696_v47  ;;  %v982_v47 = vsel %vm963_vm10, %v4581_v33, %v3065_v50 }
 0x152   :  { %v404_v13 = vmul.f32 %v4574_v44, %v4573_v10  ;;  %v1702_v56 = vadd.f32 -13.0, %v2981_v37  ;;  %v1665_v10 = vadd.f32 -7.0, %v3170_v16  ;;  %v4577_v35 = vld [vmem:[#allocation46_spill] sm:$0xff]  ;;  %v4585_v50 = vmax.f32 %v3266_v4, 0.0 }
 0x153   :  { %v3262_v54 = vpop.permute.xlu1 %1032  ;;  %v3264_v40 = vpop.permute.xlu0 %1030  ;;  %v3285_v51 = vmul.f32 %v4576_v58, %v4575_v43  ;;  %v3290_v41 = vadd.f32 %v987_v49, %v4577_v35  ;;  %v3304_v49 = vsub.f32 1.0, %v209_v8  ;;  %v3306_v35 = vsub.f32 1.0, %v245_v9 }
 0x154   :  { %4570 = vst [vmem:[#allocation31_spill] sm:$0xff] %v3262_v54  ;;  %4571 = vst [vmem:[#allocation78_spill] sm:$0xff] %v3264_v40  ;;  %v3293_v40 = vadd.f32 %v986_v18, %v3090_v59  ;;  %v372_v54 = vadd.f32 %v368_v24, %v300_v31  ;;  %v281_v59 = vand.u32 2147483647, %v1659_v7  ;;  %v1671_v24 = vadd.f32 -8.0, %v3170_v16  ;;  %v4580_v31 = vld [vmem:[#allocation30_spill] sm:$0xff] }
 0x155   :  { %1271 = vrot.lane.b32.xlu1 %v2710_v12, %s1839_s13  ;;  %1269 = vrot.lane.b32.xlu0 %v2715_v28, %s1839_s13  ;;  %4578 = vst [vmem:[#allocation32_spill] sm:$0xff] %v3290_v41  ;;  %v983_v18 = vsel %vm963_vm10, %v4580_v31, %v3063_v57  ;;  %v317_v8 = vand.u32 2147483647, %v1665_v10  ;;  %v1677_v9 = vadd.f32 -9.0, %v3170_v16  ;;  %v3322_v7 = vadd.f32 %v404_v13, %v336_v29 }
 0x156   :  { %4579 = vst [vmem:[#allocation38_spill] sm:$0xff] %v3293_v40  ;;  %v3324_v1 = vsub.f32 1.0, %v498_v3  ;;  %v534_v61 = vand.u32 2147483647, %v1702_v56  ;;  %v1708_v57 = vadd.f32 -14.0, %v2981_v37  ;;  %v95_v33 = vmul.f32 %v2511_v42, %v4585_v50 }
 0x157   :  { %v3296_v5 = vpop.permute.xlu1 %1036  ;;  %v3298_v11 = vpop.permute.xlu0 %1034  ;;  %v4586_v40 = vmax.f32 %v3268_v22, 0.0  ;;  %v4587_v29 = vmax.f32 %v3270_v17, 0.0  ;;  %v4588_v56 = vmax.f32 %v3272_v32, 0.0  ;;  %v3345_v41 = vsub.f32 1.0, %v281_v59 }
 0x158   :  { %4582 = vst [vmem:[#allocation46_spill] sm:$0xff] %v3324_v1  ;;  %v353_v4 = vand.u32 2147483647, %v1671_v24  ;;  %v989_v42 = vmul.f32 %v4567_v15, %v983_v18  ;;  %v4387_v59 = vmax.f32 %v3324_v1, 0.0  ;;  %v1714_v24 = vadd.f32 -15.0, %v2981_v37 }
 0x159   :  { %1275 = vrot.lane.b32.xlu1 %v2761_v23, %s1839_s13  ;;  %1273 = vrot.lane.b32.xlu0 %v2766_v20, %s1839_s13  ;;  %v123_v10 = vmul.f32 %v2522_v0, %v4586_v40  ;;  %v151_v13 = vmul.f32 %v2525_v30, %v4587_v29  ;;  %v187_v3 = vmul.f32 %v2534_v62, %v4588_v56  ;;  %v3352_v0 = vsub.f32 1.0, %v317_v8  ;;  %s1650_s13 = sld [smem:[#allocation5 + $0x14]] }
 0x15a   :  { %4589 = vst [vmem:[#allocation80_spill] sm:$0xff] %v3345_v41  ;;  %v389_v30 = vand.u32 2147483647, %v1677_v9  ;;  %v1683_v62 = vadd.f32 -10.0, %v3170_v16  ;;  %v3356_v40 = vmul.f32 %v4567_v15, %v982_v47  ;;  %v1689_v18 = vadd.f32 -11.0, %v3170_v16 }
 0x15b   :  { %v3327_v31 = vpop.permute.xlu1 %1040  ;;  %v3329_v43 = vpop.permute.xlu0 %1038  ;;  %4590 = vst [vmem:[#allocation81_spill] sm:$0xff] %v3352_v0  ;;  %v3365_v29 = vsub.f32 1.0, %v534_v61  ;;  %v155_v8 = vadd.f32 %v151_v13, %v95_v33  ;;  %v191_v9 = vadd.f32 %v187_v3, %v123_v10  ;;  %v3375_v56 = vsub.f32 1.0, %v353_v4  ;;  %v4595_v10 = vld [vmem:[#allocation41_spill] sm:$0xff] }
 0x15c   :  { %4583 = vst [vmem:[#allocation30_spill] sm:$0xff] %v3327_v31  ;;  %4584 = vst [vmem:[#allocation16_spill] sm:$0xff] %v3329_v43  ;;  %v4385_v31 = vmax.f32 %v3304_v49, 0.0  ;;  %v4384_v43 = vmax.f32 %v3306_v35, 0.0  ;;  %v1695_v33 = vadd.f32 -12.0, %v3170_v16  ;;  %v4594_v4 = vmax.f32 %v3260_v53, 0.0 }
 0x15d   :  { %1293 = vrot.lane.b32.xlu1 %v2601_v63, %s1840_s14  ;;  %1291 = vrot.lane.b32.xlu0 %v2606_v6, %s1840_s14  ;;  %4591 = vst [vmem:[#allocation82_spill] sm:$0xff] %v3365_v29  ;;  %v570_v6 = vand.u32 2147483647, %v1708_v57  ;;  %4592 = vst [vmem:[#allocation83_spill] sm:$0xff] %v3375_v56  ;;  %v3383_v57 = vsub.f32 1.0, %v389_v30 }
 0x15e   :  { %v223_v15 = vmul.f32 %v2573_v39, %v4385_v31  ;;  %v259_v37 = vmul.f32 %v2577_v19, %v4384_v43  ;;  %v425_v39 = vand.u32 2147483647, %v1683_v62  ;;  %v444_v19 = vadd.f32 %v3285_v51, %v372_v54 }
 0x15f   :  { %v3361_v50 = vpop.permute.xlu1 %1059  ;;  %v3363_v63 = vpop.permute.xlu0 %1057  ;;  %4593 = vst [vmem:[#allocation84_spill] sm:$0xff] %v3383_v57  ;;  %v476_v13 = vmul.f32 %v4595_v10, %v4594_v4  ;;  %v461_v3 = vand.u32 2147483647, %v1689_v18  ;;  %v1701_v43 = vadd.f32 -13.0, %v3170_v16  ;;  %v3399_v61 = vsub.f32 1.0, %v570_v6 }
 0x160   :  { %v606_v54 = vand.u32 2147483647, %v1714_v24  ;;  %v227_v51 = vadd.f32 %v223_v15, %v155_v8  ;;  %v263_v47 = vadd.f32 %v259_v37, %v191_v9  ;;  %v4598_v4 = vmax.f32 %v3345_v41, 0.0  ;;  %v4620_v41 = vld [vmem:[#allocation65_spill] sm:$0xff] }
 0x161   :  { %1297 = vrot.lane.b32.xlu1 %v2653_v36, %s1840_s14  ;;  %1295 = vrot.lane.b32.xlu0 %v2658_v14, %s1840_s14  ;;  %v4596_v14 = vld [vmem:[#allocation44_spill] sm:$0xff]  ;;  %4597 = vst [vmem:[#allocation41_spill] sm:$0xff] %v3399_v61  ;;  %v3413_v8 = vsub.f32 1.0, %v425_v39  ;;  %v497_v9 = vand.u32 2147483647, %v1695_v33  ;;  %v3415_v15 = vsub.f32 1.0, %v461_v3  ;;  %v480_v1 = vadd.f32 %v476_v13, %v3322_v7 }
 0x162   :  { %v512_v30 = vmul.f32 %v4596_v14, %v4387_v59  ;;  %v295_v18 = vmul.f32 %v2639_v34, %v4598_v4  ;;  %v4599_v59 = vmax.f32 %v3352_v0, 0.0  ;;  %v533_v34 = vand.u32 2147483647, %v1701_v43 }
 0x163   :  { %v3391_v36 = vpop.permute.xlu1 %1063  ;;  %v3393_v31 = vpop.permute.xlu0 %1061  ;;  %4600 = vst [vmem:[#allocation44_spill] sm:$0xff] %v3413_v8  ;;  %4601 = vst [vmem:[#allocation85_spill] sm:$0xff] %v3415_v15  ;;  %v1707_v37 = vadd.f32 -14.0, %v3170_v16  ;;  %v1713_v4 = vadd.f32 -15.0, %v3170_v16  ;;  %v4390_v39 = vmax.f32 %v3399_v61, 0.0  ;;  %v3428_v33 = vsub.f32 1.0, %v606_v54 }
 0x164   :  { %v331_v6 = vmul.f32 %v4505_v52, %v4599_v59  ;;  %v4602_v52 = vmax.f32 %v3365_v29, 0.0  ;;  %v3431_v43 = vadd.f32 %v989_v42, %v3093_v46  ;;  %v516_v3 = vadd.f32 %v512_v30, %v444_v19  ;;  %v4617_v61 = vld [vmem:[#allocation23_spill] sm:$0xff] }
 0x165   :  { %1301 = vrot.lane.b32.xlu1 %v2710_v12, %s1840_s14  ;;  %1299 = vrot.lane.b32.xlu0 %v2715_v28, %s1840_s14  ;;  %4603 = vst [vmem:[#allocation86_spill] sm:$0xff] %v3428_v33  ;;  %v299_v24 = vadd.f32 %v295_v18, %v227_v51  ;;  %v4604_v16 = vmax.f32 %v3375_v56, 0.0  ;;  %v4605_v46 = vmax.f32 %v3383_v57, 0.0  ;;  %v4391_v19 = vmax.f32 %v3413_v8, 0.0  ;;  %v4619_v57 = vld [vmem:[#allocation75_spill] sm:$0xff] }
 0x166   :  { %v548_v59 = vmul.f32 %v2816_v55, %v4602_v52  ;;  %v335_v7 = vadd.f32 %v331_v6, %v263_v47  ;;  %v3447_v13 = vsub.f32 1.0, %v497_v9  ;;  %v3450_v30 = vsub.f32 1.0, %v533_v34  ;;  %v4607_v34 = vld [vmem:[#allocation42_spill] sm:$0xff] }
 0x167   :  { %v3419_v53 = vpop.permute.xlu1 %1067  ;;  %v3421_v62 = vpop.permute.xlu0 %1065  ;;  %v367_v0 = vmul.f32 %v4568_v60, %v4604_v16  ;;  %v403_v42 = vmul.f32 %v4574_v44, %v4605_v46  ;;  %v4392_v60 = vmax.f32 %v3415_v15, 0.0  ;;  %v569_v54 = vand.u32 2147483647, %v1707_v37  ;;  %v3483_v16 = vld [vmem:[%s4303_s2 + $0x31] sm:$0xff] }
 0x168   :  { %4606 = vst [vmem:[#allocation87_spill] sm:$0xff] %v3447_v13  ;;  %v605_v51 = vand.u32 2147483647, %v1713_v4  ;;  %v1012_v18 = vsel %vm994_vm11, %v3099_v25, %v3177_v45  ;;  %v552_v44 = vadd.f32 %v548_v59, %v480_v1  ;;  %v584_v9 = vmul.f32 %v2827_v38, %v4390_v39  ;;  %v4608_v4 = vld [vmem:[#allocation52_spill] sm:$0xff]  ;;  %v4609_v45 = vld [vmem:[#allocation57_spill] sm:$0xff]  ;;  %v4618_v15 = vld [vmem:[#allocation14_spill] sm:$0xff] }
 0x169   :  { %1305 = vrot.lane.b32.xlu1 %v2761_v23, %s1840_s14  ;;  %1303 = vrot.lane.b32.xlu0 %v2766_v20, %s1840_s14  ;;  %v4394_v52 = vmax.f32 %v3428_v33, 0.0  ;;  %v1011_v37 = vsel %vm994_vm11, %v4607_v34, %v3179_v26  ;;  %v1014_v25 = vsel %vm994_vm11, %v4608_v4, %v3202_v21  ;;  %v1013_v1 = vsel %vm994_vm11, %v4609_v45, %v3204_v27  ;;  %v3490_v26 = vld [vmem:[%s4303_s2 + $0x29] sm:$0xff]  ;;  %v3525_v33 = vld [vmem:[%s4303_s2 + $0x41] sm:$0xff]  ;;  %s1656_s14 = sld [smem:[#allocation5 + $0x15]] }
 0x16a   :  { %v1043_v59 = vsel %vm1025_vm12, %v3239_v2, %v3296_v5  ;;  %v371_v21 = vadd.f32 %v367_v0, %v299_v24  ;;  %v407_v27 = vadd.f32 %v403_v42, %v335_v7  ;;  %v439_v5 = vmul.f32 %v4576_v58, %v4391_v19  ;;  %v4610_v39 = vld [vmem:[#allocation25_spill] sm:$0xff] }
 0x16b   :  { %v3456_v47 = vpop.permute.xlu1 %1071  ;;  %v3458_v6 = vpop.permute.xlu0 %1069  ;;  %v475_v46 = vmul.f32 %v4595_v10, %v4392_v60  ;;  %v3502_v4 = vsub.f32 1.0, %v569_v54  ;;  %v3504_v45 = vsub.f32 1.0, %v605_v51  ;;  %v1018_v0 = vmul.f32 %v4610_v39, %v1012_v18  ;;  %v4611_v19 = vld [vmem:[#allocation49_spill] sm:$0xff]  ;;  %v4612_v10 = vld [vmem:[#allocation40_spill] sm:$0xff]  ;;  %v4613_v51 = vld [vmem:[#allocation66_spill] sm:$0xff] }
 0x16c   :  { %v1017_v24 = vmul.f32 %v4610_v39, %v1011_v37  ;;  %v1020_v7 = vmul.f32 %v4610_v39, %v1014_v25  ;;  %v620_v2 = vmul.f32 %v4611_v19, %v4394_v52  ;;  %v992_v60 = vadd.f32 %v3356_v40, %v4612_v10  ;;  %v4614_v37 = vld [vmem:[#allocation11_spill] sm:$0xff] }
 0x16d   :  { %1323 = vrot.lane.b32.xlu1 %v3483_v16, %s1841_s15  ;;  %1321 = vrot.lane.b32.xlu0 %v3490_v26, %s1841_s15  ;;  %v1019_v54 = vmul.f32 %v4610_v39, %v1013_v1  ;;  %v1042_v18 = vsel %vm1025_vm12, %v4613_v51, %v3298_v11  ;;  %v3519_v34 = vadd.f32 %v584_v9, %v516_v3  ;;  %v3532_v40 = vld [vmem:[%s4303_s2 + $0x39] sm:$0xff]  ;;  %v1109_v11 = vstv %s3441_s24  ;;  %s1626_s24 = sld [smem:[#allocation5 + $0x10]] }
 0x16e   :  { %v1049_v25 = vmul.f32 %v4614_v37, %v1043_v59  ;;  %v443_v39 = vadd.f32 %v439_v5, %v371_v21  ;;  %v4615_v3 = vmax.f32 %v3447_v13, 0.0  ;;  %v479_v1 = vadd.f32 %v475_v46, %v407_v27 }
 0x16f   :  { %v1091_v58 = vpop.permute.xlu1 %1090  ;;  %v1089_v42 = vpop.permute.xlu0 %1088  ;;  %v4616_v59 = vmax.f32 %v3450_v30, 0.0  ;;  %v4404_v51 = vmax.f32 %v3502_v4, 0.0  ;;  %v4403_v52 = vmax.f32 %v3504_v45, 0.0  ;;  %v1022_v29 = vadd.f32 %v1018_v0, %v4617_v61  ;;  %v4623_v0 = vld [vmem:[#allocation31_spill] sm:$0xff] }
 0x170   :  { %v511_v9 = vmul.f32 %v4596_v14, %v4615_v3  ;;  %v1021_v8 = vadd.f32 %v1017_v24, %v4618_v15  ;;  %v1024_v56 = vadd.f32 %v1020_v7, %v4619_v57  ;;  %v624_v13 = vadd.f32 %v620_v2, %v552_v44  ;;  %v4621_v15 = vld [vmem:[#allocation32_spill] sm:$0xff]  ;;  %v4622_v57 = vld [vmem:[#allocation30_spill] sm:$0xff] }
 0x171   :  { %1327 = vrot.lane.b32.xlu1 %v3525_v33, %s1841_s15  ;;  %1325 = vrot.lane.b32.xlu0 %v3532_v40, %s1841_s15  ;;  %v547_v10 = vmul.f32 %v2816_v55, %v4616_v59  ;;  %v1023_v14 = vadd.f32 %v1019_v54, %v4620_v41  ;;  %v1048_v27 = vmul.f32 %v4614_v37, %v1042_v18  ;;  %v4624_v41 = vld [vmem:[#allocation16_spill] sm:$0xff]  ;;  %v4625_v2 = vld [vmem:[#allocation78_spill] sm:$0xff] }
 0x172   :  { %v1074_v55 = vsel %vm1056_vm13, %v3361_v50, %v3419_v53  ;;  %v1073_v61 = vsel %vm1056_vm13, %v3363_v63, %v3421_v62  ;;  %v1053_v46 = vadd.f32 %v1049_v25, %v4621_v15  ;;  %v1045_v44 = vsel %vm1025_vm12, %v4623_v0, %v4622_v57  ;;  %v4626_v7 = vld [vmem:[#allocation36_spill] sm:$0xff] }
 0x173   :  { %v1095_v21 = vpop.permute.xlu1 %1094  ;;  %v1093_v5 = vpop.permute.xlu0 %1092  ;;  %v1044_v24 = vsel %vm1025_vm12, %v4625_v2, %v4624_v41  ;;  %v515_v53 = vadd.f32 %v511_v9, %v443_v39  ;;  %v551_v50 = vadd.f32 %v547_v10, %v479_v1  ;;  %v583_v63 = vmul.f32 %v2827_v38, %v4404_v51  ;;  %v4627_v1 = vld [vmem:[#allocation38_spill] sm:$0xff] }
 0x174   :  { %v619_v62 = vmul.f32 %v4611_v19, %v4403_v52  ;;  %v1080_v54 = vmul.f32 %v4626_v7, %v1074_v55  ;;  %v1079_v18 = vmul.f32 %v4626_v7, %v1073_v61  ;;  %v1051_v39 = vmul.f32 %v4614_v37, %v1045_v44  ;;  %v4675_v52 = vld [vmem:[#allocation79_spill] sm:$0xff] }
 0x175   :  { %1331 = vrot.lane.b32.xlu1 %v2710_v12, %s1841_s15  ;;  %1329 = vrot.lane.b32.xlu0 %v2715_v28, %s1841_s15  ;;  %v1076_v28 = vsel %vm1056_vm13, %v3391_v36, %v3456_v47  ;;  %v1075_v12 = vsel %vm1056_vm13, %v3393_v31, %v3458_v6  ;;  %v1050_v19 = vmul.f32 %v4614_v37, %v1044_v24  ;;  %v4676_v51 = vmax.f32 %v4675_v52, 0.0  ;;  %v4684_v52 = vld [vmem:[#allocation60_spill] sm:$0xff] }
 0x176   :  { %v1052_v59 = vadd.f32 %v1048_v27, %v4627_v1  ;;  %v1082_v31 = vmul.f32 %v4626_v7, %v1076_v28  ;;  %v1081_v6 = vmul.f32 %v4626_v7, %v1075_v12  ;;  %v587_v37 = vadd.f32 %v583_v63, %v515_v53  ;;  %v3635_v28 = vld [vmem:[%s4303_s2 + $0x28] sm:$0xff] }
 0x177   :  { %v1099_v25 = vpop.permute.xlu1 %1098  ;;  %v1097_v38 = vpop.permute.xlu0 %1096  ;;  %v623_v10 = vadd.f32 %v619_v62, %v551_v50  ;;  %v1083_v55 = vadd.f32 %v1079_v18, %v1021_v8  ;;  %v1055_v57 = vadd.f32 %v1051_v39, %v3431_v43  ;;  %v1054_v0 = vadd.f32 %v1050_v19, %v992_v60  ;;  %v4628_v43 = vld [vmem:[#allocation27_spill] sm:$0xff]  ;;  %v3628_v18 = vld [vmem:[%s4303_s2 + $0x30] sm:$0xff]  ;;  %v3653_v39 = vld [vmem:[%s4303_s2 + $0x38] sm:$0xff] }
 0x178   :  { %v1105_v3 = vsel %vm1087_vm14, %v1091_v58, %v1099_v25  ;;  %v1104_v9 = vsel %vm1087_vm14, %v1089_v42, %v1097_v38  ;;  %v1084_v58 = vadd.f32 %v1080_v54, %v1022_v29  ;;  %v1086_v29 = vadd.f32 %v1082_v31, %v1024_v56  ;;  %v3646_v38 = vld [vmem:[%s4303_s2 + $0x40] sm:$0xff]  ;;  %s1743_s2 = sld [smem:[#allocation2 + $0x13]] }
 0x179   :  { %v1111_v36 = vmul.f32 %v1109_v11, %v1105_v3  ;;  %v1110_v47 = vmul.f32 %v1109_v11, %v1104_v9  ;;  %1335 = vrot.lane.b32.xlu1 %v2761_v23, %s1841_s15  ;;  %1333 = vrot.lane.b32.xlu0 %v2766_v20, %s1841_s15  ;;  %v1085_v8 = vadd.f32 %v1081_v6, %v1023_v14  ;;  %s1680_s15 = sld [smem:[#allocation5 + $0x19]] }
 0x17a   :  { %v637_v53 = vadd.f32 %v623_v10, %v587_v37 }
 0x17b   :  { %v1115_v61 = vadd.f32 %v1111_v36, %v1053_v46  ;;  %v1114_v42 = vadd.f32 %v1110_v47, %v1052_v59  ;;  %v1103_v15 = vpop.permute.xlu1 %1102  ;;  %v1101_v27 = vpop.permute.xlu0 %1100  ;;  %v638_v46 = vadd.f32 %v624_v13, %v3519_v34 }
 0x17c   :  { %v1107_v23 = vsel %vm1087_vm14, %v1095_v21, %v1103_v15  ;;  %v1106_v20 = vsel %vm1087_vm14, %v1093_v5, %v1101_v27  ;;  %v4629_v21 = vld [vmem:[#allocation74_spill] sm:$0xff] }
 0x17d   :  { %v1119_v44 = vadd.f32 %v1115_v61, %v1084_v58  ;;  %v1118_v41 = vadd.f32 %v1114_v42, %v1083_v55  ;;  %v1113_v2 = vmul.f32 %v1109_v11, %v1107_v23  ;;  %v1112_v24 = vmul.f32 %v1109_v11, %v1106_v20  ;;  %1353 = vrot.lane.b32.xlu1 %v3483_v16, %s1842_s16 }
 0x17e   :  { %1351 = vrot.lane.b32.xlu0 %v3490_v26, %s1842_s16 }
 0x17f   :  { %v1123_v60 = vmul.f32 %v1119_v44, %v4628_v43  ;;  %v1122_v50 = vmul.f32 %v1118_v41, %v4629_v21  ;;  %v1117_v5 = vadd.f32 %v1113_v2, %v1055_v57  ;;  %v1116_v63 = vadd.f32 %v1112_v24, %v1054_v0  ;;  %v3613_v62 = vpop.permute.xlu1 %1147  ;;  %v3615_v11 = vpop.permute.xlu0 %1145 }
 0x181   :  { %1127 = vst [vmem:[#allocation7 + $0x8] sm:$0xff] %v1123_v60  ;;  %1126 = vst [vmem:[#allocation7] sm:$0xff] %v1122_v50  ;;  %v1121_v56 = vadd.f32 %v1117_v5, %v1086_v29  ;;  %v1120_v14 = vadd.f32 %v1116_v63, %v1085_v8  ;;  %1357 = vrot.lane.b32.xlu1 %v3525_v33, %s1842_s16 }
 0x182   :  { %1355 = vrot.lane.b32.xlu0 %v3532_v40, %s1842_s16 }
 0x183   :  { %v1125_v13 = vmul.f32 %v1121_v56, %v638_v46  ;;  %v1124_v34 = vmul.f32 %v1120_v14, %v637_v53  ;;  %v3621_v7 = vpop.permute.xlu1 %1151  ;;  %v3623_v54 = vpop.permute.xlu0 %1149  ;;  %v3769_v14 = vstv %s1743_s2  ;;  %s4171_s2 = sld [smem:[#allocation2 + $0x1d]] }
 0x185   :  { %1129 = vst [vmem:[#allocation7 + $0x18] sm:$0xff] %v1125_v13  ;;  %1128 = vst [vmem:[#allocation7 + $0x10] sm:$0xff] %v1124_v34  ;;  %1361 = vrot.lane.b32.xlu1 %v3628_v18, %s1842_s16 }
 0x186   :  { %1359 = vrot.lane.b32.xlu0 %v3635_v28, %s1842_s16 }
 0x187   :  { %v3639_v12 = vpop.permute.xlu1 %1155  ;;  %v3641_v25 = vpop.permute.xlu0 %1153 }
 0x189   :  { %1365 = vrot.lane.b32.xlu1 %v3646_v38, %s1842_s16 }
 0x18a   :  { %1363 = vrot.lane.b32.xlu0 %v3653_v39, %s1842_s16 }
 0x18b   :  { %v3657_v19 = vpop.permute.xlu1 %1159  ;;  %v3659_v3 = vpop.permute.xlu0 %1157 }
 0x18d   :  { %1383 = vrot.lane.b32.xlu1 %v3483_v16, %s1843_s17 }
 0x18e   :  { %1381 = vrot.lane.b32.xlu0 %v3490_v26, %s1843_s17 }
 0x18f   :  { %v3665_v9 = vpop.permute.xlu1 %1173  ;;  %v3667_v1 = vpop.permute.xlu0 %1171 }
 0x191   :  { %1387 = vrot.lane.b32.xlu1 %v3525_v33, %s1843_s17 }
 0x192   :  { %1385 = vrot.lane.b32.xlu0 %v3532_v40, %s1843_s17 }
 0x193   :  { %v3673_v59 = vpop.permute.xlu1 %1177  ;;  %v3675_v36 = vpop.permute.xlu0 %1175 }
 0x195   :  { %1391 = vrot.lane.b32.xlu1 %v3628_v18, %s1843_s17 }
 0x196   :  { %1389 = vrot.lane.b32.xlu0 %v3635_v28, %s1843_s17 }
 0x197   :  { %v3681_v47 = vpop.permute.xlu1 %1181  ;;  %v3683_v31 = vpop.permute.xlu0 %1179 }
 0x199   :  { %1395 = vrot.lane.b32.xlu1 %v3646_v38, %s1843_s17 }
 0x19a   :  { %1393 = vrot.lane.b32.xlu0 %v3653_v39, %s1843_s17  ;;  %s1741_s17 = sld [smem:[#allocation2 + $0x11]] }
 0x19b   :  { %v3689_v6 = vpop.permute.xlu1 %1185  ;;  %v3691_v37 = vpop.permute.xlu0 %1183 }
 0x19d   :  { %1413 = vrot.lane.b32.xlu1 %v3483_v16, %s1844_s18 }
 0x19e   :  { %1411 = vrot.lane.b32.xlu0 %v3490_v26, %s1844_s18 }
 0x19f   :  { %v3697_v10 = vpop.permute.xlu1 %1203  ;;  %v3699_v58 = vpop.permute.xlu0 %1201 }
 0x1a1   :  { %1417 = vrot.lane.b32.xlu1 %v3525_v33, %s1844_s18 }
 0x1a2   :  { %1415 = vrot.lane.b32.xlu0 %v3532_v40, %s1844_s18 }
 0x1a3   :  { %v1208_v55 = vpop.permute.xlu1 %1207  ;;  %v1206_v61 = vpop.permute.xlu0 %1205 }
 0x1a5   :  { %1421 = vrot.lane.b32.xlu1 %v3628_v18, %s1844_s18 }
 0x1a6   :  { %1419 = vrot.lane.b32.xlu0 %v3635_v28, %s1844_s18 }
 0x1a7   :  { %v3709_v42 = vpop.permute.xlu1 %1211  ;;  %v3711_v15 = vpop.permute.xlu0 %1209 }
 0x1a9   :  { %1425 = vrot.lane.b32.xlu1 %v3646_v38, %s1844_s18 }
 0x1aa   :  { %1423 = vrot.lane.b32.xlu0 %v3653_v39, %s1844_s18  ;;  %s1745_s18 = sld [smem:[#allocation2 + $0x15]] }
 0x1ab   :  { %v1216_v27 = vpop.permute.xlu1 %1215  ;;  %v1214_v57 = vpop.permute.xlu0 %1213 }
 0x1ac   :  { %v1220_v63 = vsel %vm715_vm2, %v1208_v55, %v1216_v27  ;;  %v1219_v56 = vsel %vm715_vm2, %v1206_v61, %v1214_v57  ;;  %v1163_v55 = vsel %vm657_vm0, %v3623_v54, %v3659_v3 }
 0x1ad   :  { %1443 = vrot.lane.b32.xlu1 %v3483_v16, %s1845_s19  ;;  %v1226_v57 = vmul.f32 %v3769_v14, %v1220_v63 }
 0x1ae   :  { %1441 = vrot.lane.b32.xlu0 %v3490_v26, %s1845_s19 }
 0x1af   :  { %v1234_v0 = vpop.permute.xlu1 %1233  ;;  %v1232_v23 = vpop.permute.xlu0 %1231 }
 0x1b1   :  { %1447 = vrot.lane.b32.xlu1 %v3525_v33, %s1845_s19 }
 0x1b2   :  { %1445 = vrot.lane.b32.xlu0 %v3532_v40, %s1845_s19 }
 0x1b3   :  { %v1238_v20 = vpop.permute.xlu1 %1237  ;;  %v1236_v44 = vpop.permute.xlu0 %1235 }
 0x1b5   :  { %1451 = vrot.lane.b32.xlu1 %v3628_v18, %s1845_s19 }
 0x1b6   :  { %1449 = vrot.lane.b32.xlu0 %v3635_v28, %s1845_s19 }
 0x1b7   :  { %v1242_v41 = vpop.permute.xlu1 %1241  ;;  %v1240_v2 = vpop.permute.xlu0 %1239 }
 0x1b8   :  { %v3731_v24 = vsel %vm746_vm3, %v1234_v0, %v1242_v41  ;;  %v3735_v29 = vsel %vm746_vm3, %v1232_v23, %v1240_v2  ;;  %v1164_v0 = vsel %vm657_vm0, %v3621_v7, %v3657_v19  ;;  %v1225_v23 = vmul.f32 %v3769_v14, %v1219_v56 }
 0x1b9   :  { %1455 = vrot.lane.b32.xlu1 %v3646_v38, %s1845_s19  ;;  %v3791_v7 = vstv %s1741_s17  ;;  %v1192_v56 = vstv %s3761_s1  ;;  %s4196_s17 = sld [smem:[#allocation2 + $0x1e]] }
 0x1ba   :  { %1453 = vrot.lane.b32.xlu0 %v3653_v39, %s1845_s19  ;;  %s3757_s19 = sld [smem:[#allocation2 + $0x10]]  ;;  %v1170_v54 = vmul.f32 %v3791_v7, %v1164_v0  ;;  %v1169_v19 = vmul.f32 %v3791_v7, %v1163_v55 }
 0x1bb   :  { %v1246_v8 = vpop.permute.xlu1 %1245  ;;  %v1244_v46 = vpop.permute.xlu0 %1243 }
 0x1bc   :  { %v3743_v53 = vsel %vm746_vm3, %v1238_v20, %v1246_v8  ;;  %v3747_v43 = vsel %vm746_vm3, %v1236_v44, %v1244_v46  ;;  %v3797_v44 = vstv %s1745_s18  ;;  %v1230_v8 = vadd.f32 %v1226_v57, %v1170_v54  ;;  %s4206_s18 = sld [smem:[#allocation2 + $0x1f]] }
 0x1bd   :  { %1473 = vrot.lane.b32.xlu1 %v3483_v16, %s1846_s20  ;;  %v1229_v46 = vadd.f32 %v1225_v23, %v1169_v19  ;;  %v1252_v57 = vstv %s1744_s21  ;;  %v1190_v19 = vsel %vm684_vm1, %v3673_v59, %v3689_v6 }
 0x1be   :  { %1471 = vrot.lane.b32.xlu0 %v3490_v26, %s1846_s20  ;;  %v1196_v6 = vmul.f32 %v1192_v56, %v1190_v19 }
 0x1bf   :  { %v1264_v60 = vpop.permute.xlu1 %1263  ;;  %v1262_v21 = vpop.permute.xlu0 %1261 }
 0x1c0   :  { %v1140_v63 = vstv %s3757_s19  ;;  %s1850_s19 = smov [#allocation7]  }
 0x1c1   :  { %1477 = vrot.lane.b32.xlu1 %v3525_v33, %s1846_s20  ;;  %v1142_v23 = vmul.f32 %v3483_v16, %v1140_v63  ;;  %v1144_v59 = vmul.f32 %v3525_v33, %v1140_v63  ;;  %s1609_s1 = sshll.u32 %s1850_s19, 4  ;;  %s1610_s1 = int_to_ptr.vmem [resolvable:$true] %s1609_s1 }
 0x1c2   :  { %1475 = vrot.lane.b32.xlu0 %v3532_v40, %s1846_s20  ;;  %s1807_s21 = scalar_lea.vmem %s1610_s1, 1024  ;;  %p1812_p11 = scmp.lt.s32.totalorder %s1610_s1, %s1610_s1 }
 0x1c3   :  { %v1268_v50 = vpop.permute.xlu1 %1267  ;;  %v1266_v5 = vpop.permute.xlu0 %1265  ;;  %p1808_p10 = scmp.ne.s32.totalorder %s1610_s1, %s1807_s21  ;;  %p1813_p12 = scmp.lt.s32.totalorder %s1807_s21, %s1807_s21 }
 0x1c5   :  { %1481 = vrot.lane.b32.xlu1 %v3628_v18, %s1846_s20  ;;  %p1814_p13 = por %p1813_p12, %p1812_p11 }
 0x1c6   :  { %1479 = vrot.lane.b32.xlu0 %v3635_v28, %s1846_s20 }
 0x1c7   :  { %v1272_v13 = vpop.permute.xlu1 %1271  ;;  %v1270_v34 = vpop.permute.xlu0 %1269  ;;  %p1815_p0 = pnand %p1814_p13, %p1808_p10 }
 0x1c8   :  { %v3781_v61 = vsel %vm777_vm4, %v1264_v60, %v1272_v13  ;;  %v3785_v27 = vsel %vm777_vm4, %v1262_v21, %v1270_v34 }
 0x1c9   :  { %1485 = vrot.lane.b32.xlu1 %v3646_v38, %s1846_s20 }
 0x1ca   :  { %1483 = vrot.lane.b32.xlu0 %v3653_v39, %s1846_s20  ;;  %s1746_s20 = sld [smem:[#allocation2 + $0x16]] }
 0x1cb   :  { %v1276_v3 = vpop.permute.xlu1 %1275  ;;  %v1274_v20 = vpop.permute.xlu0 %1273 }
 0x1cc   :  { %v1280_v41 = vsel %vm777_vm4, %v1268_v50, %v1276_v3  ;;  %v1279_v2 = vsel %vm777_vm4, %v1266_v5, %v1274_v20  ;;  %v1188_v50 = vsel %vm684_vm1, %v3665_v9, %v3681_v47  ;;  %v1187_v5 = vsel %vm684_vm1, %v3667_v1, %v3683_v31 }
 0x1cd   :  { %v1286_v60 = vmul.f32 %v3797_v44, %v1280_v41  ;;  %v1285_v21 = vmul.f32 %v3797_v44, %v1279_v2  ;;  %1503 = vrot.lane.b32.xlu1 %v3483_v16, %s1847_s26  ;;  %v1194_v54 = vmul.f32 %v1192_v56, %v1188_v50  ;;  %v1141_v9 = vmul.f32 %v3490_v26, %v1140_v63 }
 0x1ce   :  { %1501 = vrot.lane.b32.xlu0 %v3490_v26, %s1847_s26  ;;  %v1193_v47 = vmul.f32 %v1192_v56, %v1187_v5  ;;  %v1189_v3 = vsel %vm684_vm1, %v3675_v36, %v3691_v37  ;;  %v1254_v20 = vmul.f32 %v1252_v57, %v3731_v24  ;;  %v1253_v41 = vmul.f32 %v1252_v57, %v3735_v29 }
 0x1cf   :  { %v3819_v13 = vadd.f32 %v1286_v60, %v1230_v8  ;;  %v3821_v34 = vadd.f32 %v1285_v21, %v1229_v46  ;;  %v1294_v0 = vpop.permute.xlu1 %1293  ;;  %v1292_v55 = vpop.permute.xlu0 %1291  ;;  %v1198_v2 = vadd.f32 %v1194_v54, %v1142_v23  ;;  %v1143_v60 = vmul.f32 %v3532_v40, %v1140_v63 }
 0x1d0   :  { %v1197_v8 = vadd.f32 %v1193_v47, %v1141_v9  ;;  %v1312_v46 = vstv %s1746_s20  ;;  %v1195_v21 = vmul.f32 %v1192_v56, %v1189_v3  ;;  %v1256_v23 = vmul.f32 %v1252_v57, %v3743_v53 }
 0x1d1   :  { %1507 = vrot.lane.b32.xlu1 %v3525_v33, %s1847_s26  ;;  %v1258_v24 = vadd.f32 %v1254_v20, %v1198_v2  ;;  %v1255_v54 = vmul.f32 %v1252_v57, %v3747_v43  ;;  %v1200_v63 = vadd.f32 %v1196_v6, %v1144_v59 }
 0x1d2   :  { %1505 = vrot.lane.b32.xlu0 %v3532_v40, %s1847_s26  ;;  %v1257_v50 = vadd.f32 %v1253_v41, %v1197_v8  ;;  %v1199_v56 = vadd.f32 %v1195_v21, %v1143_v60  ;;  %v1162_v60 = vsel %vm657_vm0, %v3613_v62, %v3639_v12  ;;  %v1161_v21 = vsel %vm657_vm0, %v3615_v11, %v3641_v25 }
 0x1d3   :  { %v1298_v1 = vpop.permute.xlu1 %1297  ;;  %v1296_v31 = vpop.permute.xlu0 %1295  ;;  %v1260_v57 = vadd.f32 %v1256_v23, %v1200_v63  ;;  %v1284_v62 = vmul.f32 %v3797_v44, %v3781_v61  ;;  %v1283_v12 = vmul.f32 %v3797_v44, %v3785_v27 }
 0x1d4   :  { %v1259_v20 = vadd.f32 %v1255_v54, %v1199_v56 }
 0x1d5   :  { %1511 = vrot.lane.b32.xlu1 %v3628_v18, %s1847_s26 }
 0x1d6   :  { %1509 = vrot.lane.b32.xlu0 %v3635_v28, %s1847_s26 }
 0x1d7   :  { %v1302_v36 = vpop.permute.xlu1 %1301  ;;  %v1300_v37 = vpop.permute.xlu0 %1299 }
 0x1d8   :  { %v1308_v29 = vsel %vm808_vm5, %v1294_v0, %v1302_v36  ;;  %v1307_v5 = vsel %vm808_vm5, %v1292_v55, %v1300_v37  ;;  %v1168_v36 = vmul.f32 %v3791_v7, %v1162_v60  ;;  %v1167_v37 = vmul.f32 %v3791_v7, %v1161_v21 }
 0x1d9   :  { %v1314_v9 = vmul.f32 %v1312_v46, %v1308_v29  ;;  %v1313_v47 = vmul.f32 %v1312_v46, %v1307_v5  ;;  %1515 = vrot.lane.b32.xlu1 %v3646_v38, %s1847_s26 }
 0x1da   :  { %1513 = vrot.lane.b32.xlu0 %v3653_v39, %s1847_s26  ;;  %s1747_s26 = sld [smem:[#allocation2 + $0x17]] }
 0x1db   :  { %v3855_v19 = vadd.f32 %v1314_v9, %v1258_v24  ;;  %v3857_v0 = vadd.f32 %v1313_v47, %v1257_v50  ;;  %v1306_v3 = vpop.permute.xlu1 %1305  ;;  %v1304_v55 = vpop.permute.xlu0 %1303 }
 0x1dc   :  { %v1310_v53 = vsel %vm808_vm5, %v1298_v1, %v1306_v3  ;;  %v1309_v43 = vsel %vm808_vm5, %v1296_v31, %v1304_v55  ;;  %v1218_v31 = vsel %vm715_vm2, %v3697_v10, %v3709_v42 }
 0x1dd   :  { %v1316_v41 = vmul.f32 %v1312_v46, %v1310_v53  ;;  %v1315_v2 = vmul.f32 %v1312_v46, %v1309_v43  ;;  %1533 = vrot.lane.b32.xlu1 %v3483_v16, %s1848_s6  ;;  %v1217_v46 = vsel %vm715_vm2, %v3699_v58, %v3711_v15  ;;  %v1224_v10 = vmul.f32 %v3769_v14, %v1218_v31 }
 0x1de   :  { %1531 = vrot.lane.b32.xlu0 %v3490_v26, %s1848_s6  ;;  %v1223_v58 = vmul.f32 %v3769_v14, %v1217_v46 }
 0x1df   :  { %v3867_v8 = vadd.f32 %v1316_v41, %v1260_v57  ;;  %v3869_v59 = vadd.f32 %v1315_v2, %v1259_v20  ;;  %v1324_v6 = vpop.permute.xlu1 %1323  ;;  %v1322_v1 = vpop.permute.xlu0 %1321  ;;  %v1228_v25 = vadd.f32 %v1224_v10, %v1168_v36 }
 0x1e0   :  { %v1342_v11 = vstv %s1747_s26  ;;  %v1227_v14 = vadd.f32 %v1223_v58, %v1167_v37 }
 0x1e1   :  { %1537 = vrot.lane.b32.xlu1 %v3525_v33, %s1848_s6  ;;  %v1288_v29 = vadd.f32 %v1284_v62, %v1228_v25 }
 0x1e2   :  { %1535 = vrot.lane.b32.xlu0 %v3532_v40, %s1848_s6  ;;  %v1287_v5 = vadd.f32 %v1283_v12, %v1227_v14 }
 0x1e3   :  { %v1328_v42 = vpop.permute.xlu1 %1327  ;;  %v1326_v15 = vpop.permute.xlu0 %1325 }
 0x1e5   :  { %1541 = vrot.lane.b32.xlu1 %v3628_v18, %s1848_s6 }
 0x1e6   :  { %1539 = vrot.lane.b32.xlu0 %v3635_v28, %s1848_s6 }
 0x1e7   :  { %v1332_v24 = vpop.permute.xlu1 %1331  ;;  %v1330_v50 = vpop.permute.xlu0 %1329 }
 0x1e8   :  { %v1338_v7 = vsel %vm839_vm6, %v1324_v6, %v1332_v24  ;;  %v1337_v61 = vsel %vm839_vm6, %v1322_v1, %v1330_v50 }
 0x1e9   :  { %v1344_v27 = vmul.f32 %v1342_v11, %v1338_v7  ;;  %v1343_v44 = vmul.f32 %v1342_v11, %v1337_v61  ;;  %1545 = vrot.lane.b32.xlu1 %v3646_v38, %s1848_s6 }
 0x1ea   :  { %1543 = vrot.lane.b32.xlu0 %v3653_v39, %s1848_s6  ;;  %s1749_s6 = sld [smem:[#allocation2 + $0x19]] }
 0x1eb   :  { %v1348_v23 = vadd.f32 %v1344_v27, %v1288_v29  ;;  %v1347_v54 = vadd.f32 %v1343_v44, %v1287_v5  ;;  %v1336_v9 = vpop.permute.xlu1 %1335  ;;  %v1334_v47 = vpop.permute.xlu0 %1333 }
 0x1ec   :  { %v1340_v63 = vsel %vm839_vm6, %v1328_v42, %v1336_v9  ;;  %v1339_v56 = vsel %vm839_vm6, %v1326_v15, %v1334_v47 }
 0x1ed   :  { %v1346_v3 = vmul.f32 %v1342_v11, %v1340_v63  ;;  %v1345_v55 = vmul.f32 %v1342_v11, %v1339_v56  ;;  %1563 = vrot.lane.b32.xlu1 %v3483_v16, %s1849_s22  ;;  %v1372_v16 = vstv %s1748_s9 }
 0x1ee   :  { %1561 = vrot.lane.b32.xlu0 %v3490_v26, %s1849_s22 }
 0x1ef   :  { %v1350_v53 = vadd.f32 %v1346_v3, %v3819_v13  ;;  %v1349_v43 = vadd.f32 %v1345_v55, %v3821_v34  ;;  %v1354_v57 = vpop.permute.xlu1 %1353 }
 0x1f0   :  { %v1352_v20 = vpop.permute.xlu0 %1351  ;;  %v1402_v36 = vstv %s1749_s6 }
 0x1f1   :  { %1567 = vrot.lane.b32.xlu1 %v3525_v33, %s1849_s22 }
 0x1f2   :  { %1565 = vrot.lane.b32.xlu0 %v3532_v40, %s1849_s22 }
 0x1f3   :  { %v1358_v41 = vpop.permute.xlu1 %1357 }
 0x1f4   :  { %v1356_v2 = vpop.permute.xlu0 %1355 }
 0x1f5   :  { %1571 = vrot.lane.b32.xlu1 %v3628_v18, %s1849_s22 }
 0x1f6   :  { %1569 = vrot.lane.b32.xlu0 %v3635_v28, %s1849_s22 }
 0x1f7   :  { %v1362_v26 = vpop.permute.xlu1 %1361 }
 0x1f8   :  { %v1368_v13 = vsel %vm870_vm7, %v1354_v57, %v1362_v26  ;;  %v1360_v34 = vpop.permute.xlu0 %1359 }
 0x1f9   :  { %v1374_v6 = vmul.f32 %v1372_v16, %v1368_v13  ;;  %v1367_v33 = vsel %vm870_vm7, %v1352_v20, %v1360_v34  ;;  %1575 = vrot.lane.b32.xlu1 %v3646_v38, %s1849_s22 }
 0x1fa   :  { %v1373_v40 = vmul.f32 %v1372_v16, %v1367_v33  ;;  %1573 = vrot.lane.b32.xlu0 %v3653_v39, %s1849_s22  ;;  %s1750_s22 = sld [smem:[#allocation2 + $0x1a]] }
 0x1fb   :  { %v1378_v18 = vadd.f32 %v1374_v6, %v3855_v19  ;;  %v1366_v28 = vpop.permute.xlu1 %1365 }
 0x1fc   :  { %v1377_v1 = vadd.f32 %v1373_v40, %v3857_v0  ;;  %v1370_v31 = vsel %vm870_vm7, %v1358_v41, %v1366_v28  ;;  %v1364_v46 = vpop.permute.xlu0 %1363 }
 0x1fd   :  { %v1376_v60 = vmul.f32 %v1372_v16, %v1370_v31  ;;  %v1369_v21 = vsel %vm870_vm7, %v1356_v2, %v1364_v46 }
 0x1fe   :  { %v1375_v10 = vmul.f32 %v1372_v16, %v1369_v21 }
 0x1ff   :  { %v1380_v38 = vadd.f32 %v1376_v60, %v3867_v8  ;;  %v1384_v58 = vpop.permute.xlu1 %1383 }
 0x200   :  { %v1379_v39 = vadd.f32 %v1375_v10, %v3869_v59  ;;  %v1382_v42 = vpop.permute.xlu0 %1381  ;;  %v1432_v56 = vstv %s1750_s22 }
 0x203   :  { %v1388_v19 = vpop.permute.xlu1 %1387 }
 0x204   :  { %v1386_v15 = vpop.permute.xlu0 %1385 }
 0x207   :  { %v1392_v0 = vpop.permute.xlu1 %1391 }
 0x208   :  { %v1398_v37 = vsel %vm901_vm8, %v1384_v58, %v1392_v0  ;;  %v1390_v62 = vpop.permute.xlu0 %1389 }
 0x209   :  { %v1404_v12 = vmul.f32 %v1402_v36, %v1398_v37  ;;  %v1397_v11 = vsel %vm901_vm8, %v1382_v42, %v1390_v62 }
 0x20a   :  { %v1403_v25 = vmul.f32 %v1402_v36, %v1397_v11 }
 0x20b   :  { %v1408_v14 = vadd.f32 %v1404_v12, %v1348_v23  ;;  %v1396_v24 = vpop.permute.xlu1 %1395 }
 0x20c   :  { %v1407_v8 = vadd.f32 %v1403_v25, %v1347_v54  ;;  %v1400_v59 = vsel %vm901_vm8, %v1388_v19, %v1396_v24  ;;  %v1394_v50 = vpop.permute.xlu0 %1393 }
 0x20d   :  { %v1406_v7 = vmul.f32 %v1402_v36, %v1400_v59  ;;  %v1399_v61 = vsel %vm901_vm8, %v1386_v15, %v1394_v50  ;;  %v98_v50 = vstv %s1626_s24 }
 0x20e   :  { %v1405_v29 = vmul.f32 %v1402_v36, %v1399_v61 }
 0x20f   :  { %v1410_v5 = vadd.f32 %v1406_v7, %v1350_v53  ;;  %v1414_v27 = vpop.permute.xlu1 %1413  ;;  %v158_v7 = vstv %s1638_s11 }
 0x210   :  { %v1409_v44 = vadd.f32 %v1405_v29, %v1349_v43  ;;  %v1412_v9 = vpop.permute.xlu0 %1411  ;;  %v126_v29 = vstv %s1632_s10 }
 0x213   :  { %v1418_v47 = vpop.permute.xlu1 %1417 }
 0x214   :  { %v1416_v63 = vpop.permute.xlu0 %1415 }
 0x217   :  { %v1422_v23 = vpop.permute.xlu1 %1421 }
 0x218   :  { %v1428_v54 = vsel %vm932_vm9, %v1414_v27, %v1422_v23  ;;  %v1420_v3 = vpop.permute.xlu0 %1419  ;;  %v4636_v27 = vld [vmem:[#allocation13_spill] sm:$0xff] }
 0x219   :  { %v1434_v55 = vmul.f32 %v1432_v56, %v1428_v54  ;;  %v1427_v57 = vsel %vm932_vm9, %v1412_v9, %v1420_v3  ;;  %v4640_v54 = vld [vmem:[#allocation12_spill] sm:$0xff] }
 0x21a   :  { %v1433_v20 = vmul.f32 %v1432_v56, %v1427_v57  ;;  %v4641_v3 = vmax.f32 %v4640_v54, 0.0  ;;  %v4642_v57 = vld [vmem:[#allocation26_spill] sm:$0xff] }
 0x21b   :  { %v3957_v41 = vadd.f32 %v1434_v55, %v1378_v18  ;;  %v1426_v2 = vpop.permute.xlu1 %1425 }
 0x21c   :  { %v3959_v53 = vadd.f32 %v1433_v20, %v1377_v1  ;;  %v1430_v43 = vsel %vm932_vm9, %v1418_v47, %v1426_v2  ;;  %v1424_v16 = vpop.permute.xlu0 %1423  ;;  %v1462_v1 = vstv %s1751_s23  ;;  %v4638_v47 = vld [vmem:[#allocation18_spill] sm:$0xff]  ;;  %v128_v55 = vmul.f32 %v126_v29, %v4641_v3  ;;  %v4656_v3 = vld [vmem:[#allocation55_spill] sm:$0xff] }
 0x21d   :  { %v1436_v26 = vmul.f32 %v1432_v56, %v1430_v43  ;;  %v1429_v13 = vsel %vm932_vm9, %v1416_v63, %v1424_v16  ;;  %v4639_v63 = vmax.f32 %v4638_v47, 0.0  ;;  %v4643_v20 = vmax.f32 %v4642_v57, 0.0  ;;  %v4654_v47 = vld [vmem:[#allocation20_spill] sm:$0xff] }
 0x21e   :  { %v1435_v34 = vmul.f32 %v1432_v56, %v1429_v13  ;;  %v4007_v43 = vstv %s1650_s13 }
 0x21f   :  { %v3965_v6 = vadd.f32 %v1436_v26, %v1380_v38  ;;  %v1444_v33 = vpop.permute.xlu1 %1443  ;;  %v160_v56 = vmul.f32 %v158_v7, %v4639_v63  ;;  %v266_v26 = vstv %s1656_s14  ;;  %v4655_v63 = vmax.f32 %v4654_v47, 0.0 }
 0x220   :  { %v3967_v40 = vadd.f32 %v1435_v34, %v1379_v39  ;;  %v1442_v18 = vpop.permute.xlu0 %1441  ;;  %v4644_v34 = vld [vmem:[#allocation28_spill] sm:$0xff] }
 0x221   :  { %4630 = vst [vmem:[#allocation42_spill] sm:$0xff] %v3965_v6 }
 0x222   :  { %4631 = vst [vmem:[#allocation52_spill] sm:$0xff] %v3967_v40  ;;  %v4677_v40 = vmax.f32 %v3268_v22, 0.0  ;;  %v4685_v22 = vmax.f32 %v4684_v52, 0.0 }
 0x223   :  { %v1448_v28 = vpop.permute.xlu1 %1447 }
 0x224   :  { %v1446_v31 = vpop.permute.xlu0 %1445 }
 0x227   :  { %v1452_v46 = vpop.permute.xlu1 %1451 }
 0x228   :  { %v1458_v60 = vsel %vm963_vm10, %v1444_v33, %v1452_v46  ;;  %v1450_v21 = vpop.permute.xlu0 %1449  ;;  %v4645_v33 = vmax.f32 %v4644_v34, 0.0  ;;  %v4648_v46 = vld [vmem:[#allocation51_spill] sm:$0xff] }
 0x229   :  { %v1464_v10 = vmul.f32 %v1462_v1, %v1458_v60  ;;  %v1457_v58 = vsel %vm963_vm10, %v1442_v18, %v1450_v21  ;;  %v4649_v60 = vmax.f32 %v4648_v46, 0.0  ;;  %v4658_v34 = vld [vmem:[#allocation15_spill] sm:$0xff]  ;;  %v4660_v46 = vld [vmem:[#allocation56_spill] sm:$0xff] }
 0x22a   :  { %v1463_v42 = vmul.f32 %v1462_v1, %v1457_v58  ;;  %v232_v18 = vmul.f32 %v4007_v43, %v4645_v33  ;;  %v4659_v33 = vmax.f32 %v4658_v34, 0.0 }
 0x22b   :  { %v3973_v19 = vadd.f32 %v1464_v10, %v1408_v14  ;;  %v1456_v38 = vpop.permute.xlu1 %1455  ;;  %v159_v21 = vmul.f32 %v158_v7, %v4649_v60 }
 0x22c   :  { %v3975_v15 = vadd.f32 %v1463_v42, %v1407_v8  ;;  %v1460_v39 = vsel %vm963_vm10, %v1448_v28, %v1456_v38  ;;  %v1454_v36 = vpop.permute.xlu0 %1453  ;;  %v4646_v28 = vld [vmem:[#allocation50_spill] sm:$0xff]  ;;  %v4650_v42 = vld [vmem:[#allocation29_spill] sm:$0xff] }
 0x22d   :  { %4632 = vst [vmem:[#allocation57_spill] sm:$0xff] %v3973_v19  ;;  %v1466_v0 = vmul.f32 %v1462_v1, %v1460_v39  ;;  %v1459_v37 = vsel %vm963_vm10, %v1446_v31, %v1454_v36  ;;  %v4647_v31 = vmax.f32 %v4646_v28, 0.0  ;;  %v4651_v38 = vmax.f32 %v4650_v42, 0.0 }
 0x22e   :  { %4633 = vst [vmem:[#allocation25_spill] sm:$0xff] %v3975_v15  ;;  %v1465_v62 = vmul.f32 %v1462_v1, %v1459_v37  ;;  %v4022_v36 = vstv %s1662_s25  ;;  %v4026_v37 = vstv %s1668_s27 }
 0x22f   :  { %v3981_v12 = vadd.f32 %v1466_v0, %v1410_v5  ;;  %v3983_v11 = vpop.permute.xlu1 %1473  ;;  %v194_v5 = vstv %s1644_s12  ;;  %v99_v1 = vmul.f32 %v98_v50, %v4647_v31  ;;  %v268_v39 = vmul.f32 %v266_v26, %v4651_v38 }
 0x230   :  { %v3985_v25 = vadd.f32 %v1465_v62, %v1409_v44  ;;  %v3987_v14 = vpop.permute.xlu0 %1471  ;;  %v4637_v44 = vmax.f32 %v4636_v27, 0.0  ;;  %v196_v2 = vmul.f32 %v194_v5, %v4643_v20  ;;  %v4652_v62 = vld [vmem:[#allocation54_spill] sm:$0xff]  ;;  %v340_v28 = vmul.f32 %v4026_v37, %v4659_v33 }
 0x231   :  { %4634 = vst [vmem:[#allocation49_spill] sm:$0xff] %v3981_v12  ;;  %v4653_v27 = vmax.f32 %v4652_v62, 0.0  ;;  %v163_v54 = vadd.f32 %v159_v21, %v99_v1  ;;  %v4040_v31 = vstv %s1674_s28  ;;  %v4663_v21 = vld [vmem:[#allocation19_spill] sm:$0xff] }
 0x232   :  { %4635 = vst [vmem:[#allocation40_spill] sm:$0xff] %v3985_v25  ;;  %v100_v9 = vmul.f32 %v98_v50, %v4637_v44  ;;  %v200_v58 = vadd.f32 %v196_v2, %v128_v55  ;;  %v4657_v55 = vmax.f32 %v4656_v3, 0.0  ;;  %v4664_v42 = vmax.f32 %v4663_v21, 0.0  ;;  %v4671_v21 = vld [vmem:[#allocation69_spill] sm:$0xff] }
 0x233   :  { %v3989_v24 = vpop.permute.xlu1 %1477  ;;  %v127_v44 = vmul.f32 %v126_v29, %v4653_v27  ;;  %v4054_v3 = vstv %s1680_s15  ;;  %v101_v25 = vmul.f32 %v98_v50, %v4676_v51  ;;  %v303_v51 = vmul.f32 %v4022_v36, %v4685_v22 }
 0x234   :  { %v3991_v8 = vpop.permute.xlu0 %1475  ;;  %v164_v13 = vadd.f32 %v160_v56, %v100_v9  ;;  %v304_v56 = vmul.f32 %v4022_v36, %v4655_v63  ;;  %v195_v57 = vmul.f32 %v194_v5, %v4657_v55  ;;  %v272_v2 = vadd.f32 %v268_v39, %v200_v58  ;;  %v4665_v58 = vld [vmem:[#allocation59_spill] sm:$0xff] }
 0x235   :  { %v376_v38 = vmul.f32 %v4040_v31, %v4664_v42  ;;  %v4666_v39 = vmax.f32 %v4665_v58, 0.0  ;;  %v4056_v55 = vstv %s1686_s4  ;;  %v4672_v42 = vmax.f32 %v4671_v21, 0.0 }
 0x236   :  { %v236_v9 = vadd.f32 %v232_v18, %v164_v13  ;;  %v4661_v13 = vmax.f32 %v4660_v46, 0.0  ;;  %v199_v62 = vadd.f32 %v195_v57, %v127_v44  ;;  %v344_v63 = vadd.f32 %v340_v28, %v272_v2 }
 0x237   :  { %v3993_v59 = vpop.permute.xlu1 %1481  ;;  %v267_v27 = vmul.f32 %v266_v26, %v4666_v39  ;;  %v162_v58 = vmul.f32 %v158_v7, %v4672_v42  ;;  %v4673_v39 = vld [vmem:[#allocation70_spill] sm:$0xff]  ;;  %v4682_v42 = vld [vmem:[#allocation21_spill] sm:$0xff] }
 0x238   :  { %v3995_v61 = vpop.permute.xlu0 %1479  ;;  %v231_v18 = vmul.f32 %v4007_v43, %v4661_v13  ;;  %v308_v1 = vadd.f32 %v304_v56, %v236_v9  ;;  %v4667_v9 = vld [vmem:[#allocation37_spill] sm:$0xff]  ;;  %v4669_v13 = vld [vmem:[#allocation68_spill] sm:$0xff]  ;;  %v4674_v2 = vmax.f32 %v4673_v39, 0.0  ;;  %v4683_v39 = vmax.f32 %v4682_v42, 0.0 }
 0x239   :  { %v4668_v56 = vmax.f32 %v4667_v9, 0.0  ;;  %v4670_v44 = vmax.f32 %v4669_v13, 0.0  ;;  %v4679_v9 = vmax.f32 %v3272_v32, 0.0  ;;  %v271_v32 = vadd.f32 %v267_v27, %v199_v62 }
 0x23a   :  { %v235_v34 = vadd.f32 %v231_v18, %v163_v54  ;;  %v198_v28 = vmul.f32 %v194_v5, %v4674_v2  ;;  %v129_v54 = vmul.f32 %v126_v29, %v4677_v40  ;;  %v4678_v18 = vmax.f32 %v3270_v17, 0.0 }
 0x23b   :  { %v4001_v23 = vpop.permute.xlu1 %1485  ;;  %v102_v46 = vmul.f32 %v98_v50, %v4668_v56  ;;  %v130_v57 = vmul.f32 %v126_v29, %v4670_v44  ;;  %v197_v56 = vmul.f32 %v194_v5, %v4679_v9  ;;  %v380_v13 = vadd.f32 %v376_v38, %v308_v1  ;;  %v4680_v44 = vld [vmem:[#allocation17_spill] sm:$0xff]  ;;  %v4689_v38 = vld [vmem:[#allocation43_spill] sm:$0xff] }
 0x23c   :  { %v4009_v16 = vpop.permute.xlu0 %1483  ;;  %v161_v12 = vmul.f32 %v158_v7, %v4678_v18  ;;  %v4681_v6 = vmax.f32 %v4680_v44, 0.0  ;;  %v448_v2 = vmul.f32 %v4056_v55, %v4683_v39  ;;  %v4091_v40 = vstv %s1692_s29  ;;  %v4686_v50 = vld [vmem:[#allocation61_spill] sm:$0xff]  ;;  %v4691_v44 = vld [vmem:[#allocation71_spill] sm:$0xff] }
 0x23d   :  { %v4687_v7 = vmax.f32 %v4686_v50, 0.0  ;;  %v166_v5 = vadd.f32 %v162_v58, %v102_v46  ;;  %v202_v1 = vadd.f32 %v198_v28, %v130_v57  ;;  %v4690_v18 = vmax.f32 %v4689_v38, 0.0  ;;  %v4695_v57 = vld [vmem:[#allocation62_spill] sm:$0xff] }
 0x23e   :  { %v412_v21 = vmul.f32 %v4054_v3, %v4681_v6  ;;  %v4692_v42 = vmax.f32 %v4691_v44, 0.0  ;;  %v165_v52 = vadd.f32 %v161_v12, %v101_v25  ;;  %v201_v22 = vadd.f32 %v197_v56, %v129_v54  ;;  %v4699_v25 = vld [vmem:[#allocation63_spill] sm:$0xff]  ;;  %v4701_v56 = vld [vmem:[#allocation72_spill] sm:$0xff] }
 0x23f   :  { %v4018_v10 = vpop.permute.xlu1 %1503  ;;  %v339_v6 = vmul.f32 %v4026_v37, %v4687_v7  ;;  %v234_v9 = vmul.f32 %v4007_v43, %v4690_v18  ;;  %v4693_v62 = vmax.f32 %v3304_v49, 0.0  ;;  %v4694_v50 = vmax.f32 %v3306_v35, 0.0  ;;  %v4697_v18 = vld [vmem:[#allocation35_spill] sm:$0xff] }
 0x240   :  { %v4024_v0 = vpop.permute.xlu0 %1501  ;;  %v270_v39 = vmul.f32 %v266_v26, %v4692_v42  ;;  %v416_v15 = vadd.f32 %v412_v21, %v344_v63  ;;  %v452_v19 = vadd.f32 %v448_v2, %v380_v13  ;;  %v307_v46 = vadd.f32 %v303_v51, %v235_v34  ;;  %v4703_v2 = vld [vmem:[#allocation73_spill] sm:$0xff] }
 0x241   :  { %v233_v27 = vmul.f32 %v4007_v43, %v4693_v62  ;;  %v269_v7 = vmul.f32 %v266_v26, %v4694_v50  ;;  %v4696_v58 = vmax.f32 %v4695_v57, 0.0  ;;  %v4698_v44 = vmax.f32 %v4697_v18, 0.0 }
 0x242   :  { %v4119_v49 = vstv %s4058_s30  ;;  %v343_v35 = vadd.f32 %v339_v6, %v271_v32  ;;  %v4700_v43 = vmax.f32 %v4699_v25, 0.0  ;;  %v238_v34 = vadd.f32 %v234_v9, %v166_v5  ;;  %v4705_v32 = vld [vmem:[#allocation80_spill] sm:$0xff]  ;;  %v4709_v5 = vld [vmem:[#allocation39_spill] sm:$0xff] }
 0x243   :  { %v4035_v20 = vpop.permute.xlu1 %1507  ;;  %v375_v28 = vmul.f32 %v4040_v31, %v4696_v58  ;;  %v484_v12 = vmul.f32 %v4091_v40, %v4698_v44  ;;  %v274_v54 = vadd.f32 %v270_v39, %v202_v1  ;;  %v4702_v13 = vmax.f32 %v4701_v56, 0.0  ;;  %v4707_v58 = vld [vmem:[#allocation81_spill] sm:$0xff] }
 0x244   :  { %v4045_v60 = vpop.permute.xlu0 %1505  ;;  %v411_v26 = vmul.f32 %v4054_v3, %v4700_v43  ;;  %v4704_v51 = vmax.f32 %v4703_v2, 0.0  ;;  %v237_v62 = vadd.f32 %v233_v27, %v165_v52  ;;  %v273_v50 = vadd.f32 %v269_v7, %v201_v22  ;;  %v4711_v43 = vld [vmem:[#allocation64_spill] sm:$0xff]  ;;  %v4714_v7 = vld [vmem:[#allocation22_spill] sm:$0xff] }
 0x245   :  { %4662 = vst [vmem:[#allocation66_spill] sm:$0xff] %v4045_v60  ;;  %v306_v21 = vmul.f32 %v4022_v36, %v4702_v13  ;;  %v4706_v6 = vmax.f32 %v4705_v32, 0.0  ;;  %v4708_v18 = vmax.f32 %v4707_v58, 0.0  ;;  %v4710_v1 = vmax.f32 %v4709_v5, 0.0  ;;  %v4717_v32 = vld [vmem:[#allocation58_spill] sm:$0xff] }
 0x246   :  { %v342_v42 = vmul.f32 %v4026_v37, %v4704_v51  ;;  %v554_v39 = vstv %s4084_s5  ;;  %v379_v25 = vadd.f32 %v375_v28, %v307_v46  ;;  %v4712_v56 = vmax.f32 %v4711_v43, 0.0 }
 0x247   :  { %v4052_v47 = vpop.permute.xlu1 %1511  ;;  %v305_v57 = vmul.f32 %v4022_v36, %v4706_v6  ;;  %v341_v44 = vmul.f32 %v4026_v37, %v4708_v18  ;;  %v520_v9 = vmul.f32 %v4119_v49, %v4710_v1  ;;  %v488_v22 = vadd.f32 %v484_v12, %v416_v15  ;;  %v4719_v18 = vld [vmem:[#allocation76_spill] sm:$0xff] }
 0x248   :  { %v4060_v33 = vpop.permute.xlu0 %1509  ;;  %v447_v13 = vmul.f32 %v4056_v55, %v4712_v56  ;;  %v4152_v36 = vstv %s4093_s7  ;;  %v415_v27 = vadd.f32 %v411_v26, %v343_v35  ;;  %v4715_v37 = vmax.f32 %v4714_v7, 0.0  ;;  %v4721_v35 = vld [vmem:[#allocation83_spill] sm:$0xff]  ;;  %v4723_v56 = vld [vmem:[#allocation84_spill] sm:$0xff] }
 0x249   :  { %v310_v46 = vadd.f32 %v306_v21, %v238_v34  ;;  %v346_v28 = vadd.f32 %v342_v42, %v274_v54  ;;  %v4718_v6 = vmax.f32 %v4717_v32, 0.0  ;;  %v4720_v5 = vmax.f32 %v4719_v18, 0.0  ;;  %v4725_v54 = vld [vmem:[#allocation47_spill] sm:$0xff] }
 0x24a   :  { %v483_v2 = vmul.f32 %v4091_v40, %v4715_v37  ;;  %v309_v12 = vadd.f32 %v305_v57, %v237_v62  ;;  %v345_v1 = vadd.f32 %v341_v44, %v273_v50  ;;  %v4722_v26 = vmax.f32 %v4721_v35, 0.0  ;;  %v4729_v57 = vld [vmem:[#allocation48_spill] sm:$0xff] }
 0x24b   :  { %v4089_v17 = vpop.permute.xlu1 %1515  ;;  %v378_v58 = vmul.f32 %v4040_v31, %v4718_v6  ;;  %v414_v15 = vmul.f32 %v4054_v3, %v4720_v5  ;;  %v4724_v7 = vmax.f32 %v4723_v56, 0.0  ;;  %v524_v34 = vadd.f32 %v520_v9, %v452_v19  ;;  %v4727_v6 = vld [vmem:[#allocation67_spill] sm:$0xff] }
 0x24c   :  { %v4098_v29 = vpop.permute.xlu0 %1513  ;;  %v377_v43 = vmul.f32 %v4040_v31, %v4722_v26  ;;  %v4726_v21 = vmax.f32 %v4725_v54, 0.0  ;;  %v451_v32 = vadd.f32 %v447_v13, %v379_v25  ;;  %v4728_v18 = vmax.f32 %v4727_v6, 0.0  ;;  %v4731_v26 = vld [vmem:[#allocation45_spill] sm:$0xff] }
 0x24d   :  { %4688 = vst [vmem:[#allocation11_spill] sm:$0xff] %v4098_v29  ;;  %v413_v37 = vmul.f32 %v4054_v3, %v4724_v7  ;;  %v4730_v44 = vmax.f32 %v4729_v57, 0.0  ;;  %v626_v5 = vstv %s4121_s8  ;;  %v487_v35 = vadd.f32 %v483_v2, %v415_v27  ;;  %v4733_v54 = vld [vmem:[#allocation77_spill] sm:$0xff] }
 0x24e   :  { %v556_v42 = vmul.f32 %v554_v39, %v4726_v21  ;;  %v519_v62 = vmul.f32 %v4119_v49, %v4728_v18  ;;  %v4732_v3 = vmax.f32 %v4731_v26, 0.0  ;;  %v382_v9 = vadd.f32 %v378_v58, %v310_v46  ;;  %v4735_v21 = vld [vmem:[#allocation24_spill] sm:$0xff]  ;;  %v4739_v2 = vld [vmem:[#allocation85_spill] sm:$0xff] }
 0x24f   :  { %v4113_v38 = vpop.permute.xlu1 %1533  ;;  %v592_v31 = vmul.f32 %v4152_v36, %v4730_v44  ;;  %v418_v7 = vadd.f32 %v414_v15, %v346_v28  ;;  %v4734_v25 = vmax.f32 %v4733_v54, 0.0  ;;  %v4736_v6 = vmax.f32 %v4735_v21, 0.0  ;;  %v4737_v44 = vld [vmem:[#allocation44_spill] sm:$0xff]  ;;  %v4741_v28 = vld [vmem:[#allocation53_spill] sm:$0xff] }
 0x250   :  { %v4126_v63 = vpop.permute.xlu0 %1531  ;;  %v555_v56 = vmul.f32 %v554_v39, %v4732_v3  ;;  %v381_v57 = vadd.f32 %v377_v43, %v309_v12  ;;  %v4740_v26 = vmax.f32 %v4739_v2, 0.0  ;;  %v560_v46 = vadd.f32 %v556_v42, %v488_v22 }
 0x251   :  { %v450_v13 = vmul.f32 %v4056_v55, %v4734_v25  ;;  %v486_v18 = vmul.f32 %v4091_v40, %v4736_v6  ;;  %v4742_v58 = vmax.f32 %v4741_v28, 0.0  ;;  %v523_v54 = vadd.f32 %v519_v62, %v451_v32  ;;  %v4743_v25 = vld [vmem:[#allocation33_spill] sm:$0xff]  ;;  %v4749_v62 = vld [vmem:[#allocation82_spill] sm:$0xff] }
 0x252   :  { %v485_v3 = vmul.f32 %v4091_v40, %v4740_v26  ;;  %v4744_v21 = vmax.f32 %v4743_v25, 0.0  ;;  %v4750_v26 = vmax.f32 %v4749_v62, 0.0 }
 0x253   :  { %v4149_v52 = vpop.permute.xlu1 %1537  ;;  %v628_v15 = vmul.f32 %v626_v5, %v4742_v58  ;;  %v454_v22 = vadd.f32 %v450_v13, %v382_v9  ;;  %v490_v42 = vadd.f32 %v486_v18, %v418_v7  ;;  %v1488_v13 = vsel %vm994_vm11, %v3983_v11, %v3993_v59 }
 0x254   :  { %4713 = vst [vmem:[#allocation23_spill] sm:$0xff] %v4149_v52  ;;  %v4157_v51 = vpop.permute.xlu0 %1535  ;;  %v4738_v52 = vmax.f32 %v4737_v44, 0.0  ;;  %v591_v12 = vmul.f32 %v4152_v36, %v4744_v21  ;;  %v4747_v44 = vld [vmem:[#allocation46_spill] sm:$0xff]  ;;  %v558_v28 = vmul.f32 %v554_v39, %v4750_v26  ;;  %v4751_v21 = vld [vmem:[#allocation87_spill] sm:$0xff]  ;;  %v4758_v11 = vmax.f32 %v3502_v4, 0.0 }
 0x255   :  { %4716 = vst [vmem:[#allocation14_spill] sm:$0xff] %v4157_v51  ;;  %v417_v51 = vadd.f32 %v413_v37, %v345_v1  ;;  %v4204_v1 = vstv %s4147_s0  ;;  %v4748_v2 = vmax.f32 %v4747_v44, 0.0  ;;  %v4752_v60 = vmax.f32 %v4751_v21, 0.0 }
 0x256   :  { %v449_v27 = vmul.f32 %v4056_v55, %v4738_v52  ;;  %v559_v55 = vadd.f32 %v555_v56, %v487_v35  ;;  %v4745_v52 = vld [vmem:[#allocation34_spill] sm:$0xff]  ;;  %v4753_v35 = vmax.f32 %v3450_v30, 0.0  ;;  %v632_v9 = vadd.f32 %v628_v15, %v560_v46 }
 0x257   :  { %v1542_v50 = vpop.permute.xlu1 %1541  ;;  %v4746_v40 = vmax.f32 %v4745_v52, 0.0  ;;  %v522_v32 = vmul.f32 %v4119_v49, %v4748_v2  ;;  %v489_v25 = vadd.f32 %v485_v3, %v417_v51  ;;  %v521_v29 = vmul.f32 %v4119_v49, %v4752_v60  ;;  %v4754_v49 = vld [vmem:[#allocation41_spill] sm:$0xff] }
 0x258   :  { %v1540_v19 = vpop.permute.xlu0 %1539  ;;  %v453_v58 = vadd.f32 %v449_v27, %v381_v57  ;;  %v557_v56 = vmul.f32 %v554_v39, %v4753_v35  ;;  %v1522_v52 = vstv %s4171_s2  ;;  %v595_v7 = vadd.f32 %v591_v12, %v523_v54  ;;  %v4756_v27 = vld [vmem:[#allocation86_spill] sm:$0xff] }
 0x259   :  { %v627_v37 = vmul.f32 %v626_v5, %v4746_v40  ;;  %v596_v40 = vadd.f32 %v592_v31, %v524_v34  ;;  %v1487_v51 = vsel %vm994_vm11, %v3987_v14, %v3995_v61  ;;  %v4755_v30 = vmax.f32 %v4754_v49, 0.0 }
 0x25a   :  { %v526_v31 = vadd.f32 %v522_v32, %v454_v22  ;;  %v562_v57 = vadd.f32 %v558_v28, %v490_v42  ;;  %v4757_v3 = vmax.f32 %v4756_v27, 0.0  ;;  %v593_v59 = vmul.f32 %v4152_v36, %v4758_v11 }
 0x25b   :  { %v1546_v43 = vpop.permute.xlu1 %1545  ;;  %v631_v60 = vadd.f32 %v627_v37, %v559_v55  ;;  %v594_v39 = vmul.f32 %v4152_v36, %v4755_v30  ;;  %v1518_v14 = vsel %vm1025_vm12, %v4018_v10, %v4052_v47  ;;  %v525_v61 = vadd.f32 %v521_v29, %v453_v58 }
 0x25c   :  { %v1544_v6 = vpop.permute.xlu0 %1543  ;;  %v630_v46 = vmul.f32 %v626_v5, %v4757_v3  ;;  %v561_v15 = vadd.f32 %v557_v56, %v489_v25  ;;  %v4759_v54 = vmax.f32 %v3504_v45, 0.0  ;;  %v1494_v55 = vmul.f32 %v4204_v1, %v1488_v13  ;;  %v4762_v25 = vld [vmem:[#allocation57_spill] sm:$0xff]  ;;  %v4763_v56 = vld [vmem:[#allocation23_spill] sm:$0xff] }
 0x25d   :  { %v1493_v37 = vmul.f32 %v4204_v1, %v1487_v51  ;;  %v1552_v22 = vstv %s4196_s17  ;;  %v1517_v4 = vsel %vm1025_vm12, %v4024_v0, %v4060_v33  ;;  %v1582_v42 = vstv %s4206_s18 }
 0x25e   :  { %v629_v12 = vmul.f32 %v626_v5, %v4759_v54  ;;  %v640_v44 = vadd.f32 %v632_v9, %v596_v40  ;;  %v639_v2 = vadd.f32 %v631_v60, %v595_v7  ;;  %v1490_v45 = vsel %vm994_vm11, %v3989_v24, %v4001_v23  ;;  %v4765_v60 = vld [vmem:[#allocation25_spill] sm:$0xff]  ;;  %v4768_v54 = vld [vmem:[#allocation52_spill] sm:$0xff] }
 0x25f   :  { %v1564_v18 = vpop.permute.xlu1 %1563  ;;  %v1524_v10 = vmul.f32 %v1522_v52, %v1518_v14  ;;  %v1548_v47 = vsel %vm1056_vm13, %v4113_v38, %v1542_v50  ;;  %v598_v5 = vadd.f32 %v594_v39, %v526_v31  ;;  %v1547_v0 = vsel %vm1056_vm13, %v4126_v63, %v1540_v19  ;;  %v4760_v63 = vld [vmem:[#allocation11_spill] sm:$0xff]  ;;  %v4761_v50 = vld [vmem:[#allocation66_spill] sm:$0xff] }
 0x260   :  { %v1562_v34 = vpop.permute.xlu0 %1561  ;;  %v634_v33 = vadd.f32 %v630_v46, %v562_v57  ;;  %v597_v32 = vadd.f32 %v593_v59, %v525_v61  ;;  %v633_v62 = vadd.f32 %v629_v12, %v561_v15  ;;  %v1498_v26 = vadd.f32 %v1494_v55, %v3957_v41  ;;  %v4769_v55 = vld [vmem:[#allocation40_spill] sm:$0xff] }
 0x261   :  { %v1497_v28 = vadd.f32 %v1493_v37, %v3959_v53  ;;  %v1523_v58 = vmul.f32 %v1522_v52, %v1517_v4  ;;  %v1520_v24 = vsel %vm1025_vm12, %v4035_v20, %v4089_v17  ;;  %v1496_v23 = vmul.f32 %v4204_v1, %v1490_v45 }
 0x262   :  { %v1489_v38 = vsel %vm994_vm11, %v3991_v8, %v4009_v16  ;;  %v1519_v41 = vsel %vm1025_vm12, %v4761_v50, %v4760_v63  ;;  %v1554_v19 = vmul.f32 %v1552_v22, %v1548_v47  ;;  %v1528_v21 = vadd.f32 %v1524_v10, %v4762_v25  ;;  %v4764_v8 = vld [vmem:[#allocation14_spill] sm:$0xff] }
 0x263   :  { %v1568_v36 = vpop.permute.xlu1 %1567  ;;  %v1553_v35 = vmul.f32 %v1552_v22, %v1547_v0  ;;  %v1550_v20 = vsel %vm1056_vm13, %v4763_v56, %v1546_v43  ;;  %v1526_v9 = vmul.f32 %v1522_v52, %v1520_v24  ;;  %v1549_v16 = vsel %vm1056_vm13, %v4764_v8, %v1544_v6  ;;  %v4766_v43 = vld [vmem:[#allocation42_spill] sm:$0xff] }
 0x264   :  { %v1566_v29 = vpop.permute.xlu0 %1565  ;;  %v1495_v51 = vmul.f32 %v4204_v1, %v1489_v38  ;;  %v1527_v49 = vadd.f32 %v1523_v58, %v4765_v60  ;;  %v1525_v30 = vmul.f32 %v1522_v52, %v1519_v41  ;;  %v1500_v31 = vadd.f32 %v1496_v23, %v4766_v43 }
 0x265   :  { %v1558_v57 = vadd.f32 %v1554_v19, %v1498_v26  ;;  %v1557_v46 = vadd.f32 %v1553_v35, %v1497_v28  ;;  %v1555_v11 = vmul.f32 %v1552_v22, %v1549_v16  ;;  %v642_v47 = vadd.f32 %v634_v33, %v598_v5 }
 0x266   :  { %v1499_v12 = vadd.f32 %v1495_v51, %v4768_v54  ;;  %v1529_v37 = vadd.f32 %v1525_v30, %v4769_v55  ;;  %v641_v28 = vadd.f32 %v633_v62, %v597_v32 }
 0x267   :  { %v1572_v53 = vpop.permute.xlu1 %1571 }
 0x268   :  { %v1578_v17 = vsel %vm1087_vm14, %v1564_v18, %v1572_v53  ;;  %v1570_v40 = vpop.permute.xlu0 %1569  ;;  %v1556_v18 = vmul.f32 %v1552_v22, %v1550_v20  ;;  %v1559_v26 = vadd.f32 %v1555_v11, %v1499_v12 }
 0x269   :  { %v1584_v7 = vmul.f32 %v1582_v42, %v1578_v17  ;;  %v1577_v13 = vsel %vm1087_vm14, %v1562_v34, %v1570_v40  ;;  %v4767_v34 = vld [vmem:[#allocation49_spill] sm:$0xff] }
 0x26a   :  { %v1583_v39 = vmul.f32 %v1582_v42, %v1577_v13  ;;  %v1530_v61 = vadd.f32 %v1526_v9, %v4767_v34  ;;  %v1560_v10 = vadd.f32 %v1556_v18, %v1500_v31 }
 0x26b   :  { %v1588_v27 = vadd.f32 %v1584_v7, %v1528_v21  ;;  %v1576_v3 = vpop.permute.xlu1 %1575 }
 0x26c   :  { %v1587_v59 = vadd.f32 %v1583_v39, %v1527_v49  ;;  %v1580_v6 = vsel %vm1087_vm14, %v1568_v36, %v1576_v3  ;;  %v1574_v14 = vpop.permute.xlu0 %1573 }
 0x26d   :  { %v1592_v1 = vadd.f32 %v1588_v27, %v1558_v57  ;;  %v1586_v15 = vmul.f32 %v1582_v42, %v1580_v6  ;;  %v1579_v52 = vsel %vm1087_vm14, %v1566_v29, %v1574_v14 }
 0x26e   :  { %v1591_v4 = vadd.f32 %v1587_v59, %v1557_v46  ;;  %v1585_v45 = vmul.f32 %v1582_v42, %v1579_v52 }
 0x26f   :  { %v1596_v22 = vmul.f32 %v1592_v1, %v640_v44  ;;  %v1590_v0 = vadd.f32 %v1586_v15, %v1530_v61 }
 0x270   :  { %v1595_v36 = vmul.f32 %v1591_v4, %v639_v2  ;;  %v1589_v58 = vadd.f32 %v1585_v45, %v1529_v37 }
 0x271   :  { %1601 = vst [vmem:[#allocation7 + $0x28] sm:$0xff] %v1596_v22  ;;  %v1594_v24 = vadd.f32 %v1590_v0, %v1560_v10 }
 0x272   :  { %1600 = vst [vmem:[#allocation7 + $0x20] sm:$0xff] %v1595_v36  ;;  %v1593_v48 = vadd.f32 %v1589_v58, %v1559_v26 }
 0x273   :  { %v1598_v29 = vmul.f32 %v1594_v24, %v642_v47 }
 0x274   :  { %v1597_v23 = vmul.f32 %v1593_v48, %v641_v28 }
 0x275   :  { %1603 = vst [vmem:[#allocation7 + $0x38] sm:$0xff] %v1598_v29 }
 0x276   :  { %1602 = vst [vmem:[#allocation7 + $0x30] sm:$0xff] %v1597_v23 }
 0x277   :  { %1818 = shalt.err (!%p1815_p0)
}
 0x278   :  { %s1851_s20 = smov 128  }
 0x279   :  { %1615 = dma.vmem_to_hbm [thread:$0]  %s1610_s1, 1024, %s4304_s3, [#allocation3], %s1851_s20, %s1851_s20, %s1842_s16  }
 0x27a   :  { %1831 = dma.done.wait [#allocation3], 1024  }
 0x27b   :  { %1832 = vsyncadd [#allocation3], 4294966272 }
 0x27c   :  { %1619 = vsyncpa [#allocation3], 1 }
 0x27d   :  { %1620 = vsyncpa [#allocation4], 1 }
 0x27e   :  { %1621 = vsyncpa [#allocation6], 1 }

</bundles_post_ra>
